<compile_context>
chip_gen: v5e
topology: v5e:2x2
jax: 0.10.0
libtpu: 0.0.40
codegen_flags: <defaults>
</compile_context>

<pallas_src>
import functools

import numpy as np
import jax
import jax.numpy as jnp
from jax.experimental import pallas as pl
from jax.experimental.pallas import tpu as pltpu


# ----------------------------------------------------------------------------
# LinearPositionEmbeddingSine lookup tables (built on host, passed as constants)
# NOTE: 3.14 (not math.pi) is intentional -- it matches FlowFormer's source
# exactly; do not "fix" it or parity with the PyTorch reference breaks.
# ----------------------------------------------------------------------------
def _pe_tables(dim, normalize_factor=1.0 / 200):
    """enc[t, d] = sin(cx[t]*ax[d] + cy[t]*ay[d] + ph[d]) reproduces
       [sin(a*x*f), cos(a*x*f), sin(a*y*f), cos(a*y*f)] with a = 3.14*NF."""
    nq = dim // 4
    freq = np.linspace(0.0, nq - 1, nq, dtype=np.float32)
    a = (3.14 * normalize_factor * freq).astype(np.float32)
    z = np.zeros_like(a)
    half_pi = np.full_like(a, np.pi / 2.0)
    ax = np.concatenate([a, a, z, z])[None, :]                     # x-coord scales
    ay = np.concatenate([z, z, a, a])[None, :]                     # y-coord scales
    ph = np.concatenate([z, half_pi, z, half_pi])[None, :]         # sin -> cos phase
    return jnp.asarray(ax), jnp.asarray(ay), jnp.asarray(ph)


def _seg_matrices(qk_dim, v_dim, num_heads):
    """Head-segment selection matrices for the head-vectorized attention."""
    Dq, Dv = qk_dim, v_dim
    Dkv = Dq + Dv
    hd, hdv = Dq // num_heads, Dv // num_heads
    d = np.arange(Dkv)
    h = np.arange(num_heads)
    seg_scores = ((d[:, None] >= h[None, :] * hd)
                  & (d[:, None] < (h[None, :] + 1) * hd)).astype(np.float32)   # [Dkv,H]
    seg_expand = ((d[None, :] >= Dq + h[:, None] * hdv)
                  & (d[None, :] < Dq + (h[:, None] + 1) * hdv)).astype(np.float32)  # [H,Dkv]
    return jnp.asarray(seg_scores), jnp.asarray(seg_expand)


# ----------------------------------------------------------------------------
# Pallas kernel: whole cross-attention layer for a tile of TN tokens
# ----------------------------------------------------------------------------
def _cross_attn_kernel(
    # data (tiled)
    query_ref, qc_ref, mem_ref,
    # positional-encoding tables (tiny constants)
    ax_ref, ay_ref, ph_ref,
    # weights (full, un-tiled; GEMM weights bf16, biases/LN params f32)
    wq_ref, bq_ref, wkv_ref, bkv_ref, wp_ref, bp_ref,
    g1_ref, be1_ref, g2_ref, be2_ref,
    wf1_ref, bf1_ref, wf2_ref, bf2_ref,
    # head-segment matrices (tiny constants)
    segs_ref, sege_ref,
    # outputs
    x_out_ref, k_out_ref, v_out_ref,
    *, num_heads, tgt_len, qk_dim, v_dim,
):
    f32 = jnp.float32
    bf16 = jnp.bfloat16
    H = num_heads
    K = tgt_len
    Dq, Dv = qk_dim, v_dim
    Dkv = Dq + Dv

    # ---- kv = [Wk | Wv](memory): fused GEMM; memory read as f32, cast in VMEM ----
    mem = mem_ref[...].astype(bf16)                                     # [TN*K, Dt]
    kv = jnp.dot(mem, wkv_ref[...], preferred_element_type=f32) + bkv_ref[...]
    # k / v written directly as bf16 (no post-kernel slice copy, half writeback bytes)
    k_out_ref[...] = kv[:, :Dq].astype(bf16)                            # [TN*K, Dq]
    v_out_ref[...] = kv[:, Dq:].astype(bf16)                            # [TN*K, Dv]

    q_in = query_ref[...]                                               # [TN, D] f32
    TN = q_in.shape[0]

    # ---- LayerNorm1 (eps=1e-5, biased variance, like torch) -------------------
    mu = jnp.mean(q_in, axis=-1, keepdims=True)
    var = jnp.mean((q_in - mu) ** 2, axis=-1, keepdims=True)
    q_n = (q_in - mu) * jax.lax.rsqrt(var + 1e-5) * g1_ref[...] + be1_ref[...]

    # ---- LinearPositionEmbeddingSine computed in-kernel (EUP sin; no HBM enc) ----
    coords = qc_ref[...]                                                # [TN, 2]
    enc = jnp.sin(coords[:, 0:1] * ax_ref[...]
                  + coords[:, 1:2] * ay_ref[...] + ph_ref[...])         # [TN, Dq]

    # ---- q = Wq(norm1(query) + pe); 1/sqrt(head_dim) folded into Wq/bq --------
    q = jnp.dot((q_n + enc).astype(bf16), wq_ref[...],
                preferred_element_type=f32) + bq_ref[...]               # [TN, Dq] f32

    # ---- head-vectorized attention (query length == 1 per token) --------------
    # kv stays fused at 128 lanes the whole time:
    #   q_pad = [q | 1]  ->  qkv = q_pad * kv = [q*k | v]
    #   scores(t,s,h) = sum over head-h k-lanes of qkv          (tiny MXU matmul)
    #   x_full(t,:)   = sum_s attn(t,s,h) broadcast to head-h v-lanes, times kv
    kv3 = kv.reshape(TN, K, Dkv)                    # layout-preserving (K % 8 == 0)
    q_pad = jnp.concatenate([q, jnp.ones((TN, Dv), f32)], axis=-1)      # [TN, Dkv]
    qkv = q_pad[:, None, :] * kv3                                       # [TN, K, Dkv]

    scores = jnp.dot(qkv.reshape(TN * K, Dkv), segs_ref[...],
                     preferred_element_type=f32)                        # [TN*K, H]
    s3 = scores.reshape(TN, K, H)
    m = jnp.max(s3, axis=1, keepdims=True)                              # [TN, 1, H]
    e = jnp.exp(s3 - m)
    denom = jnp.sum(e, axis=1, keepdims=True)
    attn = e / denom                                                    # exact softmax

    attn_e = jnp.dot(attn.reshape(TN * K, H), sege_ref[...],
                     preferred_element_type=f32)                        # [TN*K, Dkv]
    # attn_e has zeros on the k lanes, so the k half of kv contributes nothing
    x_full = jnp.sum(attn_e.reshape(TN, K, Dkv) * kv3, axis=1)          # [TN, Dkv]

    # ---- output projection + residual (Wp padded to 128 rows, k-rows zero) ----
    x = jnp.dot(x_full.astype(bf16), wp_ref[...],
                preferred_element_type=f32) + bp_ref[...]               # [TN, D]
    x = q_in + x                                                        # short cut

    # ---- FFN(LayerNorm2(x)) + residual ----------------------------------------
    mu2 = jnp.mean(x, axis=-1, keepdims=True)
    var2 = jnp.mean((x - mu2) ** 2, axis=-1, keepdims=True)
    y = (x - mu2) * jax.lax.rsqrt(var2 + 1e-5) * g2_ref[...] + be2_ref[...]
    h1 = jnp.dot(y.astype(bf16), wf1_ref[...], preferred_element_type=f32) + bf1_ref[...]
    # TODO(synk): torch nn.GELU() default is the exact erf form; tanh approximation
    # used here because erf lowering is not guaranteed in Mosaic.
    c = 0.7978845608028654  # sqrt(2/pi)
    h1 = 0.5 * h1 * (1.0 + jnp.tanh(c * (h1 + 0.044715 * h1 * h1 * h1)))
    h2 = jnp.dot(h1.astype(bf16), wf2_ref[...], preferred_element_type=f32) + bf2_ref[...]

    x_out_ref[...] = x + h2


# ----------------------------------------------------------------------------
# Wrapper
# ----------------------------------------------------------------------------
def cross_attention_layer(query, key, value, memory, query_coord, params,
                          qk_dim, v_dim, num_heads, tn=None):
    """tn=None -> auto: 1024 on 128-MiB-VMEM chips (v5e/v6e), 512 on v7x;
    always clamped so the token grid has >= 2 steps (megacore) and divides N."""
    assert key is None and value is None, "only the key/value==None path is implemented"
    B, two, H1, W1 = query_coord.shape
    assert two == 2
    N = B * H1 * W1
    D = query.shape[-1]
    K = memory.shape[1]
    Dt = memory.shape[-1]
    assert D == qk_dim, "flow_or_pe='and' requires query_token_dim == qk_dim"
    assert qk_dim % num_heads == 0 and v_dim % num_heads == 0 and qk_dim % 4 == 0
    assert K % 8 == 0, "K must be a multiple of 8 for layout-preserving in-kernel reshapes"
    assert N % 8 == 0

    f32, bf16 = jnp.float32, jnp.bfloat16

    # ---- tile size / VMEM budget (per-generation, with a safe fallback) -------
    try:
        vmem_cap = int(pltpu.get_tpu_info().vmem_capacity_bytes)
    except Exception:
        vmem_cap = 0
    if tn is None:
        tn = 1024 if vmem_cap >= (100 << 20) else 512   # v5e/v6e: 1024, v7x: 512
    cap = min(tn, N // 2 if N >= 16 else N)             # >=2 grid steps when possible
    cap = max(cap, 8)
    tn, t = 8, 8
    while t <= cap:                                      # largest mult-of-8 divisor of N
        if N % t == 0:
            tn = t
        t += 8
    vmem_limit = None
    if tn > 512:                                         # only raise the limit if needed
        vmem_limit = (64 << 20) if vmem_cap >= (100 << 20) else (48 << 20)

    # ---- input prep (no standalone bf16 copy of memory; reshapes are free) ----
    q2 = query.reshape(N, D).astype(f32)
    mem2 = memory.reshape(N * K, Dt).astype(f32)
    # query_coord [B,2,H1,W1] -> [N,2]  (col 0 = channel 0 "x", col 1 = channel 1 "y")
    qc2 = query_coord.reshape(B, 2, H1 * W1).transpose(0, 2, 1).reshape(N, 2).astype(f32)

    # ---- trace-time constant prep ----------------------------------------------
    ax, ay, ph = _pe_tables(qk_dim)                      # (1, qk_dim) each
    seg_scores, seg_expand = _seg_matrices(qk_dim, v_dim, num_heads)

    #  - fold 1/sqrt(head_dim) into Wq/bq
    #  - fuse Wk|Wv into a single [Dt, qk_dim+v_dim] GEMM weight
    #  - pad Wp to [qk_dim+v_dim, D] (k rows zero) so attention never slices lanes
    scale = float(qk_dim // num_heads) ** -0.5
    wq = (params["wq"] * scale).astype(bf16)
    bq = (params["bq"] * scale).astype(f32)
    wkv = jnp.concatenate([params["wk"], params["wv"]], axis=1).astype(bf16)
    bkv = jnp.concatenate([params["bk"], params["bv"]], axis=1).astype(f32)
    wp_pad = jnp.concatenate([jnp.zeros((qk_dim, D), f32), params["wp"]], axis=0).astype(bf16)

    const_inputs = [
        ax, ay, ph,
        wq, bq, wkv, bkv, wp_pad, params["bp"].astype(f32),
        params["g1"].astype(f32), params["be1"].astype(f32),
        params["g2"].astype(f32), params["be2"].astype(f32),
        params["wf1"].astype(bf16), params["bf1"].astype(f32),
        params["wf2"].astype(bf16), params["bf2"].astype(f32),
        seg_scores, seg_expand,
    ]

    def tile2(shape):
        return pl.BlockSpec(shape, lambda i: (i, 0))

    def full(shape):
        return pl.BlockSpec(shape, lambda i: (0,) * len(shape))

    in_specs = ([tile2((tn, D)), tile2((tn, 2)), tile2((tn * K, Dt))]
                + [full(a.shape) for a in const_inputs])
    out_specs = [
        tile2((tn, D)),            # x (f32, tiny)
        tile2((tn * K, qk_dim)),   # k (bf16) written directly -- no post-kernel slice
        tile2((tn * K, v_dim)),    # v (bf16)
    ]
    out_shape = [
        jax.ShapeDtypeStruct((N, D), f32),
        jax.ShapeDtypeStruct((N * K, qk_dim), bf16),
        jax.ShapeDtypeStruct((N * K, v_dim), bf16),
    ]

    kernel = functools.partial(
        _cross_attn_kernel, num_heads=num_heads, tgt_len=K, qk_dim=qk_dim, v_dim=v_dim)

    x_out, k_out, v_out = pl.pallas_call(
        kernel,
        grid=(N // tn,),
        in_specs=in_specs,
        out_specs=out_specs,
        out_shape=out_shape,
        compiler_params=pltpu.CompilerParams(
            dimension_semantics=("parallel",),   # token axis shards across TensorCores
            vmem_limit_bytes=vmem_limit,
        ),
    )(q2, qc2, mem2, *const_inputs)

    # contiguous reshapes only (bitcast-level); k/v stay bf16 per perf review
    return (x_out.reshape(N, 1, D),
            k_out.reshape(N, K, qk_dim),
            v_out.reshape(N, K, v_dim))


# ----------------------------------------------------------------------------
# Deterministic parameter init (shapes per the module __init__)
# ----------------------------------------------------------------------------
def init_params(key, query_token_dim, tgt_token_dim, qk_dim, v_dim):
    ks = jax.random.split(key, 12)

    def lin(kw, kb, din, dout):
        w = jax.random.normal(kw, (din, dout), jnp.float32) * 0.02
        b = jax.random.normal(kb, (1, dout), jnp.float32) * 0.02
        return w, b

    wq, bq = lin(ks[0], ks[1], query_token_dim, qk_dim)
    wk, bk = lin(ks[2], ks[3], tgt_token_dim, qk_dim)
    wv, bv = lin(ks[4], ks[5], tgt_token_dim, v_dim)
    wp, bp = lin(ks[6], ks[7], v_dim, query_token_dim)
    wf1, bf1 = lin(ks[8], ks[9], query_token_dim, query_token_dim)
    wf2, bf2 = lin(ks[10], ks[11], query_token_dim, query_token_dim)

    return dict(
        wq=wq, bq=bq, wk=wk, bk=bk, wv=wv, bv=bv, wp=wp, bp=bp,
        g1=jnp.ones((1, query_token_dim), jnp.float32),
        be1=jnp.zeros((1, query_token_dim), jnp.float32),
        g2=jnp.ones((1, query_token_dim), jnp.float32),
        be2=jnp.zeros((1, query_token_dim), jnp.float32),
        wf1=wf1, bf1=bf1, wf2=wf2, bf2=bf2,
    )


if __name__ == "__main__":
    # small shapes consistent with the module's forward
    B, H1, W1 = 2, 4, 4                 # -> N = B*H1*W1 = 32 query tokens
    K = 8                               # memory (cost) tokens per query token
    qk_dim = v_dim = 64
    query_token_dim = tgt_token_dim = 64
    num_heads = 8                       # head_dim = 8

    root = jax.random.PRNGKey(0)
    kq, km, kc, kp = jax.random.split(root, 4)

    N = B * H1 * W1
    query = jax.random.normal(kq, (N, 1, query_token_dim), jnp.float32)
    memory = jax.random.normal(km, (N, K, tgt_token_dim), jnp.float32)
    query_coord = jax.random.uniform(kc, (B, 2, H1, W1), jnp.float32, 0.0, float(W1))

    params = init_params(kp, query_token_dim, tgt_token_dim, qk_dim, v_dim)

    x, k_out, v_out = cross_attention_layer(
        query, None, None, memory, query_coord, params,
        qk_dim=qk_dim, v_dim=v_dim, num_heads=num_heads,
    )
    jax.block_until_ready((x, k_out, v_out))
    assert x.shape == (N, 1, query_token_dim)
    assert k_out.shape == (N, K, qk_dim)
    assert v_out.shape == (N, K, v_dim)
    assert bool(jnp.all(jnp.isfinite(x)))
    assert bool(jnp.all(jnp.isfinite(k_out.astype(jnp.float32))))
    assert bool(jnp.all(jnp.isfinite(v_out.astype(jnp.float32))))
    print("KERNEL_OK")
</pallas_src>

<mosaic_0001>
module attributes {stable_mosaic.version = 11 : i64} {
  func.func @_cross_attn_kernel(%arg0: i32, %arg1: memref<16x64xf32, #tpu.memory_space<vmem>>, %arg2: memref<16x2xf32, #tpu.memory_space<vmem>>, %arg3: memref<128x64xf32, #tpu.memory_space<vmem>>, %arg4: memref<1x64xf32, #tpu.memory_space<vmem>>, %arg5: memref<1x64xf32, #tpu.memory_space<vmem>>, %arg6: memref<1x64xf32, #tpu.memory_space<vmem>>, %arg7: memref<64x64xbf16, #tpu.memory_space<vmem>>, %arg8: memref<1x64xf32, #tpu.memory_space<vmem>>, %arg9: memref<64x128xbf16, #tpu.memory_space<vmem>>, %arg10: memref<1x128xf32, #tpu.memory_space<vmem>>, %arg11: memref<128x64xbf16, #tpu.memory_space<vmem>>, %arg12: memref<1x64xf32, #tpu.memory_space<vmem>>, %arg13: memref<1x64xf32, #tpu.memory_space<vmem>>, %arg14: memref<1x64xf32, #tpu.memory_space<vmem>>, %arg15: memref<1x64xf32, #tpu.memory_space<vmem>>, %arg16: memref<1x64xf32, #tpu.memory_space<vmem>>, %arg17: memref<64x64xbf16, #tpu.memory_space<vmem>>, %arg18: memref<1x64xf32, #tpu.memory_space<vmem>>, %arg19: memref<64x64xbf16, #tpu.memory_space<vmem>>, %arg20: memref<1x64xf32, #tpu.memory_space<vmem>>, %arg21: memref<128x8xf32, #tpu.memory_space<vmem>>, %arg22: memref<8x128xf32, #tpu.memory_space<vmem>>, %arg23: memref<16x64xf32, #tpu.memory_space<vmem>>, %arg24: memref<128x64xbf16, #tpu.memory_space<vmem>>, %arg25: memref<128x64xbf16, #tpu.memory_space<vmem>>) attributes {dimension_semantics = [#tpu.dimension_semantics<parallel>], iteration_bounds = array<i64: 2>, scalar_prefetch = 0 : i64, scratch_operands = 0 : i64, tpu.core_type = #tpu.core_type<tc>, window_params = [{transform_indices = @transform_0, window_bounds = array<i64: 16, 64>}, {transform_indices = @transform_1, window_bounds = array<i64: 16, 2>}, {transform_indices = @transform_2, window_bounds = array<i64: 128, 64>}, {pipeline_mode = #tpu.pipeline_mode<synchronous>, transform_indices = @transform_3, window_bounds = array<i64: 1, 64>}, {pipeline_mode = #tpu.pipeline_mode<synchronous>, transform_indices = @transform_4, window_bounds = array<i64: 1, 64>}, {pipeline_mode = #tpu.pipeline_mode<synchronous>, transform_indices = @transform_5, window_bounds = array<i64: 1, 64>}, {pipeline_mode = #tpu.pipeline_mode<synchronous>, transform_indices = @transform_6, window_bounds = array<i64: 64, 64>}, {pipeline_mode = #tpu.pipeline_mode<synchronous>, transform_indices = @transform_7, window_bounds = array<i64: 1, 64>}, {pipeline_mode = #tpu.pipeline_mode<synchronous>, transform_indices = @transform_8, window_bounds = array<i64: 64, 128>}, {pipeline_mode = #tpu.pipeline_mode<synchronous>, transform_indices = @transform_9, window_bounds = array<i64: 1, 128>}, {pipeline_mode = #tpu.pipeline_mode<synchronous>, transform_indices = @transform_10, window_bounds = array<i64: 128, 64>}, {pipeline_mode = #tpu.pipeline_mode<synchronous>, transform_indices = @transform_11, window_bounds = array<i64: 1, 64>}, {pipeline_mode = #tpu.pipeline_mode<synchronous>, transform_indices = @transform_12, window_bounds = array<i64: 1, 64>}, {pipeline_mode = #tpu.pipeline_mode<synchronous>, transform_indices = @transform_13, window_bounds = array<i64: 1, 64>}, {pipeline_mode = #tpu.pipeline_mode<synchronous>, transform_indices = @transform_14, window_bounds = array<i64: 1, 64>}, {pipeline_mode = #tpu.pipeline_mode<synchronous>, transform_indices = @transform_15, window_bounds = array<i64: 1, 64>}, {pipeline_mode = #tpu.pipeline_mode<synchronous>, transform_indices = @transform_16, window_bounds = array<i64: 64, 64>}, {pipeline_mode = #tpu.pipeline_mode<synchronous>, transform_indices = @transform_17, window_bounds = array<i64: 1, 64>}, {pipeline_mode = #tpu.pipeline_mode<synchronous>, transform_indices = @transform_18, window_bounds = array<i64: 64, 64>}, {pipeline_mode = #tpu.pipeline_mode<synchronous>, transform_indices = @transform_19, window_bounds = array<i64: 1, 64>}, {pipeline_mode = #tpu.pipeline_mode<synchronous>, transform_indices = @transform_20, window_bounds = array<i64: 128, 8>}, {pipeline_mode = #tpu.pipeline_mode<synchronous>, transform_indices = @transform_21, window_bounds = array<i64: 8, 128>}, {transform_indices = @transform_22, window_bounds = array<i64: 16, 64>}, {transform_indices = @transform_23, window_bounds = array<i64: 128, 64>}, {transform_indices = @transform_24, window_bounds = array<i64: 128, 64>}]} {
    %c0 = arith.constant 0 : index
    %c0_0 = arith.constant 0 : index
    %0 = vector.load %arg3[%c0, %c0_0] : memref<128x64xf32, #tpu.memory_space<vmem>>, vector<128x64xf32>
    %1 = arith.truncf %0 : vector<128x64xf32> to vector<128x64xbf16>
    %c0_1 = arith.constant 0 : index
    %c0_2 = arith.constant 0 : index
    %2 = vector.load %arg9[%c0_1, %c0_2] : memref<64x128xbf16, #tpu.memory_space<vmem>>, vector<64x128xbf16>
    %cst = arith.constant dense<0.000000e+00> : vector<128x128xf32>
    %3 = tpu.matmul %1, %2, %cst {dimension_numbers = #tpu.dot_dimension_numbers<[1], [0], [0], [1], [0, 0, 1, 1], [], []>} : vector<128x64xbf16>, vector<64x128xbf16>, vector<128x128xf32> -> vector<128x128xf32>
    %c0_3 = arith.constant 0 : index
    %c0_4 = arith.constant 0 : index
    %4 = vector.load %arg10[%c0_3, %c0_4] : memref<1x128xf32, #tpu.memory_space<vmem>>, vector<1x128xf32>
    %5 = vector.broadcast %4 : vector<1x128xf32> to vector<128x128xf32>
    %6 = arith.addf %3, %5 : vector<128x128xf32>
    %7 = vector.extract_strided_slice %6 {offsets = [0, 0], sizes = [128, 64], strides = [1, 1]} : vector<128x128xf32> to vector<128x64xf32>
    %8 = arith.truncf %7 : vector<128x64xf32> to vector<128x64xbf16>
    %c0_5 = arith.constant 0 : index
    %c0_6 = arith.constant 0 : index
    %9 = vector.load %arg24[%c0_5, %c0_6] : memref<128x64xbf16, #tpu.memory_space<vmem>>, vector<128x64xbf16>
    tpu.vector_store %arg24[%c0_5, %c0_6], %8 {strides = array<i32>} : memref<128x64xbf16, #tpu.memory_space<vmem>>, vector<128x64xbf16>,
    %10 = vector.extract_strided_slice %6 {offsets = [0, 64], sizes = [128, 64], strides = [1, 1]} : vector<128x128xf32> to vector<128x64xf32>
    %11 = arith.truncf %10 : vector<128x64xf32> to vector<128x64xbf16>
    %c0_7 = arith.constant 0 : index
    %c0_8 = arith.constant 0 : index
    %12 = vector.load %arg25[%c0_7, %c0_8] : memref<128x64xbf16, #tpu.memory_space<vmem>>, vector<128x64xbf16>
    tpu.vector_store %arg25[%c0_7, %c0_8], %11 {strides = array<i32>} : memref<128x64xbf16, #tpu.memory_space<vmem>>, vector<128x64xbf16>,
    %c0_9 = arith.constant 0 : index
    %c0_10 = arith.constant 0 : index
    %13 = vector.load %arg1[%c0_9, %c0_10] : memref<16x64xf32, #tpu.memory_space<vmem>>, vector<16x64xf32>
    %cst_11 = arith.constant dense<0.000000e+00> : vector<16xf32>
    %14 = vector.multi_reduction <add>, %13, %cst_11 [1] : vector<16x64xf32> to vector<16xf32>
    %15 = vector.shape_cast %14 : vector<16xf32> to vector<16x1xf32>
    %cst_12 = arith.constant 6.400000e+01 : f32
    %16 = vector.broadcast %cst_12 : f32 to vector<16x1xf32>
    %17 = arith.divf %15, %16 : vector<16x1xf32>
    %18 = vector.broadcast %17 : vector<16x1xf32> to vector<16x64xf32>
    %19 = arith.subf %13, %18 : vector<16x64xf32>
    %20 = arith.mulf %19, %19 : vector<16x64xf32>
    %cst_13 = arith.constant dense<0.000000e+00> : vector<16xf32>
    %21 = vector.multi_reduction <add>, %20, %cst_13 [1] : vector<16x64xf32> to vector<16xf32>
    %22 = vector.shape_cast %21 : vector<16xf32> to vector<16x1xf32>
    %cst_14 = arith.constant 6.400000e+01 : f32
    %23 = vector.broadcast %cst_14 : f32 to vector<16x1xf32>
    %24 = arith.divf %22, %23 : vector<16x1xf32>
    %25 = vector.broadcast %17 : vector<16x1xf32> to vector<16x64xf32>
    %26 = arith.subf %13, %25 : vector<16x64xf32>
    %cst_15 = arith.constant 9.99999974E-6 : f32
    %27 = vector.broadcast %cst_15 : f32 to vector<16x1xf32>
    %28 = arith.addf %24, %27 : vector<16x1xf32>
    %29 = math.rsqrt %28 : vector<16x1xf32>
    %30 = vector.broadcast %29 : vector<16x1xf32> to vector<16x64xf32>
    %31 = arith.mulf %26, %30 : vector<16x64xf32>
    %c0_16 = arith.constant 0 : index
    %c0_17 = arith.constant 0 : index
    %32 = vector.load %arg13[%c0_16, %c0_17] : memref<1x64xf32, #tpu.memory_space<vmem>>, vector<1x64xf32>
    %33 = vector.broadcast %32 : vector<1x64xf32> to vector<16x64xf32>
    %34 = arith.mulf %31, %33 : vector<16x64xf32>
    %c0_18 = arith.constant 0 : index
    %c0_19 = arith.constant 0 : index
    %35 = vector.load %arg14[%c0_18, %c0_19] : memref<1x64xf32, #tpu.memory_space<vmem>>, vector<1x64xf32>
    %36 = vector.broadcast %35 : vector<1x64xf32> to vector<16x64xf32>
    %37 = arith.addf %34, %36 : vector<16x64xf32>
    %c0_20 = arith.constant 0 : index
    %c0_21 = arith.constant 0 : index
    %38 = vector.load %arg2[%c0_20, %c0_21] : memref<16x2xf32, #tpu.memory_space<vmem>>, vector<16x2xf32>
    %39 = vector.extract_strided_slice %38 {offsets = [0, 0], sizes = [16, 1], strides = [1, 1]} : vector<16x2xf32> to vector<16x1xf32>
    %c0_22 = arith.constant 0 : index
    %c0_23 = arith.constant 0 : index
    %40 = vector.load %arg4[%c0_22, %c0_23] : memref<1x64xf32, #tpu.memory_space<vmem>>, vector<1x64xf32>
    %41 = vector.broadcast %39 : vector<16x1xf32> to vector<16x64xf32>
    %42 = vector.broadcast %40 : vector<1x64xf32> to vector<16x64xf32>
    %43 = arith.mulf %41, %42 : vector<16x64xf32>
    %44 = vector.extract_strided_slice %38 {offsets = [0, 1], sizes = [16, 1], strides = [1, 1]} : vector<16x2xf32> to vector<16x1xf32>
    %c0_24 = arith.constant 0 : index
    %c0_25 = arith.constant 0 : index
    %45 = vector.load %arg5[%c0_24, %c0_25] : memref<1x64xf32, #tpu.memory_space<vmem>>, vector<1x64xf32>
    %46 = vector.broadcast %44 : vector<16x1xf32> to vector<16x64xf32>
    %47 = vector.broadcast %45 : vector<1x64xf32> to vector<16x64xf32>
    %48 = arith.mulf %46, %47 : vector<16x64xf32>
    %49 = arith.addf %43, %48 : vector<16x64xf32>
    %c0_26 = arith.constant 0 : index
    %c0_27 = arith.constant 0 : index
    %50 = vector.load %arg6[%c0_26, %c0_27] : memref<1x64xf32, #tpu.memory_space<vmem>>, vector<1x64xf32>
    %51 = vector.broadcast %50 : vector<1x64xf32> to vector<16x64xf32>
    %52 = arith.addf %49, %51 : vector<16x64xf32>
    %53 = math.sin %52 : vector<16x64xf32>
    %54 = arith.addf %37, %53 : vector<16x64xf32>
    %55 = arith.truncf %54 : vector<16x64xf32> to vector<16x64xbf16>
    %c0_28 = arith.constant 0 : index
    %c0_29 = arith.constant 0 : index
    %56 = vector.load %arg7[%c0_28, %c0_29] : memref<64x64xbf16, #tpu.memory_space<vmem>>, vector<64x64xbf16>
    %cst_30 = arith.constant dense<0.000000e+00> : vector<16x64xf32>
    %57 = tpu.matmul %55, %56, %cst_30 {dimension_numbers = #tpu.dot_dimension_numbers<[1], [0], [0], [1], [0, 0, 1, 1], [], []>} : vector<16x64xbf16>, vector<64x64xbf16>, vector<16x64xf32> -> vector<16x64xf32>
    %c0_31 = arith.constant 0 : index
    %c0_32 = arith.constant 0 : index
    %58 = vector.load %arg8[%c0_31, %c0_32] : memref<1x64xf32, #tpu.memory_space<vmem>>, vector<1x64xf32>
    %59 = vector.broadcast %58 : vector<1x64xf32> to vector<16x64xf32>
    %60 = arith.addf %57, %59 : vector<16x64xf32>
    %61 = vector.shape_cast %6 : vector<128x128xf32> to vector<16x8x128xf32>
    %cst_33 = arith.constant 1.000000e+00 : f32
    %62 = vector.broadcast %cst_33 : f32 to vector<16x64xf32>
    %63 = tpu.concatenate %60, %62 in 1 : vector<16x64xf32>, vector<16x64xf32> -> vector<16x128xf32>
    %64 = vector.shape_cast %63 : vector<16x128xf32> to vector<16x1x128xf32>
    %65 = vector.broadcast %64 : vector<16x1x128xf32> to vector<16x8x128xf32>
    %66 = arith.mulf %65, %61 : vector<16x8x128xf32>
    %67 = vector.shape_cast %66 : vector<16x8x128xf32> to vector<128x128xf32>
    %c0_34 = arith.constant 0 : index
    %c0_35 = arith.constant 0 : index
    %68 = vector.load %arg21[%c0_34, %c0_35] : memref<128x8xf32, #tpu.memory_space<vmem>>, vector<128x8xf32>
    %cst_36 = arith.constant dense<0.000000e+00> : vector<128x8xf32>
    %69 = tpu.matmul %67, %68, %cst_36 {dimension_numbers = #tpu.dot_dimension_numbers<[1], [0], [0], [1], [0, 0, 1, 1], [], []>} : vector<128x128xf32>, vector<128x8xf32>, vector<128x8xf32> -> vector<128x8xf32>
    %70 = vector.shape_cast %69 : vector<128x8xf32> to vector<16x8x8xf32>
    %cst_37 = arith.constant dense<0xFF800000> : vector<16x8xf32>
    %71 = vector.multi_reduction <maximumf>, %70, %cst_37 [1] : vector<16x8x8xf32> to vector<16x8xf32>
    %72 = vector.shape_cast %71 : vector<16x8xf32> to vector<16x1x8xf32>
    %73 = vector.broadcast %72 : vector<16x1x8xf32> to vector<16x8x8xf32>
    %74 = arith.subf %70, %73 : vector<16x8x8xf32>
    %75 = math.exp %74 : vector<16x8x8xf32>
    %cst_38 = arith.constant dense<0.000000e+00> : vector<16x8xf32>
    %76 = vector.multi_reduction <add>, %75, %cst_38 [1] : vector<16x8x8xf32> to vector<16x8xf32>
    %77 = vector.shape_cast %76 : vector<16x8xf32> to vector<16x1x8xf32>
    %78 = vector.broadcast %77 : vector<16x1x8xf32> to vector<16x8x8xf32>
    %79 = arith.divf %75, %78 : vector<16x8x8xf32>
    %80 = vector.shape_cast %79 : vector<16x8x8xf32> to vector<128x8xf32>
    %c0_39 = arith.constant 0 : index
    %c0_40 = arith.constant 0 : index
    %81 = vector.load %arg22[%c0_39, %c0_40] : memref<8x128xf32, #tpu.memory_space<vmem>>, vector<8x128xf32>
    %cst_41 = arith.constant dense<0.000000e+00> : vector<128x128xf32>
    %82 = tpu.matmul %80, %81, %cst_41 {dimension_numbers = #tpu.dot_dimension_numbers<[1], [0], [0], [1], [0, 0, 1, 1], [], []>} : vector<128x8xf32>, vector<8x128xf32>, vector<128x128xf32> -> vector<128x128xf32>
    %83 = vector.shape_cast %82 : vector<128x128xf32> to vector<16x8x128xf32>
    %84 = arith.mulf %83, %61 : vector<16x8x128xf32>
    %cst_42 = arith.constant dense<0.000000e+00> : vector<16x128xf32>
    %85 = vector.multi_reduction <add>, %84, %cst_42 [1] : vector<16x8x128xf32> to vector<16x128xf32>
    %86 = arith.truncf %85 : vector<16x128xf32> to vector<16x128xbf16>
    %c0_43 = arith.constant 0 : index
    %c0_44 = arith.constant 0 : index
    %87 = vector.load %arg11[%c0_43, %c0_44] : memref<128x64xbf16, #tpu.memory_space<vmem>>, vector<128x64xbf16>
    %cst_45 = arith.constant dense<0.000000e+00> : vector<16x64xf32>
    %88 = tpu.matmul %86, %87, %cst_45 {dimension_numbers = #tpu.dot_dimension_numbers<[1], [0], [0], [1], [0, 0, 1, 1], [], []>} : vector<16x128xbf16>, vector<128x64xbf16>, vector<16x64xf32> -> vector<16x64xf32>
    %c0_46 = arith.constant 0 : index
    %c0_47 = arith.constant 0 : index
    %89 = vector.load %arg12[%c0_46, %c0_47] : memref<1x64xf32, #tpu.memory_space<vmem>>, vector<1x64xf32>
    %90 = vector.broadcast %89 : vector<1x64xf32> to vector<16x64xf32>
    %91 = arith.addf %88, %90 : vector<16x64xf32>
    %92 = arith.addf %13, %91 : vector<16x64xf32>
    %cst_48 = arith.constant dense<0.000000e+00> : vector<16xf32>
    %93 = vector.multi_reduction <add>, %92, %cst_48 [1] : vector<16x64xf32> to vector<16xf32>
    %94 = vector.shape_cast %93 : vector<16xf32> to vector<16x1xf32>
    %cst_49 = arith.constant 6.400000e+01 : f32
    %95 = vector.broadcast %cst_49 : f32 to vector<16x1xf32>
    %96 = arith.divf %94, %95 : vector<16x1xf32>
    %97 = vector.broadcast %96 : vector<16x1xf32> to vector<16x64xf32>
    %98 = arith.subf %92, %97 : vector<16x64xf32>
    %99 = arith.mulf %98, %98 : vector<16x64xf32>
    %cst_50 = arith.constant dense<0.000000e+00> : vector<16xf32>
    %100 = vector.multi_reduction <add>, %99, %cst_50 [1] : vector<16x64xf32> to vector<16xf32>
    %101 = vector.shape_cast %100 : vector<16xf32> to vector<16x1xf32>
    %cst_51 = arith.constant 6.400000e+01 : f32
    %102 = vector.broadcast %cst_51 : f32 to vector<16x1xf32>
    %103 = arith.divf %101, %102 : vector<16x1xf32>
    %104 = vector.broadcast %96 : vector<16x1xf32> to vector<16x64xf32>
    %105 = arith.subf %92, %104 : vector<16x64xf32>
    %cst_52 = arith.constant 9.99999974E-6 : f32
    %106 = vector.broadcast %cst_52 : f32 to vector<16x1xf32>
    %107 = arith.addf %103, %106 : vector<16x1xf32>
    %108 = math.rsqrt %107 : vector<16x1xf32>
    %109 = vector.broadcast %108 : vector<16x1xf32> to vector<16x64xf32>
    %110 = arith.mulf %105, %109 : vector<16x64xf32>
    %c0_53 = arith.constant 0 : index
    %c0_54 = arith.constant 0 : index
    %111 = vector.load %arg15[%c0_53, %c0_54] : memref<1x64xf32, #tpu.memory_space<vmem>>, vector<1x64xf32>
    %112 = vector.broadcast %111 : vector<1x64xf32> to vector<16x64xf32>
    %113 = arith.mulf %110, %112 : vector<16x64xf32>
    %c0_55 = arith.constant 0 : index
    %c0_56 = arith.constant 0 : index
    %114 = vector.load %arg16[%c0_55, %c0_56] : memref<1x64xf32, #tpu.memory_space<vmem>>, vector<1x64xf32>
    %115 = vector.broadcast %114 : vector<1x64xf32> to vector<16x64xf32>
    %116 = arith.addf %113, %115 : vector<16x64xf32>
    %117 = arith.truncf %116 : vector<16x64xf32> to vector<16x64xbf16>
    %c0_57 = arith.constant 0 : index
    %c0_58 = arith.constant 0 : index
    %118 = vector.load %arg17[%c0_57, %c0_58] : memref<64x64xbf16, #tpu.memory_space<vmem>>, vector<64x64xbf16>
    %cst_59 = arith.constant dense<0.000000e+00> : vector<16x64xf32>
    %119 = tpu.matmul %117, %118, %cst_59 {dimension_numbers = #tpu.dot_dimension_numbers<[1], [0], [0], [1], [0, 0, 1, 1], [], []>} : vector<16x64xbf16>, vector<64x64xbf16>, vector<16x64xf32> -> vector<16x64xf32>
    %c0_60 = arith.constant 0 : index
    %c0_61 = arith.constant 0 : index
    %120 = vector.load %arg18[%c0_60, %c0_61] : memref<1x64xf32, #tpu.memory_space<vmem>>, vector<1x64xf32>
    %121 = vector.broadcast %120 : vector<1x64xf32> to vector<16x64xf32>
    %122 = arith.addf %119, %121 : vector<16x64xf32>
    %cst_62 = arith.constant 5.000000e-01 : f32
    %123 = vector.broadcast %cst_62 : f32 to vector<16x64xf32>
    %124 = arith.mulf %123, %122 : vector<16x64xf32>
    %cst_63 = arith.constant 4.471500e-02 : f32
    %125 = vector.broadcast %cst_63 : f32 to vector<16x64xf32>
    %126 = arith.mulf %125, %122 : vector<16x64xf32>
    %127 = arith.mulf %126, %122 : vector<16x64xf32>
    %128 = arith.mulf %127, %122 : vector<16x64xf32>
    %129 = arith.addf %122, %128 : vector<16x64xf32>
    %cst_64 = arith.constant 0.797884583 : f32
    %130 = vector.broadcast %cst_64 : f32 to vector<16x64xf32>
    %131 = arith.mulf %130, %129 : vector<16x64xf32>
    %132 = math.tanh %131 : vector<16x64xf32>
    %cst_65 = arith.constant 1.000000e+00 : f32
    %133 = vector.broadcast %cst_65 : f32 to vector<16x64xf32>
    %134 = arith.addf %133, %132 : vector<16x64xf32>
    %135 = arith.mulf %124, %134 : vector<16x64xf32>
    %136 = arith.truncf %135 : vector<16x64xf32> to vector<16x64xbf16>
    %c0_66 = arith.constant 0 : index
    %c0_67 = arith.constant 0 : index
    %137 = vector.load %arg19[%c0_66, %c0_67] : memref<64x64xbf16, #tpu.memory_space<vmem>>, vector<64x64xbf16>
    %cst_68 = arith.constant dense<0.000000e+00> : vector<16x64xf32>
    %138 = tpu.matmul %136, %137, %cst_68 {dimension_numbers = #tpu.dot_dimension_numbers<[1], [0], [0], [1], [0, 0, 1, 1], [], []>} : vector<16x64xbf16>, vector<64x64xbf16>, vector<16x64xf32> -> vector<16x64xf32>
    %c0_69 = arith.constant 0 : index
    %c0_70 = arith.constant 0 : index
    %139 = vector.load %arg20[%c0_69, %c0_70] : memref<1x64xf32, #tpu.memory_space<vmem>>, vector<1x64xf32>
    %140 = vector.broadcast %139 : vector<1x64xf32> to vector<16x64xf32>
    %141 = arith.addf %138, %140 : vector<16x64xf32>
    %142 = arith.addf %92, %141 : vector<16x64xf32>
    %c0_71 = arith.constant 0 : index
    %c0_72 = arith.constant 0 : index
    %143 = vector.load %arg23[%c0_71, %c0_72] : memref<16x64xf32, #tpu.memory_space<vmem>>, vector<16x64xf32>
    tpu.vector_store %arg23[%c0_71, %c0_72], %142 {strides = array<i32>} : memref<16x64xf32, #tpu.memory_space<vmem>>, vector<16x64xf32>,
    return
  }
  func.func @transform_0(%arg0: i32) -> (i32, i32) {
    %c0_i32 = arith.constant 0 : i32
    %c0_i32_0 = arith.constant 0 : i32
    return %arg0, %c0_i32 : i32, i32
  }
  func.func @transform_1(%arg0: i32) -> (i32, i32) {
    %c0_i32 = arith.constant 0 : i32
    %c0_i32_0 = arith.constant 0 : i32
    return %arg0, %c0_i32 : i32, i32
  }
  func.func @transform_2(%arg0: i32) -> (i32, i32) {
    %c0_i32 = arith.constant 0 : i32
    %c0_i32_0 = arith.constant 0 : i32
    return %arg0, %c0_i32 : i32, i32
  }
  func.func @transform_3(%arg0: i32) -> (i32, i32) {
    %c0_i32 = arith.constant 0 : i32
    %c0_i32_0 = arith.constant 0 : i32
    %c0_i32_1 = arith.constant 0 : i32
    return %c0_i32, %c0_i32_0 : i32, i32
  }
  func.func @transform_4(%arg0: i32) -> (i32, i32) {
    %c0_i32 = arith.constant 0 : i32
    %c0_i32_0 = arith.constant 0 : i32
    %c0_i32_1 = arith.constant 0 : i32
    return %c0_i32, %c0_i32_0 : i32, i32
  }
  func.func @transform_5(%arg0: i32) -> (i32, i32) {
    %c0_i32 = arith.constant 0 : i32
    %c0_i32_0 = arith.constant 0 : i32
    %c0_i32_1 = arith.constant 0 : i32
    return %c0_i32, %c0_i32_0 : i32, i32
  }
  func.func @transform_6(%arg0: i32) -> (i32, i32) {
    %c0_i32 = arith.constant 0 : i32
    %c0_i32_0 = arith.constant 0 : i32
    %c0_i32_1 = arith.constant 0 : i32
    return %c0_i32, %c0_i32_0 : i32, i32
  }
  func.func @transform_7(%arg0: i32) -> (i32, i32) {
    %c0_i32 = arith.constant 0 : i32
    %c0_i32_0 = arith.constant 0 : i32
    %c0_i32_1 = arith.constant 0 : i32
    return %c0_i32, %c0_i32_0 : i32, i32
  }
  func.func @transform_8(%arg0: i32) -> (i32, i32) {
    %c0_i32 = arith.constant 0 : i32
    %c0_i32_0 = arith.constant 0 : i32
    %c0_i32_1 = arith.constant 0 : i32
    return %c0_i32, %c0_i32_0 : i32, i32
  }
  func.func @transform_9(%arg0: i32) -> (i32, i32) {
    %c0_i32 = arith.constant 0 : i32
    %c0_i32_0 = arith.constant 0 : i32
    %c0_i32_1 = arith.constant 0 : i32
    return %c0_i32, %c0_i32_0 : i32, i32
  }
  func.func @transform_10(%arg0: i32) -> (i32, i32) {
    %c0_i32 = arith.constant 0 : i32
    %c0_i32_0 = arith.constant 0 : i32
    %c0_i32_1 = arith.constant 0 : i32
    return %c0_i32, %c0_i32_0 : i32, i32
  }
  func.func @transform_11(%arg0: i32) -> (i32, i32) {
    %c0_i32 = arith.constant 0 : i32
    %c0_i32_0 = arith.constant 0 : i32
    %c0_i32_1 = arith.constant 0 : i32
    return %c0_i32, %c0_i32_0 : i32, i32
  }
  func.func @transform_12(%arg0: i32) -> (i32, i32) {
    %c0_i32 = arith.constant 0 : i32
    %c0_i32_0 = arith.constant 0 : i32
    %c0_i32_1 = arith.constant 0 : i32
    return %c0_i32, %c0_i32_0 : i32, i32
  }
  func.func @transform_13(%arg0: i32) -> (i32, i32) {
    %c0_i32 = arith.constant 0 : i32
    %c0_i32_0 = arith.constant 0 : i32
    %c0_i32_1 = arith.constant 0 : i32
    return %c0_i32, %c0_i32_0 : i32, i32
  }
  func.func @transform_14(%arg0: i32) -> (i32, i32) {
    %c0_i32 = arith.constant 0 : i32
    %c0_i32_0 = arith.constant 0 : i32
    %c0_i32_1 = arith.constant 0 : i32
    return %c0_i32, %c0_i32_0 : i32, i32
  }
  func.func @transform_15(%arg0: i32) -> (i32, i32) {
    %c0_i32 = arith.constant 0 : i32
    %c0_i32_0 = arith.constant 0 : i32
    %c0_i32_1 = arith.constant 0 : i32
    return %c0_i32, %c0_i32_0 : i32, i32
  }
  func.func @transform_16(%arg0: i32) -> (i32, i32) {
    %c0_i32 = arith.constant 0 : i32
    %c0_i32_0 = arith.constant 0 : i32
    %c0_i32_1 = arith.constant 0 : i32
    return %c0_i32, %c0_i32_0 : i32, i32
  }
  func.func @transform_17(%arg0: i32) -> (i32, i32) {
    %c0_i32 = arith.constant 0 : i32
    %c0_i32_0 = arith.constant 0 : i32
    %c0_i32_1 = arith.constant 0 : i32
    return %c0_i32, %c0_i32_0 : i32, i32
  }
  func.func @transform_18(%arg0: i32) -> (i32, i32) {
    %c0_i32 = arith.constant 0 : i32
    %c0_i32_0 = arith.constant 0 : i32
    %c0_i32_1 = arith.constant 0 : i32
    return %c0_i32, %c0_i32_0 : i32, i32
  }
  func.func @transform_19(%arg0: i32) -> (i32, i32) {
    %c0_i32 = arith.constant 0 : i32
    %c0_i32_0 = arith.constant 0 : i32
    %c0_i32_1 = arith.constant 0 : i32
    return %c0_i32, %c0_i32_0 : i32, i32
  }
  func.func @transform_20(%arg0: i32) -> (i32, i32) {
    %c0_i32 = arith.constant 0 : i32
    %c0_i32_0 = arith.constant 0 : i32
    %c0_i32_1 = arith.constant 0 : i32
    return %c0_i32, %c0_i32_0 : i32, i32
  }
  func.func @transform_21(%arg0: i32) -> (i32, i32) {
    %c0_i32 = arith.constant 0 : i32
    %c0_i32_0 = arith.constant 0 : i32
    %c0_i32_1 = arith.constant 0 : i32
    return %c0_i32, %c0_i32_0 : i32, i32
  }
  func.func @transform_22(%arg0: i32) -> (i32, i32) {
    %c0_i32 = arith.constant 0 : i32
    %c0_i32_0 = arith.constant 0 : i32
    return %arg0, %c0_i32 : i32, i32
  }
  func.func @transform_23(%arg0: i32) -> (i32, i32) {
    %c0_i32 = arith.constant 0 : i32
    %c0_i32_0 = arith.constant 0 : i32
    return %arg0, %c0_i32 : i32, i32
  }
  func.func @transform_24(%arg0: i32) -> (i32, i32) {
    %c0_i32 = arith.constant 0 : i32
    %c0_i32_0 = arith.constant 0 : i32
    return %arg0, %c0_i32 : i32, i32
  }
}

</mosaic_0001>

<bundles_post_ra>
// kernel: tpu_custom_call.1
= control target key start
LH: loop header
LB: loop body
LE: loop exit
PB: predicated region body
PF: predicated region fallthrough
CT: control target
= control target key end

     0   :  { %s4518_s0 = inlined_call_operand.vmem [shape: f32[32,64], index: 0, kind: input, shape index: {}]   ;;  %s4519_s1 = inlined_call_operand.vmem [shape: f32[32,2], index: 1, kind: input, shape index: {}]   ;;  %s4520_s2 = inlined_call_operand.vmem [shape: f32[256,64], index: 2, kind: input, shape index: {}]   ;;  %s4521_s3 = inlined_call_operand.vmem [shape: f32[1,64], index: 3, kind: input, shape index: {}]   ;;  %s4522_s4 = inlined_call_operand.vmem [shape: f32[1,64], index: 4, kind: input, shape index: {}]   ;;  %s4523_s5 = inlined_call_operand.vmem [shape: f32[1,64], index: 5, kind: input, shape index: {}]   ;;  %s4524_s6 = inlined_call_operand.vmem [shape: bf16[64,64], index: 6, kind: input, shape index: {}]   ;;  %s4525_s7 = inlined_call_operand.vmem [shape: f32[1,64], index: 7, kind: input, shape index: {}]   ;;  %s4526_s8 = inlined_call_operand.vmem [shape: bf16[64,128], index: 8, kind: input, shape index: {}]   ;;  %s4527_s9 = inlined_call_operand.vmem [shape: f32[1,128], index: 9, kind: input, shape index: {}]   ;;  %s4528_s10 = inlined_call_operand.vmem [shape: bf16[128,64], index: 10, kind: input, shape index: {}]   ;;  %s4529_s11 = inlined_call_operand.vmem [shape: f32[1,64], index: 11, kind: input, shape index: {}]   ;;  %s4530_s12 = inlined_call_operand.vmem [shape: f32[1,64], index: 12, kind: input, shape index: {}]   ;;  %s4531_s13 = inlined_call_operand.vmem [shape: f32[1,64], index: 13, kind: input, shape index: {}]   ;;  %s4532_s14 = inlined_call_operand.vmem [shape: f32[1,64], index: 14, kind: input, shape index: {}]   ;;  %s4533_s15 = inlined_call_operand.vmem [shape: f32[1,64], index: 15, kind: input, shape index: {}]   ;;  %s4534_s16 = inlined_call_operand.vmem [shape: bf16[64,64], index: 16, kind: input, shape index: {}]   ;;  %s4535_s17 = inlined_call_operand.vmem [shape: f32[1,64], index: 17, kind: input, shape index: {}]   ;;  %s4536_s18 = inlined_call_operand.vmem [shape: bf16[64,64], index: 18, kind: input, shape index: {}]   ;;  %s4537_s19 = inlined_call_operand.vmem [shape: f32[1,64], index: 19, kind: input, shape index: {}]   ;;  %s4538_s20 = inlined_call_operand.vmem [shape: f32[128,8], index: 20, kind: input, shape index: {}]   ;;  %s4539_s21 = inlined_call_operand.vmem [shape: f32[8,128], index: 21, kind: input, shape index: {}]   ;;  %s4540_s22 = inlined_call_operand.hbm [shape: f32[32,64], index: 22, kind: output, shape index: {0}]   ;;  %s4541_s23 = inlined_call_operand.vmem [shape: bf16[256,64], index: 23, kind: output, shape index: {1}]   ;;  %s4542_s24 = inlined_call_operand.vmem [shape: bf16[256,64], index: 24, kind: output, shape index: {2}]  }
   0x1   :  { %4551 = sst [smem:[#allocation9_spill]] %s4518_s0 }
   0x2   :  { %4552 = sst [smem:[#allocation10_spill]] %s4519_s1 }
   0x3   :  { %4553 = sst [smem:[#allocation11_spill]] %s4520_s2 }
   0x4   :  { %4554 = sst [smem:[#allocation12_spill]] %s4521_s3 }
   0x5   :  { %4555 = sst [smem:[#allocation13_spill]] %s4522_s4 }
   0x6   :  { %4556 = sst [smem:[#allocation14_spill]] %s4523_s5 }
   0x7   :  { %4557 = sst [smem:[#allocation15_spill]] %s4524_s6 }
   0x8   :  { %4558 = sst [smem:[#allocation16_spill]] %s4525_s7 }
   0x9   :  { %4559 = sst [smem:[#allocation17_spill]] %s4526_s8 }
   0xa   :  { %4560 = sst [smem:[#allocation18_spill]] %s4530_s12 }
   0xb   :  { %4561 = sst [smem:[#allocation19_spill]] %s4531_s13 }
   0xc   :  { %30 = vsyncpa [#allocation3], 0 }
   0xd   :  { %32 = vsyncpa [#allocation3 + $0x1], 0  ;;  %s3447_s5 = smov 0   ;;  %s3449_s26 = smov 0  }
   0xe   :  { %s3451_s27 = smov 0   ;;  %s3453_s28 = smov 0  }
   0xf LB: > { %4562 = sst [smem:[#allocation5_spill]] %s3304_s27  ;;  %s3468_s6 = sadd.s32 4294967295, %s3308_s28   ;;  %s3308_s28 = sphi %s3453_s28, %s4588_s28   ;;  %s3304_s27 = sphi %s3451_s27, %s4590_s27   ;;  %s3300_s26 = sphi %s3449_s26, %s4592_s26   ;;  %s3296_s5 = sphi %s3447_s5, %s4591_s5  }
  0x10   : > { %s2926_s2 = sadd.s32 4294967294, %s3308_s28   ;;  %s3472_s29 = sadd.s32 1, %s3308_s28  }
  0x11   : > { %4563 = sst [smem:[#allocation6_spill]] %s3472_s29  ;;  %s522_s0 = sadd.s32 1, %s3304_s27 }
  0x12   : > { %s519_s7 = ssub.s32 %s3308_s28, %s3472_s29  ;;  %p532_p0 = scmp.ne.s32.totalorder %s3304_s27, %s3300_s26 }
  0x13   : > { %p520_p1 = scmp.eq.s32.totalorder %s519_s7, 0  ;;  %p533_p2 = scmp.eq.s32.totalorder %s3468_s6, 1 }
  0x14   : > { %p538_p3 = scmp.ne.s32.totalorder %s3300_s26, %s3296_s5  ;;  %p539_p4 = scmp.eq.s32.totalorder %s2926_s2, 1 }
  0x15   : > { %s3483_s30 = scalar_select %p520_p1, %s3304_s27, %s522_s0  }
  0x16   : > { %p3485_p5 = por %p533_p2, %p532_p0  ;;  %p3489_p6 = por %p539_p4, %p538_p3 }
  0x17   : > { %4564 = sst [smem:[#allocation7_spill]] %s3483_s30  ;;  %p2929_p7 = scmp.ge.s32.totalorder %s3308_s28, 1 }
  0x18   : > { %s4566_s25 = scalar_select %p3489_p6, 1, 0 }
  0x19   : > { %p693_p8 = scmp.lt.s32.totalorder %s3308_s28, 3 }
  0x1a   : > { %4567 = sst [smem:[#allocation8_spill]] %s4566_s25 }
  0x1b   : > { %p694_p9 = pnand %p2929_p7, %p693_p8 }
  0x1c   : > { %s2931_s8 = sshll.u32 (!%p694_p9), %s3468_s6, 1  ;;  %s4568_s0 = sld [smem:[#allocation10_spill]] (!%p694_p9) }
  0x1d   : > { %697 = sbr.rel (%p694_p9) target bundleno = 1625 (0x659), region = 108  ;;  %p780_p10 = scmp.lt.s32.totalorder (!%p694_p9), %s2931_s8, 3 }
  0x1e   : > { %s4569_s29 = sld [smem:[#allocation9_spill]] (!%p694_p9)  ;;  %s3532_s27 = sshll.u32 (!%p694_p9), %s3468_s6, 4 }
  0x1f   : > { %s4570_s30 = sld [smem:[#allocation13_spill]] (!%p694_p9)  ;;  %p792_p11 = scmp.lt.s32.totalorder (!%p694_p9), %s3532_s27, 31 }
  0x20   : > { %s4571_s1 = sld [smem:[#allocation12_spill]] (!%p694_p9) }
  0x21   : > { %s4582_s12 = sld [smem:[#allocation18_spill]] (!%p694_p9) }
  0x22   : > { %v3310_v0 = vmov 1   ;;  %v3311_v1 = vmov 0   ;;  %s4594_s8 = smov (!%p780_p10, %s2931_s8), 3  ;;  %vm871_vm0 = vcmask 523264   ;;  %v3312_v8 = vmov 64.0   ;;  %s4583_s13 = sld [smem:[#allocation19_spill]] }
  0x23   : > { %3152 = vset.pattern.permute.xlu1 %v3310_v0  ;;  %3151 = vset.pattern.permute.xlu0 %v3311_v1  ;;  %s2932_s4 = sshll.u32 %s4594_s8, 3  ;;  %3166 = vrcp.f32 %v3312_v8  ;;  %v3313_v52 = vmov 2475754826   ;;  %v3314_v54 = vmov 2131351028   ;;  %s4573_s8 = sld [smem:[#allocation17_spill]] }
  0x24   : > { %s789_s7 = scalar_lea.vmem %s4568_s0, %s2932_s4  ;;  %s3503_s25 = scalar_lea.vmem %s4569_s29, %s2932_s4  ;;  %v3315_v57 = vmov 2102212464   ;;  %v3316_v59 = vmov 920167782   ;;  %v3317_v63 = vmov 683565275  }
  0x25   : > { %v1123_v2 = vld [vmem:[%s789_s7] sm:$0xff]  ;;  %v1059_v5 = vld [vmem:[%s3503_s25 + $0x8] sm:$0xff]  ;;  %s3552_s6 = scalar_select %p792_p11, %s3532_s27, 31 }
  0x26   : > { %v1058_v3 = vld [vmem:[%s3503_s25] sm:$0xff]  ;;  %1143 = vperm.xlu1 %3152, %v1123_v2   ;;  %1128 = vperm.xlu0 %3151, %v1123_v2   ;;  %v1124_v6 = vld [vmem:[%s789_s7 + $0x8] sm:$0xff]  ;;  %v1063_v7 = vsel %vm871_vm0, %v1059_v5, 0.0  ;;  %s4572_s7 = sld [smem:[#allocation14_spill]] }
  0x27   : > { %v1060_v4 = vsel %vm871_vm0, %v1058_v3, 0.0  ;;  %v3154_v14 = vld [vmem:[%s4570_s30] ss:$0 sm:$0xff]  ;;  %s2936_s2 = sshll.u32 %s3552_s6, 3  ;;  %s4574_s4 = sld [smem:[#allocation11_spill]] }
  0x28   : > { %1061 = vadd.xlane.f32.xlu2 %v1060_v4  ;;  %v3155_v15 = vld [vmem:[%s4571_s1] ss:$0 sm:$0xff]  ;;  %s4581_s30 = sld [smem:[#allocation15_spill]] }
  0x29   : > { %v3167_v9 = vpop.eup %3166  ;;  %v3078_v62 = vld [vmem:[%s4573_s8 + $0x18] sm:$0xff] }
  0x2a   : > { %v1067_v10 = vmul.f32 64.0, %v3167_v9  ;;  %vm1071_vm1 = vweird.f32 %v3167_v9  ;;  %900 = vmatpush.bf16.msra.mxu0 %v3078_v62 }
  0x2c   : > { %v1068_v11 = vsub.f32 1.0, %v1067_v10  ;;  %v3156_v20 = vld [vmem:[%s4572_s7] ss:$0 sm:$0xff] }
  0x2d   : > { %s3590_s1 = scalar_lea.vmem %s4574_s4, %s2936_s2  ;;  %s4584_s2 = sld [smem:[#allocation16_spill]] }
  0x2e   : > { %1147 = vperm.xlu1 %3152, %v1124_v6   ;;  %1133 = vperm.xlu0 %3151, %v1124_v6   ;;  %v1069_v12 = vmul.f32 %v3167_v9, %v1068_v11  ;;  %v3318_v6 = vmov 1326507024  }
  0x30   : > { %1064 = vadd.xlane.f32.xlu2 %v1063_v7  ;;  %v1070_v13 = vadd.f32 %v3167_v9, %v1069_v12 }
  0x32   : > { %v3515_v18 = vsel %vm1071_vm1, %v3167_v9, %v1070_v13  ;;  %v3077_v9 = vld [vmem:[%s4573_s8 + $0x10] sm:$0xff] }
  0x33   : > { %901 = vmatpush.bf16.msra.mxu0 %v3077_v9 }
  0x36   : > { %3153 = vset.pattern.permute.xlu0 %v3310_v0 }
  0x98   : > { %v1144_v16 = vpop.permute.xlu1 %1143  ;;  %v1129_v17 = vpop.permute.xlu0 %1128 }
  0x99   : > { %v1153_v19 = vmul.f32 %v3154_v14, %v1144_v16  ;;  %v1139_v21 = vmul.f32 %v3155_v15, %v1129_v17 }
  0x9b   : > { %v1062_v22 = vpop.xlane.xlu2 %1061  ;;  %v1155_v23 = vadd.f32 %v1153_v19, %v1139_v21 }
  0x9c   : > { %v1073_v24 = vmul.f32 %v3515_v18, %v1062_v22  ;;  %v3076_v22 = vld [vmem:[%s4573_s8 + $0x8] sm:$0xff] }
  0x9d   : > { %v3521_v25 = vadd.f32 %v3156_v20, %v1155_v23  ;;  %902 = vmatpush.bf16.msra.mxu0 %v3076_v22 }
  0x9e   : > { %v3523_v26 = vsub.f32 %v1058_v3, %v1073_v24 }
  0x9f   : > { %v1166_v27 = vand.u32 2139095040, %v3521_v25  ;;  %v1163_v34 = vand.u32 2147483647, %v3521_v25 }
  0xa0   : > { %v1077_v28 = vmul.f32 %v3523_v26, %v3523_v26  ;;  %v1148_v29 = vpop.permute.xlu1 %1147  ;;  %v1134_v30 = vpop.permute.xlu0 %1133 }
  0xa1   : > { %v1167_v31 = vshrl.u32 %v1166_v27, 23  ;;  %v1154_v32 = vmul.f32 %v3154_v14, %v1148_v29  ;;  %v1140_v33 = vmul.f32 %v3155_v15, %v1134_v30  ;;  %v1170_v43 = vand.u32 8388607, %v1163_v34 }
  0xa2   : > { %v1079_v35 = vsel %vm871_vm0, %v1077_v28, 0.0 }
  0xa3   : > { %v1065_v36 = vpop.xlane.xlu2 %1064  ;;  %v2965_v37 = vadd.s32 4294967169, %v1167_v31  ;;  %v1156_v38 = vadd.f32 %v1154_v32, %v1140_v33  ;;  %1080 = vadd.xlane.f32.xlu0 %v1079_v35  ;;  %v1171_v48 = vor.u32 8388608, %v1170_v43 }
  0xa4   : > { %v1074_v39 = vmul.f32 %v3515_v18, %v1065_v36  ;;  %v811_v36 = vld [vmem:[%s3590_s1] sm:$0xff] }
  0xa5   : > { %v1173_v40 = vadd.s32 1, %v2965_v37  ;;  %v3534_v41 = vadd.f32 %v3156_v20, %v1156_v38  ;;  %v3567_v8 = vshll.u32 %v1171_v48, 8  ;;  %v812_v37 = vld [vmem:[%s3590_s1 + $0x8] sm:$0xff] }
  0xa6   : > { %v3536_v42 = vsub.f32 %v1059_v5, %v1074_v39 }
  0xa7   : > { %vm1174_vm2 = vcmp.gt.s32.totalorder %v1173_v40, 0  ;;  %v1321_v45 = vand.u32 2139095040, %v3534_v41  ;;  %v1318_v61 = vand.u32 2147483647, %v3534_v41  ;;  %v3596_v27 = vand.u32 65535, %v3567_v8 }
  0xa8   : > { %v1175_v44 = vsel %vm1174_vm2, %v1173_v40, 0  ;;  %v1078_v46 = vmul.f32 %v3536_v42, %v3536_v42  ;;  %v3603_v30 = vshrl.u32 %v3567_v8, 16  ;;  %v3075_v40 = vld [vmem:[%s4573_s8] sm:$0xff]  ;;  %s3319_s8 = smov 64  }
  0xa9   : > { %v1177_v47 = vand.u32 31, %v1175_v44  ;;  %v3544_v49 = vshrl.u32 %v1175_v44, 5  ;;  %v1322_v56 = vshrl.u32 %v1321_v45, 23  ;;  %v1325_v17 = vand.u32 8388607, %v1318_v61  ;;  %903 = vmatpush.bf16.msra.mxu0 %v3075_v40 }
  0xaa   : > { %v1082_v50 = vsel %vm871_vm0, %v1078_v46, 0.0 }
  0xab   : > { %v1178_v51 = vsub.s32 32, %v1177_v47  ;;  %v1183_v53 = vshll.u32 %v3313_v52, %v1177_v47  ;;  %v1186_v55 = vshll.u32 %v3314_v54, %v1177_v47  ;;  %1083 = vadd.xlane.f32.xlu1 %v1082_v50  ;;  %v1189_v58 = vshll.u32 %v3315_v57, %v1177_v47 }
  0xac   : > { %v1192_v60 = vshll.u32 %v3316_v59, %v1177_v47  ;;  %v1180_v0 = vshll.u32 %v3317_v63, %v1177_v47  ;;  %vm1195_vm3 = vcmp.lt.s32.totalorder %v3544_v49, 1  ;;  %vm1198_vm4 = vcmp.lt.s32.totalorder %v3544_v49, 4 }
  0xad   : > { %v1181_v2 = vshrl.u32 %v3313_v52, %v1178_v51  ;;  %v1184_v3 = vshrl.u32 %v3314_v54, %v1178_v51  ;;  %v1187_v4 = vshrl.u32 %v3315_v57, %v1178_v51  ;;  %v1190_v5 = vshrl.u32 %v3316_v59, %v1178_v51 }
  0xae   : > { %v1193_v7 = vshrl.u32 %v3318_v6, %v1178_v51  ;;  %v2968_v12 = vadd.s32 4294967169, %v1322_v56  ;;  %vm1197_vm5 = vcmp.lt.s32.totalorder %v3544_v49, 3  ;;  %vm1196_vm6 = vcmp.lt.s32.totalorder %v3544_v49, 2 }
  0xaf   : > { %v1185_v10 = vor.u32 %v1184_v3, %v1183_v53  ;;  %v1188_v11 = vor.u32 %v1187_v4, %v1186_v55  ;;  %v1191_v13 = vor.u32 %v1190_v5, %v1189_v58  ;;  %v1182_v15 = vor.u32 %v1181_v2, %v1180_v0 }
  0xb0   : > { %v1194_v14 = vor.u32 %v1193_v7, %v1192_v60  ;;  %v1328_v21 = vadd.s32 1, %v2968_v12  ;;  %v1179_v23 = vshrl.u32 %v3317_v63, %v1178_v51  ;;  %v1326_v38 = vor.u32 8388608, %v1325_v17 }
  0xb1   : > { %v1207_v16 = vsel %vm1195_vm3, %v1185_v10, %v1188_v11  ;;  %v1204_v19 = vsel %vm1198_vm4, %v1191_v13, 920167782  ;;  %v1200_v28 = vsel %vm1198_vm4, %v1188_v11, 2102212464  ;;  %v1203_v31 = vsel %vm1195_vm3, %v1182_v15, %v1185_v10 }
  0xb2   : > { %v1208_v20 = vsel %vm1198_vm4, %v1194_v14, 1326507024  ;;  %vm1329_vm7 = vcmp.gt.s32.totalorder %v1328_v21, 0  ;;  %v1205_v32 = vsel %vm1197_vm5, %v1188_v11, %v1204_v19  ;;  %v1199_v43 = vsel %vm1195_vm3, %v1179_v23, %v1182_v15 }
  0xb3   : > { %v1209_v24 = vsel %vm1197_vm5, %v1191_v13, %v1208_v20  ;;  %v1330_v39 = vsel %vm1329_vm7, %v1328_v21, 0  ;;  %v1201_v44 = vsel %vm1197_vm5, %v1185_v10, %v1200_v28  ;;  %v3623_v46 = vsel %vm1196_vm6, %v1203_v31, %v1205_v32  ;;  %v814_v28 = vld [vmem:[%s3590_s1 + $0x18] sm:$0xff] }
  0xb4   : > { %v1210_v29 = vsel %vm1196_vm6, %v1207_v16, %v1209_v24  ;;  %v827_v47 = vpack.c.bf16 %v812_v37, %v811_v36  ;;  %v1332_v53 = vand.u32 31, %v1330_v39  ;;  %v3632_v55 = vsel %vm1196_vm6, %v1199_v43, %v1201_v44 }
  0xb5   : > { %v1214_v33 = vand.u32 65535, %v1210_v29  ;;  %v1215_v35 = vshrl.u32 %v1210_v29, 16  ;;  %v1236_v56 = vand.u32 65535, %v3623_v46  ;;  %v3635_v58 = vshll.u32 %v1326_v38, 8 }
  0xb6   : > { %v1237_v60 = vshrl.u32 %v3623_v46, 16  ;;  %v3638_v62 = vshrl.u32 %v1330_v39, 5  ;;  %v3640_v0 = vsub.s32 32, %v1332_v53  ;;  %v1335_v2 = vshll.u32 %v3317_v63, %v1332_v53  ;;  %2957 = vmatmul.msk.bf16.vlgmr.msra.gmra.mxu0 %vm871_vm0, %v827_v47 }
  0xb7   : > { %v3619_v45 = vmul.u32 %v1215_v35, %v3596_v27  ;;  %v1216_v48 = vmul.u32 %v1214_v33, %v3596_v27  ;;  %v3627_v50 = vmul.u32 %v1214_v33, %v3603_v30  ;;  %v1219_v3 = vmul.u32 %v1215_v35, %v3603_v30 }
  0xb8   : > { %v1338_v4 = vshll.u32 %v3313_v52, %v1332_v53  ;;  %v1341_v49 = vshll.u32 %v3314_v54, %v1332_v53  ;;  %v1344_v5 = vshll.u32 %v3315_v57, %v1332_v53  ;;  %v1336_v10 = vshrl.u32 %v3313_v52, %v3640_v0 }
  0xb9   : > { %v1220_v51 = vshll.u32 %v3619_v45, 16  ;;  %v1222_v7 = vshll.u32 %v3627_v50, 16  ;;  %v1339_v11 = vshrl.u32 %v3314_v54, %v3640_v0  ;;  %v1342_v12 = vshrl.u32 %v3315_v57, %v3640_v0 }
  0xba   : > { %v1345_v13 = vshrl.u32 %v3316_v59, %v3640_v0  ;;  %v1347_v14 = vshll.u32 %v3316_v59, %v1332_v53  ;;  %v1348_v15 = vshrl.u32 %v3318_v6, %v3640_v0  ;;  %v3664_v17 = vor.u32 %v1336_v10, %v1335_v2  ;;  %v813_v6 = vld [vmem:[%s3590_s1 + $0x10] sm:$0xff] }
  0xbb   : > { %vm3648_vm8 = vc.u32 %v1216_v48, %v1220_v51  ;;  %v1226_v16 = vadd.s32 %v1220_v51, %v1216_v48  ;;  %v3666_v52 = vor.u32 %v1339_v11, %v1338_v4  ;;  %vm1350_vm9 = vcmp.lt.s32.totalorder %v3638_v62, 1 }
  0xbc   : > { %v3669_v54 = vor.u32 %v1342_v12, %v1341_v49  ;;  %v1346_v57 = vor.u32 %v1345_v13, %v1344_v5  ;;  %v1349_v19 = vor.u32 %v1348_v15, %v1347_v14  ;;  %vm1352_vm10 = vcmp.lt.s32.totalorder %v3638_v62, 3 }
  0xbd   : > { %v3673_v20 = vmul.u32 %v1237_v60, %v3596_v27  ;;  %vm1351_vm11 = vcmp.lt.s32.totalorder %v3638_v62, 2  ;;  %vm1353_vm12 = vcmp.lt.s32.totalorder %v3638_v62, 4  ;;  %v1358_v59 = vsel %vm1350_vm9, %v3664_v17, %v3666_v52 }
  0xbe   : > { %v1225_v21 = vsel %vm3648_vm8, 1, %v3311_v1  ;;  %v1359_v22 = vsel %vm1353_vm12, %v1346_v57, 920167782  ;;  %v1362_v23 = vsel %vm1350_vm9, %v3666_v52, %v3669_v54  ;;  %v1363_v24 = vsel %vm1353_vm12, %v1349_v19, 1326507024 }
  0xbf   : > { %v1360_v29 = vsel %vm1352_vm10, %v3669_v54, %v1359_v22  ;;  %v1364_v31 = vsel %vm1352_vm10, %v1346_v57, %v1363_v24  ;;  %v1367_v32 = vand.u32 65535, %v3635_v58  ;;  %v1368_v33 = vshrl.u32 %v3635_v58, 16 }
  0xc0   : > { %v1240_v35 = vmul.u32 %v1236_v56, %v3603_v30  ;;  %v1361_v36 = vsel %vm1351_vm11, %v1358_v59, %v1360_v29  ;;  %v1365_v37 = vsel %vm1351_vm11, %v1362_v23, %v1364_v31  ;;  %vm1228_vm13 = vc.u32 %v1226_v16, %v1222_v7 }
  0xc1   : > { %v1227_v38 = vadd.s32 %v1225_v21, %v1219_v3  ;;  %v1369_v39 = vand.u32 65535, %v1365_v37  ;;  %v1370_v40 = vshrl.u32 %v1365_v37, 16  ;;  %v828_v43 = vpack.c.bf16 %v814_v28, %v813_v6 }
  0xc2   : > { %v1238_v44 = vmul.u32 %v1236_v56, %v3596_v27  ;;  %v1392_v46 = vshrl.u32 %v1361_v36, 16  ;;  %v1229_v47 = vsel %vm1228_vm13, 1, %v3311_v1  ;;  %v1242_v48 = vshll.u32 %v3673_v20, 16 }
  0xc3   : > { %v1371_v51 = vmul.u32 %v1369_v39, %v1367_v32  ;;  %v1372_v53 = vmul.u32 %v1370_v40, %v1367_v32  ;;  %v1373_v2 = vmul.u32 %v1369_v39, %v1368_v33  ;;  %v1221_v4 = vshrl.u32 %v3619_v45, 16 }
  0xc4   : > { %v1241_v49 = vmul.u32 %v1237_v60, %v3603_v30  ;;  %v1391_v5 = vand.u32 65535, %v1361_v36  ;;  %v1223_v3 = vshrl.u32 %v3627_v50, 16  ;;  %v1244_v7 = vshll.u32 %v1240_v35, 16 }
  0xc5   : > { %v1374_v9 = vmul.u32 %v1370_v40, %v1368_v33  ;;  %v1375_v10 = vshll.u32 %v1372_v53, 16  ;;  %v1231_v11 = vadd.s32 %v1229_v47, %v1227_v38  ;;  %v1243_v27 = vshrl.u32 %v3673_v20, 16 }
  0xc6   : > { %v1377_v56 = vshll.u32 %v1373_v2, 16  ;;  %v1394_v12 = vmul.u32 %v1392_v46, %v1367_v32  ;;  %vm1246_vm14 = vc.u32 %v1238_v44, %v1242_v48  ;;  %v1248_v13 = vadd.s32 %v1242_v48, %v1238_v44  ;;  %2958 = vmatmul.msk.bf16.gmra.mxu0 %vm871_vm0, %v828_v43  ;;  %v815_v48 = vld [vmem:[%s3590_s1 + $0x20] sm:$0xff] }
  0xc7   : > { %vm1379_vm15 = vc.u32 %v1371_v51, %v1375_v10  ;;  %v1381_v14 = vadd.s32 %v1375_v10, %v1371_v51  ;;  %v1232_v15 = vadd.s32 %v1231_v11, %v1221_v4  ;;  %v1247_v45 = vsel %vm1246_vm14, 1, %v3311_v1  ;;  %v816_v51 = vld [vmem:[%s3590_s1 + $0x28] sm:$0xff] }
  0xc8   : > { %v1380_v30 = vsel %vm1379_vm15, 1, %v3311_v1  ;;  %v1395_v60 = vmul.u32 %v1391_v5, %v1368_v33  ;;  %v1249_v16 = vadd.s32 %v1247_v45, %v1241_v49  ;;  %vm1250_vm1 = vc.u32 %v1248_v13, %v1244_v7 }
  0xc9   : > { %v1382_v50 = vadd.s32 %v1380_v30, %v1374_v9  ;;  %v1393_v57 = vmul.u32 %v1391_v5, %v1367_v32  ;;  %v1396_v19 = vmul.u32 %v1392_v46, %v1368_v33  ;;  %v1251_v20 = vsel %vm1250_vm1, 1, %v3311_v1  ;;  %v817_v30 = vld [vmem:[%s3590_s1 + $0x30] sm:$0xff] }
  0xca   : > { %v1245_v59 = vshrl.u32 %v1240_v35, 16  ;;  %v1253_v6 = vadd.s32 %v1251_v20, %v1249_v16  ;;  %v1376_v21 = vshrl.u32 %v1372_v53, 16  ;;  %vm1383_vm2 = vc.u32 %v1381_v14, %v1377_v56 }
  0xcb   : > { %v3717_v22 = vadd.s32 %v1232_v15, %v1223_v3  ;;  %v3719_v23 = vadd.s32 %v1248_v13, %v1244_v7  ;;  %v1384_v24 = vsel %vm1383_vm2, 1, %v3311_v1  ;;  %v1397_v28 = vshll.u32 %v1394_v12, 16 }
  0xcc   : > { %v1334_v29 = vshrl.u32 %v3317_v63, %v3640_v0  ;;  %v1254_v31 = vadd.s32 %v1253_v6, %v1243_v27  ;;  %v1386_v32 = vadd.s32 %v1384_v24, %v1382_v50  ;;  %v1399_v33 = vshll.u32 %v1395_v60, 16 }
  0xcd   : > { %v1256_v36 = vmul.u32 %v3567_v8, %v3632_v55  ;;  %v1355_v35 = vsel %vm1353_vm12, %v3669_v54, 2102212464  ;;  %vm1401_vm3 = vc.u32 %v1393_v57, %v1397_v28  ;;  %v1403_v37 = vadd.s32 %v1397_v28, %v1393_v57 }
  0xce   : > { %v1255_v38 = vadd.s32 %v1254_v31, %v1245_v59  ;;  %v1378_v39 = vshrl.u32 %v1373_v2, 16  ;;  %v1387_v40 = vadd.s32 %v1386_v32, %v1376_v21  ;;  %v1402_v43 = vsel %vm1401_vm3, 1, %v3311_v1 }
  0xcf   : > { %vm1258_vm4 = vc.u32 %v3717_v22, %v3719_v23  ;;  %v1398_v63 = vshrl.u32 %v1394_v12, 16  ;;  %v1404_v0 = vadd.s32 %v1402_v43, %v1396_v19  ;;  %vm1405_vm5 = vc.u32 %v1403_v37, %v1399_v33 }
  0xd0   : > { %v1354_v8 = vsel %vm1350_vm9, %v1334_v29, %v3664_v17  ;;  %v1356_v55 = vsel %vm1352_vm10, %v3666_v52, %v1355_v35  ;;  %v1259_v54 = vadd.s32 1, %v1255_v38  ;;  %v1406_v44 = vsel %vm1405_vm5, 1, %v3311_v1 }
  0xd1   : > { %v1400_v46 = vshrl.u32 %v1395_v60, 16  ;;  %v1408_v47 = vadd.s32 %v1406_v44, %v1404_v0  ;;  %v1388_v2 = vadd.s32 %v1387_v40, %v1378_v39  ;;  %v1407_v4 = vadd.s32 %v1403_v37, %v1399_v33  ;;  %v818_v60 = vld [vmem:[%s3590_s1 + $0x38] sm:$0xff]  ;;  %v820_v39 = vld [vmem:[%s3590_s1 + $0x48] sm:$0xff] }
  0xd2   : > { %v1260_v53 = vsel %vm1258_vm4, %v1259_v54, %v1255_v38  ;;  %v1357_v49 = vsel %vm1351_vm11, %v1354_v8, %v1356_v55  ;;  %v829_v17 = vpack.c.bf16 %v816_v51, %v815_v48  ;;  %v830_v19 = vpack.c.bf16 %v818_v60, %v817_v30  ;;  %v819_v38 = vld [vmem:[%s3590_s1 + $0x40] sm:$0xff]  ;;  %v3081_v60 = vld [vmem:[%s4581_s30 + $0x10] sm:$0xff] }
  0xd3   : > { %v1261_v5 = vadd.s32 %v1260_v53, %v1256_v36  ;;  %v1409_v3 = vadd.s32 %v1408_v47, %v1398_v63  ;;  %v1411_v52 = vmul.u32 %v3635_v58, %v1357_v49  ;;  %vm1413_vm6 = vc.u32 %v1388_v2, %v1407_v4 }
  0xd4   : > { %v1257_v31 = vadd.s32 %v3719_v23, %v3717_v22  ;;  %v1412_v35 = vadd.s32 %v1407_v4, %v1388_v2  ;;  %v831_v55 = vpack.c.bf16 %v820_v39, %v819_v38  ;;  %vm1165_vm11 = vcmp.lt.s32.totalorder %v3521_v25, 0 }
  0xd5   : > { %v1262_v7 = vadd.s32 536870912, %v1261_v5  ;;  %v1410_v9 = vadd.s32 %v1409_v3, %v1400_v46  ;;  %vm1320_vm12 = vcmp.lt.s32.totalorder %v3534_v41, 0  ;;  %v821_v3 = vld [vmem:[%s3590_s1 + $0x50] sm:$0xff]  ;;  %vm3769_vm13 = vcmp.le.f32.partialorder %v1163_v34, 0.7853982 }
  0xd6   : > { %2959 = vmatmul.msk.bf16.gmra.mxu0 %vm871_vm0, %v829_v17  ;;  %v822_v17 = vld [vmem:[%s3590_s1 + $0x58] sm:$0xff]  ;;  %vm3775_vm14 = vcmp.le.f32.partialorder %v1318_v61, 0.7853982 }
  0xd7   : > { %v3744_v1 = vshrl.u32 %v1262_v7, 30  ;;  %v1414_v10 = vadd.s32 1, %v1410_v9 }
  0xd9   : > { %v1264_v11 = vshll.u32 %v3744_v1, 30  ;;  %v1415_v27 = vsel %vm1413_vm6, %v1414_v10, %v1410_v9 }
  0xda   : > { %v1416_v62 = vadd.s32 %v1415_v27, %v1411_v52  ;;  %v832_v52 = vpack.c.bf16 %v822_v17, %v821_v3 }
  0xdb   : > { %v1265_v56 = vsub.s32 %v1261_v5, %v1264_v11 }
  0xdc   : > { %v1417_v12 = vadd.s32 536870912, %v1416_v62 }
  0xdd   : > { %vm1266_vm7 = vcmp.lt.s32.totalorder %v1265_v56, 0  ;;  %v1267_v13 = vsub.s32 0, %v1265_v56 }
  0xde   : > { %v3748_v14 = vshrl.u32 %v1417_v12, 30 }
  0xdf   : > { %v1268_v15 = vsel %vm1266_vm7, %v1267_v13, %v1265_v56  ;;  %v3082_v13 = vld [vmem:[%s4581_s30 + $0x18] sm:$0xff] }
  0xe0   : > { %v1269_v58 = vclz %v1268_v15  ;;  %v1419_v45 = vshll.u32 %v3748_v14, 30  ;;  %1519 = vmatpush.bf16.msra.mxu1 %v3082_v13 }
  0xe2   : > { %v2966_v16 = vadd.s32 4294967294, %v1269_v58  ;;  %v1420_v50 = vsub.s32 %v1416_v62, %v1419_v45  ;;  %v823_v58 = vld [vmem:[%s3590_s1 + $0x60] sm:$0xff]  ;;  %v824_v45 = vld [vmem:[%s3590_s1 + $0x68] sm:$0xff] }
  0xe4   : > { %vm2967_vm8 = vcmp.lt.s32.totalorder %v2966_v16, 0  ;;  %vm1421_vm9 = vcmp.lt.s32.totalorder %v1420_v50, 0  ;;  %v1422_v57 = vsub.s32 0, %v1420_v50  ;;  %1520 = vmatpush.bf16.msra.mxu1 %v3081_v60 }
  0xe5   : > { %v1272_v59 = vsel %vm2967_vm8, 0, %v2966_v16 }
  0xe6   : > { %v1423_v20 = vsel %vm1421_vm9, %v1422_v57, %v1420_v50  ;;  %2960 = vmatmul.msk.bf16.gmra.mxu0 %vm871_vm0, %v830_v19  ;;  %v1277_v24 = vsub.s32 4294967266, %v1272_v59  ;;  %v1273_v32 = vsub.s32 32, %v1272_v59  ;;  %v1274_v40 = vshll.u32 %v1265_v56, %v1272_v59 }
  0xe7   : > { %v1424_v6 = vclz %v1423_v20  ;;  %v833_v19 = vpack.c.bf16 %v824_v45, %v823_v58 }
  0xe8   : > { %v1278_v33 = vadd.s32 127, %v1277_v24  ;;  %v1275_v43 = vshrl.u32 %v1257_v31, %v1273_v32 }
  0xe9   : > { %v2969_v21 = vadd.s32 4294967294, %v1424_v6  ;;  %v3080_v6 = vld [vmem:[%s4581_s30 + $0x8] sm:$0xff] }
  0xea   : > { %v1279_v63 = vshll.u32 %v1278_v33, 23  ;;  %v1276_v54 = vor.u32 %v1275_v43, %v1274_v40  ;;  %1521 = vmatpush.bf16.msra.mxu1 %v3080_v6  ;;  %v3079_v33 = vld [vmem:[%s4581_s30] sm:$0xff] }
  0xeb   : > { %vm2970_vm10 = vcmp.lt.s32.totalorder %v2969_v21, 0 }
  0xec   : > { %v1427_v28 = vsel %vm2970_vm10, 0, %v2969_v21  ;;  %v1280_v44 = vor.u32 4788187, %v1279_v63  ;;  %v1283_v48 = vcvt.s32.f32 %v1276_v54 }
  0xed   : > { %v1432_v29 = vsub.s32 4294967266, %v1427_v28  ;;  %v1428_v37 = vsub.s32 32, %v1427_v28  ;;  %v1429_v46 = vshll.u32 %v1420_v50, %v1427_v28 }
  0xee   : > { %v1281_v23 = vand.u32 2147483647, %v1280_v44  ;;  %1522 = vmatpush.bf16.msra.mxu1 %v3079_v33 }
  0xef   : > { %v1433_v36 = vadd.s32 127, %v1432_v29  ;;  %v1430_v8 = vshrl.u32 %v1412_v35, %v1428_v37  ;;  %v1442_v37 = vsub.s32 4, %v3748_v14 }
  0xf0   : > { %v1284_v2 = vmul.f32 %v1283_v48, %v1281_v23  ;;  %v825_v48 = vld [vmem:[%s3590_s1 + $0x70] sm:$0xff] }
  0xf1   : > { %v1434_v0 = vshll.u32 %v1433_v36, 23  ;;  %v1431_v22 = vor.u32 %v1430_v8, %v1429_v46  ;;  %v1287_v36 = vsub.s32 4, %v3744_v1  ;;  %v1443_v44 = vsel %vm1320_vm12, %v1442_v37, %v3748_v14 }
  0xf2   : > { %v1285_v49 = vxor.u32 2147483648, %v1284_v2 }
  0xf3   : > { %v1435_v47 = vor.u32 4788187, %v1434_v0  ;;  %v1438_v53 = vcvt.s32.f32 %v1431_v22  ;;  %v1288_v8 = vsel %vm1165_vm11, %v1287_v36, %v3744_v1 }
  0xf4   : > { %v1286_v7 = vsel %vm1165_vm11, %v1285_v49, %v1284_v2  ;;  %v1445_v2 = vsel %vm3775_vm14, 0, %v1443_v44  ;;  %v1604_v44 = vld [vmem:[%s4538_s20 + $0x48] sm:$0xff] }
  0xf5   : > { %v1436_v51 = vand.u32 2147483647, %v1435_v47  ;;  %v3783_v27 = vsel %vm3769_vm13, %v3521_v25, %v1286_v7 }
  0xf6   : > { %2961 = vmatmul.msk.bf16.gmra.mxu0 %vm871_vm0, %v831_v55  ;;  %v1291_v62 = vmul.f32 %v3783_v27, %v3783_v27 }
  0xf7   : > { %v1439_v4 = vmul.f32 %v1438_v53, %v1436_v51  ;;  %v826_v51 = vld [vmem:[%s3590_s1 + $0x78] sm:$0xff]  ;;  %v1290_v53 = vsel %vm3769_vm13, 0, %v1288_v8  ;;  %vm1461_vm13 = vweird.f32 %v3534_v41 }
  0xf8   : > { %v1299_v56 = vmul.f32 -0.00019511016, %v1291_v62  ;;  %v1292_v20 = vmul.f32 -0.001358992, %v1291_v62  ;;  %v834_v17 = vpack.c.bf16 %v826_v51, %v825_v48  ;;  %v1606_v8 = vld [vmem:[%s4538_s20 + $0x58] sm:$0xff]  ;;  %v1599_v48 = vld [vmem:[%s4538_s20 + $0x20] sm:$0xff] }
  0xf9   : > { %v1440_v5 = vxor.u32 2147483648, %v1439_v4 }
  0xfa   : > { %v1300_v16 = vadd.f32 0.008332121, %v1299_v56  ;;  %v1293_v28 = vadd.f32 0.041655596, %v1292_v20  ;;  %v1462_v56 = vadd.s32 3, %v1445_v2 }
  0xfb   : > { %v1441_v9 = vsel %vm1320_vm12, %v1440_v5, %v1439_v4  ;;  %vm1306_vm12 = vweird.f32 %v3521_v25  ;;  %v3878_v2 = vld [vmem:[%s4527_s9] ss:$0 sm:$0xff] }
  0xfc   : > { %v3788_v34 = vsel %vm3775_vm14, %v3534_v41, %v1441_v9  ;;  %v1301_v21 = vmul.f32 %v1300_v16, %v1291_v62  ;;  %v1294_v43 = vmul.f32 %v1293_v28, %v1291_v62  ;;  %v1463_v60 = vand.u32 3, %v1462_v56  ;;  %v1608_v41 = vld [vmem:[%s4538_s20 + $0x68] sm:$0xff] }
  0xfd   : > { %v1446_v61 = vmul.f32 %v3788_v34, %v3788_v34  ;;  %vm961_vm14 = vcmask 519168  }
  0xfe   : > { %v1302_v35 = vadd.f32 -0.16666654, %v1301_v21  ;;  %v1295_v47 = vadd.f32 -0.4999988, %v1294_v43  ;;  %vm1465_vm7 = vcmp.eq.s32.totalorder %v1463_v60, 0  ;;  %vm1468_vm9 = vcmp.eq.s32.totalorder %v1463_v60, 2 }
  0xff   : > { %v1454_v12 = vmul.f32 -0.00019511016, %v1446_v61  ;;  %v1447_v59 = vmul.f32 -0.001358992, %v1446_v61  ;;  %vm1464_vm11 = vcmp.lt.s32.totalorder %v1463_v60, 2  ;;  %v1610_v43 = vld [vmem:[%s4538_s20 + $0x78] sm:$0xff] }
 0x100   : > { %v1303_v54 = vmul.f32 %v1302_v35, %v1291_v62  ;;  %v1296_v3 = vmul.f32 %v1295_v47, %v1291_v62  ;;  %1611 = vmatpush.msra.mxu2 %v1610_v43  ;;  %v1602_v47 = vld [vmem:[%s4538_s20 + $0x38] sm:$0xff] }
 0x101   : > { %v1455_v50 = vadd.f32 0.008332121, %v1454_v12  ;;  %v1448_v31 = vadd.f32 0.041655596, %v1447_v59 }
 0x102   : > { %v1304_v1 = vadd.f32 1.0, %v1303_v54  ;;  %v1297_v58 = vadd.f32 1.0, %v1296_v3 }
 0x103   : > { %v1456_v24 = vmul.f32 %v1455_v50, %v1446_v61  ;;  %v1449_v0 = vmul.f32 %v1448_v31, %v1446_v61 }
 0x104   : > { %v1305_v13 = vmul.f32 %v1304_v1, %v3783_v27 }
 0x105   : > { %v1457_v38 = vadd.f32 -0.16666654, %v1456_v24  ;;  %v1450_v23 = vadd.f32 -0.4999988, %v1449_v0  ;;  %v1607_v0 = vld [vmem:[%s4538_s20 + $0x60] sm:$0xff] }
 0x106   : > { %2962 = vmatmul.msk.bf16.gmra.mxu0 %vm871_vm0, %v832_v52  ;;  %v1307_v52 = vadd.s32 3, %v1290_v53  ;;  %v1311_v50 = vxor.u32 2147483648, %v1305_v13 }
 0x107   : > { %v1458_v46 = vmul.f32 %v1457_v38, %v1446_v61  ;;  %v1451_v9 = vmul.f32 %v1450_v23, %v1446_v61  ;;  %v3157_v61 = vld [vmem:[%s4582_s12] ss:$0 sm:$0xff]  ;;  %v1600_v23 = vld [vmem:[%s4538_s20 + $0x28] sm:$0xff] }
 0x109   : > { %v1459_v49 = vadd.f32 1.0, %v1458_v46  ;;  %v1452_v45 = vadd.f32 1.0, %v1451_v9  ;;  %v1603_v46 = vld [vmem:[%s4538_s20 + $0x40] sm:$0xff] }
 0x10b   : > { %v1460_v11 = vmul.f32 %v1459_v49, %v3788_v34  ;;  %v1314_v34 = vxor.u32 2147483648, %v1297_v58  ;;  %v1598_v49 = vld [vmem:[%s4538_s20 + $0x18] sm:$0xff] }
 0x116   : > { %v1081_v15 = vpop.xlane.xlu0 %1080  ;;  %2963 = vmatmul.msk.bf16.gmra.mxu0 %vm871_vm0, %v833_v19  ;;  %v1469_v19 = vxor.u32 2147483648, %v1452_v45 }
 0x117   : > { %v1085_v30 = vmul.f32 %v1081_v15, %v3515_v18 }
 0x119   : > { %v1087_v57 = vadd.f32 1e-05, %v1085_v30  ;;  %v1308_v30 = vand.u32 3, %v1307_v52 }
 0x11b   : > { %3168 = vrsqrt.f32 %v1087_v57  ;;  %vm1095_vm1 = vweird.f32 %v1087_v57  ;;  %vm1310_vm6 = vcmp.eq.s32.totalorder %v1308_v30, 0  ;;  %vm1313_vm8 = vcmp.eq.s32.totalorder %v1308_v30, 2 }
 0x11c   : > { %v1312_v6 = vsel %vm1310_vm6, %v1297_v58, %v1311_v50  ;;  %vm1309_vm10 = vcmp.lt.s32.totalorder %v1308_v30, 2  ;;  %v1315_v28 = vsel %vm1313_vm8, %v1314_v34, %v1305_v13 }
 0x11d   : > { %v1316_v33 = vsel %vm1309_vm10, %v1312_v6, %v1315_v28 }
 0x11e   : > { %v1084_v29 = vpop.xlane.xlu1 %1083  ;;  %v1317_v37 = vsel %vm1306_vm12, nan, %v1316_v33 }
 0x11f   : > { %v1086_v32 = vmul.f32 %v1084_v29, %v3515_v18  ;;  %v1470_v29 = vsel %vm1468_vm9, %v1469_v19, %v1460_v11 }
 0x121   : > { %v3169_v39 = vpop.eup %3168  ;;  %v1088_v40 = vadd.f32 1e-05, %v1086_v32 }
 0x122   : > { %v1090_v63 = vmul.f32 %v3169_v39, %v1087_v57  ;;  %vm1096_vm15 = vweird.f32 %v3169_v39  ;;  %v1466_v57 = vxor.u32 2147483648, %v1460_v11  ;;  %v3929_v11 = vld [vmem:[%s4584_s2] ss:$0 sm:$0xff] }
 0x123   : > { %3170 = vrsqrt.f32 %v1088_v40  ;;  %vm1097_vm2 = vmor %vm1095_vm1, %vm1096_vm15  ;;  %vm1105_vm4 = vweird.f32 %v1088_v40  ;;  %vm1676_vm15 = vcmask 64512  }
 0x124   : > { %v1091_v55 = vmul.f32 %v3169_v39, %v1090_v63  ;;  %v1467_v21 = vsel %vm1465_vm7, %v1452_v45, %v1466_v57  ;;  %v1609_v63 = vld [vmem:[%s4538_s20 + $0x70] sm:$0xff] }
 0x125   : > { %v1471_v36 = vsel %vm1464_vm11, %v1467_v21, %v1470_v29  ;;  %1612 = vmatpush.msra.mxu2 %v1609_v63 }
 0x126   : > { %v1092_v22 = vmul.f32 0.5, %v1091_v55  ;;  %2964 = vmatmul.msk.bf16.gmra.mxu0 %vm871_vm0, %v834_v17  ;;  %v1472_v38 = vsel %vm1461_vm13, nan, %v1471_v36  ;;  %v1605_v55 = vld [vmem:[%s4538_s20 + $0x50] sm:$0xff]  ;;  %v1596_v17 = vld [vmem:[%s4538_s20 + $0x8] sm:$0xff] }
 0x127   : > { %1613 = vmatpush.msra.mxu2 %v1608_v41 }
 0x128   : > { %v1093_v4 = vsub.f32 1.5, %v1092_v22  ;;  %v1601_v22 = vld [vmem:[%s4538_s20 + $0x30] sm:$0xff] }
 0x129   : > { %v3171_v5 = vpop.eup %3170  ;;  %1614 = vmatpush.msra.mxu2 %v1607_v0 }
 0x12a   : > { %v1094_v14 = vmul.f32 %v3169_v39, %v1093_v4  ;;  %v1100_v7 = vmul.f32 %v3171_v5, %v1088_v40  ;;  %vm1106_vm3 = vweird.f32 %v3171_v5 }
 0x12b   : > { %vm1107_vm5 = vmor %vm1105_vm4, %vm1106_vm3  ;;  %1615 = vmatpush.msra.mxu2 %v1606_v8 }
 0x12c   : > { %v1098_v12 = vsel %vm1097_vm2, %v3169_v39, %v1094_v14  ;;  %v1101_v10 = vmul.f32 %v3171_v5, %v1100_v7  ;;  %v1595_v7 = vld [vmem:[%s4538_s20] sm:$0xff] }
 0x12d   : > { %v1109_v62 = vmul.f32 %v1098_v12, %v3523_v26  ;;  %v3158_v26 = vld [vmem:[%s4583_s13] ss:$0 sm:$0xff]  ;;  %1616 = vmatpush.msra.mxu2 %v1605_v55  ;;  %s2938_s13 = sshll.u32 %s3552_s6, 2 }
 0x12e   : > { %v1102_v15 = vmul.f32 0.5, %v1101_v10  ;;  %s3889_s7 = scalar_lea.vmem %s4541_s23, %s2938_s13  ;;  %s4055_s30 = scalar_lea.vmem %s4542_s24, %s2938_s13 }
 0x12f   : > { %v1115_v20 = vmul.f32 %v3157_v61, %v1109_v62  ;;  %1617 = vmatpush.msra.mxu2 %v1604_v44  ;;  %s762_s13 = sand.u32 1, %s3300_s26  }
 0x130   : > { %v1103_v16 = vsub.f32 1.5, %v1102_v15  ;;  %s2930_s29 = sshll.u32 %s762_s13, 4 }
 0x131   : > { %v1121_v32 = vadd.f32 %v3158_v26, %v1115_v20  ;;  %1618 = vmatpush.msra.mxu2 %v1603_v46  ;;  %s764_s4 = scalar_lea.vmem [#allocation2], %s2930_s29  ;;  %s3266_s29 = scalar_lea.hbm %s4540_s22, 32 }
 0x132   : > { %v1104_v27 = vmul.f32 %v3171_v5, %v1103_v16  ;;  %s2779_s0 = sshll.u32 %s764_s4, 4  ;;  %s2780_s0 = int_to_ptr.vmem [resolvable:$true] %s2779_s0 }
 0x133   : > { %v1473_v39 = vadd.f32 %v1317_v37, %v1121_v32  ;;  %v905_v25 = vpop.f32.mrf.mxu0  ;;  %1619 = vmatpush.msra.mxu2 %v1602_v47 }
 0x134   : > { %v1108_v59 = vsel %vm1107_vm5, %v3171_v5, %v1104_v27  ;;  %v1597_v5 = vld [vmem:[%s4538_s20 + $0x10] sm:$0xff]  ;;  %v3914_v56 = vadd.f32 %v3878_v2, %v905_v25 }
 0x135   : > { %v1110_v24 = vmul.f32 %v1108_v59, %v3536_v42  ;;  %1620 = vmatpush.msra.mxu2 %v1601_v22 }
 0x136   : > { %v3921_v10 = vpack.c.bf16 %v3914_v56, %v3914_v56 }
 0x137   : > { %v1116_v31 = vmul.f32 %v3157_v61, %v1110_v24  ;;  %1621 = vmatpush.msra.mxu2 %v1600_v23 }
 0x138   : > { %962 = vst.msk [vmem:[%s3889_s7] sm:$0xf] %vm961_vm14, %v3921_v10 }
 0x139   : > { %v1122_v35 = vadd.f32 %v3158_v26, %v1116_v31  ;;  %1622 = vmatpush.msra.mxu2 %v1599_v48 }
 0x13b   : > { %v1474_v40 = vadd.f32 %v1472_v38, %v1122_v35  ;;  %v907_v54 = vpop.f32.mrf.mxu0  ;;  %1623 = vmatpush.msra.mxu2 %v1598_v49 }
 0x13c   : > { %v3881_v1 = vadd.f32 %v3878_v2, %v907_v54 }
 0x13d   : > { %v1475_v42 = vpack.c.bf16 %v1474_v40, %v1473_v39  ;;  %1624 = vmatpush.msra.mxu2 %v1597_v5 }
 0x13e   : > { %v946_v3 = vpack.c.bf16 %v3881_v1, %v3881_v1 }
 0x13f   : > { %2987 = vmatmul.msk.bf16.vlgmr.msra.gmra.mxu1 %vm871_vm0, %v1475_v42  ;;  %1625 = vmatpush.msra.mxu2 %v1596_v17 }
 0x140   : > { %963 = vst.msk [vmem:[%s3889_s7 + $0x4] sm:$0xf] %vm961_vm14, %v946_v3  ;;  %996 = vrot.lane.b32.xlu0 %v946_v3, %s3319_s8 }
 0x141   : > { %1626 = vmatpush.msra.mxu2 %v1595_v7 }
 0x143   : > { %v910_v51 = vpop.f32.mrf.mxu0 }
 0x144   : > { %v3909_v9 = vadd.f32 %v3878_v2, %v910_v51 }
 0x146   : > { %v947_v52 = vpack.c.bf16 %v3909_v9, %v3909_v9 }
 0x148   : > { %964 = vst.msk [vmem:[%s3889_s7 + $0x8] sm:$0xf] %vm961_vm14, %v947_v52  ;;  %998 = vrot.lane.b32.xlu1 %v947_v52, %s3319_s8 }
 0x14b   : > { %v912_v53 = vpop.f32.mrf.mxu0 }
 0x14c   : > { %v3942_v16 = vadd.f32 %v3878_v2, %v912_v53 }
 0x14e   : > { %v3947_v27 = vpack.c.bf16 %v3942_v16, %v3942_v16 }
 0x150   : > { %965 = vst.msk [vmem:[%s3889_s7 + $0xc] sm:$0xf] %vm961_vm14, %v3947_v27 }
 0x153   : > { %v915_v4 = vpop.f32.mrf.mxu0 }
 0x154   : > { %v3932_v15 = vadd.f32 %v3878_v2, %v915_v4 }
 0x156   : > { %v949_v45 = vpack.c.bf16 %v3932_v15, %v3932_v15 }
 0x158   : > { %966 = vst.msk [vmem:[%s3889_s7 + $0x10] sm:$0xf] %vm961_vm14, %v949_v45  ;;  %1002 = vrot.lane.b32.xlu0 %v949_v45, %s3319_s8 }
 0x15b   : > { %v917_v14 = vpop.f32.mrf.mxu0 }
 0x15c   : > { %v3968_v29 = vadd.f32 %v3878_v2, %v917_v14 }
 0x15e   : > { %v3974_v31 = vpack.c.bf16 %v3968_v29, %v3968_v29 }
 0x160   : > { %967 = vst.msk [vmem:[%s3889_s7 + $0x14] sm:$0xf] %vm961_vm14, %v3974_v31 }
 0x163   : > { %v920_v12 = vpop.f32.mrf.mxu0 }
 0x164   : > { %v3953_v19 = vadd.f32 %v3878_v2, %v920_v12 }
 0x166   : > { %v951_v24 = vpack.c.bf16 %v3953_v19, %v3953_v19 }
 0x168   : > { %1006 = vrot.lane.b32.xlu1 %v951_v24, %s3319_s8  ;;  %968 = vst.msk [vmem:[%s3889_s7 + $0x18] sm:$0xf] %vm961_vm14, %v951_v24 }
 0x16b   : > { %v922_v13 = vpop.f32.mrf.mxu0 }
 0x16c   : > { %v3956_v20 = vadd.f32 %v3878_v2, %v922_v13 }
 0x16e   : > { %v952_v21 = vpack.c.bf16 %v3956_v20, %v3956_v20 }
 0x170   : > { %969 = vst.msk [vmem:[%s3889_s7 + $0x1c] sm:$0xf] %vm961_vm14, %v952_v21  ;;  %1008 = vrot.lane.b32.xlu0 %v952_v21, %s3319_s8 }
 0x173   : > { %v925_v60 = vpop.f32.mrf.mxu0 }
 0x174   : > { %v4000_v47 = vadd.f32 %v3878_v2, %v925_v60 }
 0x176   : > { %v4004_v22 = vpack.c.bf16 %v4000_v47, %v4000_v47 }
 0x178   : > { %970 = vst.msk [vmem:[%s3889_s7 + $0x20] sm:$0xf] %vm961_vm14, %v4004_v22 }
 0x17b   : > { %v927_v6 = vpop.f32.mrf.mxu0 }
 0x17c   : > { %v3981_v37 = vadd.f32 %v3878_v2, %v927_v6 }
 0x17e   : > { %v954_v40 = vpack.c.bf16 %v3981_v37, %v3981_v37 }
 0x180   : > { %971 = vst.msk [vmem:[%s3889_s7 + $0x24] sm:$0xf] %vm961_vm14, %v954_v40  ;;  %1012 = vrot.lane.b32.xlu1 %v954_v40, %s3319_s8 }
 0x183   : > { %v930_v36 = vpop.f32.mrf.mxu0 }
 0x184   : > { %v3991_v8 = vadd.f32 %v3878_v2, %v930_v36 }
 0x186   : > { %v955_v44 = vpack.c.bf16 %v3991_v8, %v3991_v8 }
 0x188   : > { %972 = vst.msk [vmem:[%s3889_s7 + $0x28] sm:$0xf] %vm961_vm14, %v955_v44  ;;  %1014 = vrot.lane.b32.xlu0 %v955_v44, %s3319_s8 }
 0x18b   : > { %v932_v43 = vpop.f32.mrf.mxu0 }
 0x193   : > { %v935_v0 = vpop.f32.mrf.mxu0 }
 0x194   : > { %v4012_v5 = vadd.f32 %v3878_v2, %v935_v0 }
 0x196   : > { %v957_v52 = vpack.c.bf16 %v4012_v5, %v4012_v5 }
 0x198   : > { %1018 = vrot.lane.b32.xlu1 %v957_v52, %s3319_s8  ;;  %974 = vst.msk [vmem:[%s3889_s7 + $0x30] sm:$0xf] %vm961_vm14, %v957_v52 }
 0x19b   : > { %v937_v51 = vpop.f32.mrf.mxu0 }
 0x19c   : > { %v4015_v3 = vadd.f32 %v3878_v2, %v937_v51 }
 0x19e   : > { %v958_v7 = vpack.c.bf16 %v4015_v3, %v4015_v3 }
 0x1a0   : > { %975 = vst.msk [vmem:[%s3889_s7 + $0x34] sm:$0xf] %vm961_vm14, %v958_v7  ;;  %1020 = vrot.lane.b32.xlu0 %v958_v7, %s3319_s8 }
 0x1a3   : > { %v940_v12 = vpop.f32.mrf.mxu0 }
 0x1a4   : > { %v4061_v36 = vadd.f32 %v3878_v2, %v940_v12 }
 0x1b2   : > { %v997_v21 = vpop.permute.xlu0 %996 }
 0x1b3   : > { %1043 = vst.msk [vmem:[%s4055_s30 + $0x4] sm:$0xf] %vm961_vm14, %v997_v21 }
 0x1bc   : > { %v1524_v58 = vpop.f32.mrf.mxu1 }
 0x1bd   : > { %v1525_v62 = vadd.f32 %v3929_v11, %v1524_v58 }
 0x1bf   : > { %v1529_v61 = vsel %vm871_vm0, %v1525_v62, 1.0 }
 0x1c0   : > { %v1547_v30 = vperm.slane %v1529_v61, 0  ;;  %v1533_v57 = vrot.slane %v1529_v61, 1  ;;  %v1534_v59 = vrot.slane %v1529_v61, 2  ;;  %v1535_v33 = vrot.slane %v1529_v61, 3 }
 0x1c1   : > { %v1536_v39 = vrot.slane %v1529_v61, 4  ;;  %v1537_v25 = vrot.slane %v1529_v61, 5  ;;  %v1538_v54 = vrot.slane %v1529_v61, 6  ;;  %v1539_v48 = vrot.slane %v1529_v61, 7 }
 0x1c2   : > { %v1579_v50 = vmul.f32 %v1547_v30, %v3914_v56  ;;  %v1548_v34 = vperm.slane %v1533_v57, 0  ;;  %v1549_v28 = vperm.slane %v1534_v59, 0  ;;  %v1550_v35 = vperm.slane %v1535_v33, 0  ;;  %v942_v30 = vpop.f32.mrf.mxu0 }
 0x1c3   : > { %v1551_v42 = vperm.slane %v1536_v39, 0  ;;  %v1552_v41 = vperm.slane %v1537_v25, 0  ;;  %v1553_v46 = vperm.slane %v1538_v54, 0  ;;  %v1554_v4 = vperm.slane %v1539_v48, 0 }
 0x1c4   : > { %1627 = vmatmul.f32.vlgmr.msra.gmra.mxu2 %v1579_v50  ;;  %v1580_v26 = vmul.f32 %v1548_v34, %v3881_v1  ;;  %v1581_v32 = vmul.f32 %v1549_v28, %v3909_v9  ;;  %v1582_v38 = vmul.f32 %v1550_v35, %v3942_v16  ;;  %v1526_v53 = vpop.f32.mrf.mxu1  ;;  %v4041_v60 = vadd.f32 %v3878_v2, %v942_v30  ;;  %v999_v35 = vpop.permute.xlu1 %998 }
 0x1c5   : > { %v1583_v63 = vmul.f32 %v1551_v42, %v3932_v15  ;;  %v1584_v55 = vmul.f32 %v1552_v41, %v3968_v29  ;;  %v1585_v23 = vmul.f32 %v1553_v46, %v3953_v19  ;;  %v1527_v49 = vadd.f32 %v3929_v11, %v1526_v53  ;;  %1044 = vst.msk [vmem:[%s4055_s30 + $0x8] sm:$0xf] %vm961_vm14, %v999_v35 }
 0x1c6   : > { %v1586_v17 = vmul.f32 %v1554_v4, %v3956_v20  ;;  %v4028_v11 = vadd.f32 %v3878_v2, %v932_v43  ;;  %v960_v34 = vpack.c.bf16 %v4041_v60, %v4041_v60 }
 0x1c7   : > { %v1530_v14 = vsel %vm871_vm0, %v1527_v49, 1.0 }
 0x1c8   : > { %v1555_v13 = vperm.slane %v1530_v14, 0  ;;  %v4034_v58 = vpack.c.bf16 %v4028_v11, %v4028_v11  ;;  %v1540_v62 = vrot.slane %v1530_v14, 1  ;;  %v1541_v57 = vrot.slane %v1530_v14, 2  ;;  %977 = vst.msk [vmem:[%s3889_s7 + $0x3c] sm:$0xf] %vm961_vm14, %v960_v34  ;;  %1024 = vrot.lane.b32.xlu1 %v960_v34, %s3319_s8 }
 0x1c9   : > { %v1542_v6 = vrot.slane %v1530_v14, 3  ;;  %v1544_v40 = vrot.slane %v1530_v14, 5  ;;  %v1545_v2 = vrot.slane %v1530_v14, 6  ;;  %v1546_v41 = vrot.slane %v1530_v14, 7 }
 0x1ca   : > { %v1587_v45 = vmul.f32 %v1555_v13, %v4000_v47  ;;  %973 = vst.msk [vmem:[%s3889_s7 + $0x2c] sm:$0xf] %vm961_vm14, %v4034_v58  ;;  %v1556_v61 = vperm.slane %v1540_v62, 0  ;;  %v1003_v54 = vpop.permute.xlu0 %1002 }
 0x1cb   : > { %v1558_v24 = vperm.slane %v1542_v6, 0  ;;  %v1560_v42 = vperm.slane %v1544_v40, 0  ;;  %v1562_v0 = vperm.slane %v1546_v41, 0  ;;  %1046 = vst.msk [vmem:[%s4055_s30 + $0x10] sm:$0xf] %vm961_vm14, %v1003_v54 }
 0x1cc   : > { %1630 = vmatmul.f32.gmra.mxu2 %v1580_v26  ;;  %v1588_v50 = vmul.f32 %v1556_v61, %v3981_v37  ;;  %v1557_v26 = vperm.slane %v1541_v57, 0 }
 0x1cd   : > { %v1590_v28 = vmul.f32 %v1558_v24, %v4028_v11  ;;  %v1592_v43 = vmul.f32 %v1560_v42, %v4015_v3 }
 0x1ce   : > { %v1589_v59 = vmul.f32 %v1557_v26, %v3991_v8 }
 0x1d4   : > { %1633 = vmatmul.f32.gmra.mxu2 %v1581_v32  ;;  %v1543_v32 = vrot.slane %v1530_v14, 4 }
 0x1d6   : > { %v1559_v33 = vperm.slane %v1543_v32, 0 }
 0x1d8   : > { %v1591_v39 = vmul.f32 %v1559_v33, %v4012_v5 }
 0x1da   : > { %v1007_v62 = vpop.permute.xlu1 %1006 }
 0x1db   : > { %1048 = vst.msk [vmem:[%s4055_s30 + $0x18] sm:$0xf] %vm961_vm14, %v1007_v62 }
 0x1dc   : > { %1636 = vmatmul.f32.gmra.mxu2 %v1582_v38  ;;  %v4067_v38 = vpack.c.bf16 %v4061_v36, %v4061_v36 }
 0x1de   : > { %976 = vst.msk [vmem:[%s3889_s7 + $0x38] sm:$0xf] %vm961_vm14, %v4067_v38 }
 0x1e4   : > { %1639 = vmatmul.f32.gmra.mxu2 %v1583_v63  ;;  %v1561_v63 = vperm.slane %v1545_v2, 0 }
 0x1e6   : > { %v1593_v25 = vmul.f32 %v1561_v63, %v4061_v36 }
 0x1ec   : > { %1642 = vmatmul.f32.gmra.mxu2 %v1584_v55  ;;  %v1594_v55 = vmul.f32 %v1562_v0, %v4041_v60 }
 0x1f4   : > { %1645 = vmatmul.f32.gmra.mxu2 %v1585_v23 }
 0x1fc   : > { %1648 = vmatmul.f32.gmra.mxu2 %v1586_v17 }
 0x204   : > { %1651 = vmatmul.f32.gmra.mxu2 %v1587_v45  ;;  %v1009_v45 = vpop.permute.xlu0 %1008 }
 0x205   : > { %1049 = vst.msk [vmem:[%s4055_s30 + $0x1c] sm:$0xf] %vm961_vm14, %v1009_v45 }
 0x20c   : > { %1654 = vmatmul.f32.gmra.mxu2 %v1588_v50 }
 0x214   : > { %1657 = vmatmul.f32.gmra.mxu2 %v1589_v59 }
 0x21c   : > { %1660 = vmatmul.f32.gmra.mxu2 %v1590_v28 }
 0x224   : > { %1663 = vmatmul.f32.gmra.mxu2 %v1591_v39 }
 0x22c   : > { %1666 = vmatmul.f32.gmra.mxu2 %v1592_v43 }
 0x234   : > { %1669 = vmatmul.f32.gmra.mxu2 %v1593_v25 }
 0x23c   : > { %1672 = vmatmul.f32.gmra.mxu2 %v1594_v55 }
 0x247   : > { %v1628_v44 = vpop.f32.mrf.mxu2 }
 0x248   : > { %v1677_v46 = vsel %vm1676_vm15, %v1628_v44, -inf }
 0x249   : > { %v1678_v23 = vrot.slane %v1677_v46, 4 }
 0x24b   : > { %v1679_v48 = vmax.f32 %v1677_v46, %v1678_v23 }
 0x24d   : > { %v1680_v51 = vrot.slane %v1679_v48, 2 }
 0x24f   : > { %v1681_v53 = vmax.f32 %v1679_v48, %v1680_v51  ;;  %v1631_v4 = vpop.f32.mrf.mxu2 }
 0x250   : > { %v1684_v49 = vsel %vm1676_vm15, %v1631_v4, -inf }
 0x251   : > { %v1682_v17 = vrot.slane %v1681_v53, 1  ;;  %v1685_v14 = vrot.slane %v1684_v49, 4 }
 0x253   : > { %v1683_v7 = vmax.f32 %v1681_v53, %v1682_v17  ;;  %v1686_v52 = vmax.f32 %v1684_v49, %v1685_v14 }
 0x255   : > { %v1789_v12 = vsub.f32 %v1628_v44, %v1683_v7  ;;  %v1687_v13 = vrot.slane %v1686_v52, 2  ;;  %v1013_v44 = vpop.permute.xlu1 %1012 }
 0x256   : > { %1051 = vst.msk [vmem:[%s4055_s30 + $0x24] sm:$0xf] %vm961_vm14, %v1013_v44 }
 0x257   : > { %v1805_v61 = vmul.f32 1.442695, %v1789_v12  ;;  %v1688_v30 = vmax.f32 %v1686_v52, %v1687_v13  ;;  %v1634_v50 = vpop.f32.mrf.mxu2 }
 0x258   : > { %v1691_v57 = vsel %vm1676_vm15, %v1634_v50, -inf }
 0x259   : > { %3172 = vpow2.f32 %v1805_v61  ;;  %v1689_v34 = vrot.slane %v1688_v30, 1  ;;  %v1692_v26 = vrot.slane %v1691_v57, 4 }
 0x25b   : > { %v1690_v59 = vmax.f32 %v1688_v30, %v1689_v34  ;;  %v1693_v6 = vmax.f32 %v1691_v57, %v1692_v26 }
 0x25d   : > { %v1790_v21 = vsub.f32 %v1631_v4, %v1690_v59  ;;  %v1694_v24 = vrot.slane %v1693_v6, 2 }
 0x25f   : > { %v4085_v28 = vpop.eup %3172  ;;  %v1807_v32 = vmul.f32 1.442695, %v1790_v21  ;;  %v1695_v33 = vmax.f32 %v1693_v6, %v1694_v24  ;;  %v1637_v35 = vpop.f32.mrf.mxu2 }
 0x260   : > { %v1837_v39 = vsel %vm1676_vm15, %v4085_v28, 0.0  ;;  %v1698_v40 = vsel %vm1676_vm15, %v1637_v35, -inf }
 0x261   : > { %v1838_v42 = vrot.slane %v1837_v39, 4  ;;  %3174 = vpow2.f32 %v1807_v32  ;;  %v1696_v43 = vrot.slane %v1695_v33, 1  ;;  %v1699_v2 = vrot.slane %v1698_v40, 4 }
 0x263   : > { %v1839_v63 = vadd.f32 %v1838_v42, %v1837_v39  ;;  %v1697_v25 = vmax.f32 %v1695_v33, %v1696_v43  ;;  %v1700_v41 = vmax.f32 %v1698_v40, %v1699_v2 }
 0x265   : > { %v1840_v0 = vrot.slane %v1839_v63, 2  ;;  %v1791_v55 = vsub.f32 %v1634_v50, %v1697_v25  ;;  %v1701_v54 = vrot.slane %v1700_v41, 2  ;;  %v2189_v50 = vld [vmem:[%s4539_s21] sm:$0xff] }
 0x266   : > { %2253 = vmatpush.msra.mxu3 %v2189_v50 }
 0x267   : > { %v4092_v46 = vpop.eup %3174  ;;  %v1841_v23 = vadd.f32 %v1840_v0, %v1839_v63  ;;  %v1809_v48 = vmul.f32 1.442695, %v1791_v55  ;;  %v1702_v51 = vmax.f32 %v1700_v41, %v1701_v54  ;;  %v1640_v53 = vpop.f32.mrf.mxu2 }
 0x268   : > { %v1844_v4 = vsel %vm1676_vm15, %v4092_v46, 0.0  ;;  %v1705_v49 = vsel %vm1676_vm15, %v1640_v53, -inf  ;;  %v1015_v54 = vpop.permute.xlu0 %1014 }
 0x269   : > { %v1842_v17 = vrot.slane %v1841_v23, 1  ;;  %v1845_v14 = vrot.slane %v1844_v4, 4  ;;  %3176 = vpow2.f32 %v1809_v48  ;;  %v1703_v7 = vrot.slane %v1702_v51, 1  ;;  %1052 = vst.msk [vmem:[%s4055_s30 + $0x28] sm:$0xf] %vm961_vm14, %v1015_v54 }
 0x26a   : > { %v1706_v52 = vrot.slane %v1705_v49, 4 }
 0x26b   : > { %v1843_v12 = vadd.f32 %v1842_v17, %v1841_v23  ;;  %v1846_v13 = vadd.f32 %v1845_v14, %v1844_v4  ;;  %v1704_v45 = vmax.f32 %v1702_v51, %v1703_v7 }
 0x26c   : > { %v1707_v62 = vmax.f32 %v1705_v49, %v1706_v52 }
 0x26d   : > { %3178 = vrcp.f32 %v1843_v12  ;;  %v1847_v61 = vrot.slane %v1846_v13, 2  ;;  %v1792_v30 = vsub.f32 %v1637_v35, %v1704_v45  ;;  %v1958_v48 = vand.u32 2147483647, %v1843_v12 }
 0x26e   : > { %v1708_v57 = vrot.slane %v1707_v62, 2  ;;  %v1960_v14 = vand.u32 2147483648, %v1843_v12  ;;  %vm1954_vm2 = vweird.f32 %v1843_v12 }
 0x26f   : > { %v4100_v34 = vpop.eup %3176  ;;  %v1848_v26 = vadd.f32 %v1847_v61, %v1846_v13  ;;  %v1811_v59 = vmul.f32 1.442695, %v1792_v30  ;;  %v1643_v6 = vpop.f32.mrf.mxu2  ;;  %vm1959_vm4 = vcmp.eq.f32.partialorder %v1958_v48, 8.507059e+37 }
 0x270   : > { %v1851_v21 = vsel %vm1676_vm15, %v4100_v34, 0.0  ;;  %v1709_v24 = vmax.f32 %v1707_v62, %v1708_v57  ;;  %v1712_v32 = vsel %vm1676_vm15, %v1643_v6, -inf }
 0x271   : > { %v1849_v33 = vrot.slane %v1848_v26, 1  ;;  %v1852_v39 = vrot.slane %v1851_v21, 4  ;;  %3180 = vpow2.f32 %v1811_v59  ;;  %v1713_v35 = vrot.slane %v1712_v32, 4 }
 0x272   : > { %v1710_v40 = vrot.slane %v1709_v24, 1 }
 0x273   : > { %v3179_v42 = vpop.eup %3178  ;;  %v4105_v43 = vadd.f32 %v1849_v33, %v1848_v26  ;;  %v1853_v2 = vadd.f32 %v1852_v39, %v1851_v21  ;;  %v1714_v63 = vmax.f32 %v1712_v32, %v1713_v35  ;;  %v1961_v33 = vor.u32 1.1754944e-38, %v1960_v14 }
 0x274   : > { %v1711_v25 = vmax.f32 %v1709_v24, %v1710_v40  ;;  %v1950_v41 = vmul.f32 %v3179_v42, %v1843_v12  ;;  %vm1955_vm1 = vweird.f32 %v3179_v42 }
 0x275   : > { %3182 = vrcp.f32 %v4105_v43  ;;  %v1854_v0 = vrot.slane %v1853_v2, 2  ;;  %v1715_v55 = vrot.slane %v1714_v63, 2  ;;  %vm1956_vm3 = vmor %vm1954_vm2, %vm1955_vm1  ;;  %vm1969_vm6 = vweird.f32 %v4105_v43 }
 0x276   : > { %v1793_v44 = vsub.f32 %v1640_v53, %v1711_v25  ;;  %v1951_v23 = vsub.f32 1.0, %v1950_v41  ;;  %v1973_v25 = vand.u32 2147483647, %v4105_v43  ;;  %v1975_v41 = vand.u32 2147483648, %v4105_v43 }
 0x277   : > { %v4110_v51 = vpop.eup %3180  ;;  %v1855_v4 = vadd.f32 %v1854_v0, %v1853_v2  ;;  %v1716_v49 = vmax.f32 %v1714_v63, %v1715_v55  ;;  %v4112_v17 = vpop.f32.mrf.mxu2 }
 0x278   : > { %v1858_v7 = vsel %vm1676_vm15, %v4110_v51, 0.0  ;;  %v1813_v52 = vmul.f32 1.442695, %v1793_v44  ;;  %v1719_v13 = vsel %vm1676_vm15, %v4112_v17, -inf  ;;  %v1952_v53 = vmul.f32 %v3179_v42, %v1951_v23 }
 0x279   : > { %v1856_v45 = vrot.slane %v1855_v4, 1  ;;  %v1859_v62 = vrot.slane %v1858_v7, 4  ;;  %v1717_v61 = vrot.slane %v1716_v49, 1  ;;  %v1720_v30 = vrot.slane %v1719_v13, 4 }
 0x27a   : > { %3184 = vpow2.f32 %v1813_v52  ;;  %v1953_v50 = vadd.f32 %v3179_v42, %v1952_v53  ;;  %vm1974_vm8 = vcmp.eq.f32.partialorder %v1973_v25, 8.507059e+37 }
 0x27b   : > { %v3183_v57 = vpop.eup %3182  ;;  %v4118_v26 = vadd.f32 %v1856_v45, %v1855_v4  ;;  %v1860_v59 = vadd.f32 %v1859_v62, %v1858_v7  ;;  %v1718_v21 = vmax.f32 %v1716_v49, %v1717_v61  ;;  %v1721_v24 = vmax.f32 %v1719_v13, %v1720_v30 }
 0x27c   : > { %v1957_v32 = vsel %vm1956_vm3, %v3179_v42, %v1953_v50  ;;  %v1965_v39 = vmul.f32 %v3183_v57, %v4105_v43  ;;  %vm1970_vm5 = vweird.f32 %v3183_v57  ;;  %v1976_v62 = vor.u32 1.1754944e-38, %v1975_v41 }
 0x27d   : > { %3186 = vrcp.f32 %v4118_v26  ;;  %v1861_v35 = vrot.slane %v1860_v59, 2  ;;  %v1794_v40 = vsub.f32 %v1643_v6, %v1718_v21  ;;  %v1722_v2 = vrot.slane %v1721_v24, 2  ;;  %vm1971_vm7 = vmor %vm1969_vm6, %vm1970_vm5 }
 0x27e   : > { %v1962_v63 = vsel %vm1959_vm4, %v1961_v33, %v1957_v32  ;;  %v1966_v12 = vsub.f32 1.0, %v1965_v39  ;;  %v1988_v43 = vand.u32 2147483647, %v4118_v26  ;;  %v1021_v32 = vpop.permute.xlu0 %1020  ;;  %v1019_v33 = vpop.permute.xlu1 %1018  ;;  %vm1984_vm10 = vweird.f32 %v4118_v26 }
 0x27f   : > { %v1862_v0 = vadd.f32 %v1861_v35, %v1860_v59  ;;  %v1815_v55 = vmul.f32 1.442695, %v1794_v40  ;;  %v1723_v54 = vmax.f32 %v1721_v24, %v1722_v2  ;;  %v4125_v44 = vpop.f32.mrf.mxu2  ;;  %v1963_v42 = vmul.f32 %v4085_v28, %v1962_v63  ;;  %1055 = vst.msk [vmem:[%s4055_s30 + $0x34] sm:$0xf] %vm961_vm14, %v1021_v32 }
 0x280   : > { %v4128_v23 = vpop.eup %3184  ;;  %v1726_v48 = vsel %vm1676_vm15, %v4125_v44, -inf  ;;  %v1967_v6 = vmul.f32 %v3183_v57, %v1966_v12  ;;  %1054 = vst.msk [vmem:[%s4055_s30 + $0x30] sm:$0xf] %vm961_vm14, %v1019_v33  ;;  %vm4158_vm11 = vcmp.eq.f32.partialorder %v1988_v43, 8.507059e+37 }
 0x281   : > { %v1863_v4 = vrot.slane %v1862_v0, 1  ;;  %v1865_v49 = vsel %vm1676_vm15, %v4128_v23, 0.0  ;;  %3188 = vpow2.f32 %v1815_v55  ;;  %v1724_v14 = vrot.slane %v1723_v54, 1  ;;  %2988 = vmatmul.msk.f32.vlgmr.msra.gmra.mxu3 %vm1676_vm15, %v1963_v42 }
 0x282   : > { %v1866_v7 = vrot.slane %v1865_v49, 4  ;;  %v1727_v52 = vrot.slane %v1726_v48, 4  ;;  %v1968_v13 = vadd.f32 %v3183_v57, %v1967_v6 }
 0x283   : > { %v3187_v28 = vpop.eup %3186  ;;  %v4136_v53 = vadd.f32 %v1863_v4, %v1862_v0  ;;  %v1725_v45 = vmax.f32 %v1723_v54, %v1724_v14 }
 0x284   : > { %v1867_v61 = vadd.f32 %v1866_v7, %v1865_v49  ;;  %v1728_v30 = vmax.f32 %v1726_v48, %v1727_v52  ;;  %v1972_v50 = vsel %vm1971_vm7, %v3183_v57, %v1968_v13  ;;  %v1980_v59 = vmul.f32 %v3187_v28, %v4118_v26 }
 0x285   : > { %3190 = vrcp.f32 %v4136_v53  ;;  %v1795_v21 = vsub.f32 %v4112_v17, %v1725_v45  ;;  %v1977_v24 = vsel %vm1974_vm8, %v1976_v62, %v1972_v50  ;;  %vm1985_vm9 = vweird.f32 %v3187_v28 }
 0x286   : > { %v1868_v39 = vrot.slane %v1867_v61, 2  ;;  %v1729_v35 = vrot.slane %v1728_v30, 2  ;;  %v1978_v40 = vmul.f32 %v4092_v46, %v1977_v24  ;;  %v1981_v2 = vsub.f32 1.0, %v1980_v59  ;;  %vm1986_vm12 = vmor %vm1984_vm10, %vm1985_vm9 }
 0x287   : > { %v4145_v57 = vpop.eup %3188  ;;  %v1817_v63 = vmul.f32 1.442695, %v1795_v21  ;;  %v4147_v12 = vpop.f32.mrf.mxu2  ;;  %v1990_v17 = vand.u32 2147483648, %v4118_v26  ;;  %v2005_v21 = vand.u32 2147483648, %v4136_v53  ;;  %vm1999_vm1 = vweird.f32 %v4136_v53 }
 0x288   : > { %v1869_v25 = vadd.f32 %v1868_v39, %v1867_v61  ;;  %v1872_v41 = vsel %vm1676_vm15, %v4145_v57, 0.0  ;;  %v1730_v0 = vmax.f32 %v1728_v30, %v1729_v35  ;;  %v1733_v46 = vsel %vm1676_vm15, %v4147_v12, -inf }
 0x289   : > { %v1873_v55 = vrot.slane %v1872_v41, 4  ;;  %3192 = vpow2.f32 %v1817_v63  ;;  %v1734_v54 = vrot.slane %v1733_v46, 4  ;;  %2989 = vmatmul.msk.f32.gmra.mxu3 %vm1676_vm15, %v1978_v40  ;;  %v1982_v42 = vmul.f32 %v3187_v28, %v1981_v2 }
 0x28a   : > { %v1870_v48 = vrot.slane %v1869_v25, 1  ;;  %v1731_v6 = vrot.slane %v1730_v0, 1  ;;  %v1991_v13 = vor.u32 1.1754944e-38, %v1990_v17  ;;  %v2003_v30 = vand.u32 2147483647, %v4136_v53 }
 0x28b   : > { %v3191_v49 = vpop.eup %3190  ;;  %v1874_v14 = vadd.f32 %v1873_v55, %v1872_v41  ;;  %v1735_v7 = vmax.f32 %v1733_v46, %v1734_v54  ;;  %v1983_v52 = vadd.f32 %v3187_v28, %v1982_v42 }
 0x28c   : > { %v4162_v45 = vadd.f32 %v1870_v48, %v1869_v25  ;;  %v1732_v62 = vmax.f32 %v1730_v0, %v1731_v6  ;;  %v1995_v61 = vmul.f32 %v3191_v49, %v4136_v53  ;;  %vm2000_vm13 = vweird.f32 %v3191_v49 }
 0x28d   : > { %v1875_v50 = vrot.slane %v1874_v14, 2  ;;  %v1736_v26 = vrot.slane %v1735_v7, 2  ;;  %v1987_v59 = vsel %vm1986_vm12, %v3187_v28, %v1983_v52  ;;  %vm2001_vm2 = vmor %vm1999_vm1, %vm2000_vm13  ;;  %vm2004_vm3 = vcmp.eq.f32.partialorder %v2003_v30, 8.507059e+37 }
 0x28e   : > { %3194 = vrcp.f32 %v4162_v45  ;;  %v1796_v24 = vsub.f32 %v4125_v44, %v1732_v62  ;;  %v1992_v43 = vsel %vm4158_vm11, %v1991_v13, %v1987_v59  ;;  %v1996_v32 = vsub.f32 1.0, %v1995_v61  ;;  %v1025_v62 = vpop.permute.xlu1 %1024 }
 0x28f   : > { %v4172_v33 = vpop.eup %3192  ;;  %v1876_v39 = vadd.f32 %v1875_v50, %v1874_v14  ;;  %v1737_v35 = vmax.f32 %v1735_v7, %v1736_v26  ;;  %v4174_v40 = vpop.f32.mrf.mxu2  ;;  %v1993_v2 = vmul.f32 %v4100_v34, %v1992_v43  ;;  %v2006_v14 = vor.u32 1.1754944e-38, %v2005_v21  ;;  %1057 = vst.msk [vmem:[%s4055_s30 + $0x3c] sm:$0xf] %vm961_vm14, %v1025_v62 }
 0x290   : > { %v1879_v28 = vsel %vm1676_vm15, %v4172_v33, 0.0  ;;  %v1819_v63 = vmul.f32 1.442695, %v1796_v24  ;;  %v1740_v44 = vsel %vm1676_vm15, %v4174_v40, -inf  ;;  %v1997_v17 = vmul.f32 %v3191_v49, %v1996_v32 }
 0x291   : > { %v1877_v25 = vrot.slane %v1876_v39, 1  ;;  %v1880_v41 = vrot.slane %v1879_v28, 4  ;;  %v1738_v0 = vrot.slane %v1737_v35, 1  ;;  %v1741_v46 = vrot.slane %v1740_v44, 4  ;;  %2990 = vmatmul.msk.f32.gmra.mxu3 %vm1676_vm15, %v1993_v2 }
 0x292   : > { %3196 = vpow2.f32 %v1819_v63  ;;  %v1998_v55 = vadd.f32 %v3191_v49, %v1997_v17  ;;  %v2018_v43 = vand.u32 2147483647, %v4162_v45  ;;  %v2020_v32 = vand.u32 2147483648, %v4162_v45 }
 0x293   : > { %v4183_v34 = vadd.f32 %v1877_v25, %v1876_v39  ;;  %v1881_v54 = vadd.f32 %v1880_v41, %v1879_v28  ;;  %v1739_v42 = vmax.f32 %v1737_v35, %v1738_v0  ;;  %v1742_v48 = vmax.f32 %v1740_v44, %v1741_v46 }
 0x294   : > { %v3195_v6 = vpop.eup %3194  ;;  %v2002_v4 = vsel %vm2001_vm2, %v3191_v49, %v1998_v55  ;;  %vm2014_vm5 = vweird.f32 %v4162_v45  ;;  %vm2019_vm7 = vcmp.eq.f32.partialorder %v2018_v43, 8.507059e+37 }
 0x295   : > { %3198 = vrcp.f32 %v4183_v34  ;;  %v1882_v7 = vrot.slane %v1881_v54, 2  ;;  %v1797_v52 = vsub.f32 %v4147_v12, %v1739_v42  ;;  %v1743_v13 = vrot.slane %v1742_v48, 2 }
 0x296   : > { %v2007_v53 = vsel %vm2004_vm3, %v2006_v14, %v2002_v4  ;;  %v2010_v61 = vmul.f32 %v3195_v6, %v4162_v45  ;;  %vm2015_vm4 = vweird.f32 %v3195_v6  ;;  %v2021_v42 = vor.u32 1.1754944e-38, %v2020_v32 }
 0x297   : > { %v1883_v50 = vadd.f32 %v1882_v7, %v1881_v54  ;;  %v1821_v26 = vmul.f32 1.442695, %v1797_v52  ;;  %v1744_v59 = vmax.f32 %v1742_v48, %v1743_v13  ;;  %v4191_v24 = vpop.f32.mrf.mxu2  ;;  %v2008_v49 = vmul.f32 %v4110_v51, %v2007_v53  ;;  %vm2016_vm6 = vmor %vm2014_vm5, %vm2015_vm4 }
 0x298   : > { %v4194_v30 = vpop.eup %3196  ;;  %v1747_v21 = vsel %vm1676_vm15, %v4191_v24, -inf  ;;  %v2011_v12 = vsub.f32 1.0, %v2010_v61  ;;  %v2033_v53 = vand.u32 2147483647, %v4183_v34  ;;  %v2035_v61 = vand.u32 2147483648, %v4183_v34 }
 0x299   : > { %v1884_v39 = vrot.slane %v1883_v50, 1  ;;  %v1886_v35 = vsel %vm1676_vm15, %v4194_v30, 0.0  ;;  %3200 = vpow2.f32 %v1821_v26  ;;  %v1745_v2 = vrot.slane %v1744_v59, 1  ;;  %2991 = vmatmul.msk.f32.gmra.mxu3 %vm1676_vm15, %v2008_v49 }
 0x29a   : > { %v1887_v28 = vrot.slane %v1886_v35, 4  ;;  %v1748_v51 = vrot.slane %v1747_v21, 4  ;;  %v2012_v63 = vmul.f32 %v3195_v6, %v2011_v12  ;;  %vm2029_vm9 = vweird.f32 %v4183_v34 }
 0x29b   : > { %v3199_v44 = vpop.eup %3198  ;;  %v4203_v17 = vadd.f32 %v1884_v39, %v1883_v50  ;;  %v1746_v25 = vmax.f32 %v1744_v59, %v1745_v2  ;;  %vm2034_vm11 = vcmp.eq.f32.partialorder %v2033_v53, 8.507059e+37 }
 0x29c   : > { %v1888_v41 = vadd.f32 %v1887_v28, %v1886_v35  ;;  %v1749_v0 = vmax.f32 %v1747_v21, %v1748_v51  ;;  %v2013_v46 = vadd.f32 %v3195_v6, %v2012_v63  ;;  %v2025_v55 = vmul.f32 %v3199_v44, %v4183_v34 }
 0x29d   : > { %3202 = vrcp.f32 %v4203_v17  ;;  %v1798_v54 = vsub.f32 %v4174_v40, %v1746_v25  ;;  %vm2030_vm8 = vweird.f32 %v3199_v44  ;;  %vm2044_vm13 = vweird.f32 %v4203_v17 }
 0x29e   : > { %v1889_v48 = vrot.slane %v1888_v41, 2  ;;  %v1750_v4 = vrot.slane %v1749_v0, 2  ;;  %v2017_v14 = vsel %vm2016_vm6, %v3195_v6, %v2013_v46  ;;  %v2026_v7 = vsub.f32 1.0, %v2025_v55  ;;  %vm2031_vm10 = vmor %vm2029_vm9, %vm2030_vm8 }
 0x29f   : > { %v4209_v52 = vpop.eup %3200  ;;  %v1823_v13 = vmul.f32 1.442695, %v1798_v54  ;;  %v4211_v45 = vpop.f32.mrf.mxu2  ;;  %v2022_v62 = vsel %vm2019_vm7, %v2021_v42, %v2017_v14 }
 0x2a0   : > { %v1890_v50 = vadd.f32 %v1889_v48, %v1888_v41  ;;  %v1893_v40 = vsel %vm1676_vm15, %v4209_v52, 0.0  ;;  %v1751_v26 = vmax.f32 %v1749_v0, %v1750_v4  ;;  %v1754_v59 = vsel %vm1676_vm15, %v4211_v45, -inf }
 0x2a1   : > { %v1894_v6 = vrot.slane %v1893_v40, 4  ;;  %3204 = vpow2.f32 %v1823_v13  ;;  %v1755_v49 = vrot.slane %v1754_v59, 4  ;;  %v2023_v21 = vmul.f32 %v4128_v23, %v2022_v62 }
 0x2a2   : > { %v1891_v12 = vrot.slane %v1890_v50, 1  ;;  %v1752_v43 = vrot.slane %v1751_v26, 1  ;;  %v2027_v32 = vmul.f32 %v3199_v44, %v2026_v7  ;;  %v2036_v23 = vor.u32 1.1754944e-38, %v2035_v61 }
 0x2a3   : > { %v3203_v39 = vpop.eup %3202  ;;  %v1895_v35 = vadd.f32 %v1894_v6, %v1893_v40  ;;  %v1756_v2 = vmax.f32 %v1754_v59, %v1755_v49  ;;  %2992 = vmatmul.msk.f32.gmra.mxu3 %vm1676_vm15, %v2023_v21  ;;  %v2050_v7 = vand.u32 2147483648, %v4203_v17  ;;  %v2048_v59 = vand.u32 2147483647, %v4203_v17 }
 0x2a4   : > { %v4222_v28 = vadd.f32 %v1891_v12, %v1890_v50  ;;  %v1753_v51 = vmax.f32 %v1751_v26, %v1752_v43  ;;  %v2028_v63 = vadd.f32 %v3199_v44, %v2027_v32  ;;  %v2040_v25 = vmul.f32 %v3203_v39, %v4203_v17 }
 0x2a5   : > { %v1896_v41 = vrot.slane %v1895_v35, 2  ;;  %v1757_v0 = vrot.slane %v1756_v2, 2  ;;  %vm2045_vm12 = vweird.f32 %v3203_v39  ;;  %vm2049_vm2 = vcmp.eq.f32.partialorder %v2048_v59, 8.507059e+37 }
 0x2a6   : > { %3206 = vrcp.f32 %v4222_v28  ;;  %v1799_v46 = vsub.f32 %v4191_v24, %v1753_v51  ;;  %v2032_v55 = vsel %vm2031_vm10, %v3199_v44, %v2028_v63  ;;  %v2041_v54 = vsub.f32 1.0, %v2040_v25  ;;  %vm2046_vm1 = vmor %vm2044_vm13, %vm2045_vm12 }
 0x2a7   : > { %v4227_v42 = vpop.eup %3204  ;;  %v1897_v34 = vadd.f32 %v1896_v41, %v1895_v35  ;;  %v1758_v48 = vmax.f32 %v1756_v2, %v1757_v0  ;;  %v4229_v4 = vpop.f32.mrf.mxu2  ;;  %v2037_v14 = vsel %vm2034_vm11, %v2036_v23, %v2032_v55  ;;  %v2063_v41 = vand.u32 2147483647, %v4222_v28 }
 0x2a8   : > { %v1900_v13 = vsel %vm1676_vm15, %v4227_v42, 0.0  ;;  %v1825_v62 = vmul.f32 1.442695, %v1799_v46  ;;  %v1761_v53 = vsel %vm1676_vm15, %v4229_v4, -inf  ;;  %v2038_v24 = vmul.f32 %v4145_v57, %v2037_v14 }
 0x2a9   : > { %v1898_v44 = vrot.slane %v1897_v34, 1  ;;  %v1901_v61 = vrot.slane %v1900_v13, 4  ;;  %v1759_v50 = vrot.slane %v1758_v48, 1  ;;  %v1762_v40 = vrot.slane %v1761_v53, 4 }
 0x2aa   : > { %3208 = vpow2.f32 %v1825_v62  ;;  %v2042_v26 = vmul.f32 %v3203_v39, %v2041_v54  ;;  %v2051_v57 = vor.u32 1.1754944e-38, %v2050_v7  ;;  %vm2059_vm4 = vweird.f32 %v4222_v28 }
 0x2ab   : > { %v4238_v6 = vadd.f32 %v1898_v44, %v1897_v34  ;;  %v1902_v49 = vadd.f32 %v1901_v61, %v1900_v13  ;;  %v1760_v21 = vmax.f32 %v1758_v48, %v1759_v50  ;;  %v1763_v12 = vmax.f32 %v1761_v53, %v1762_v40  ;;  %2993 = vmatmul.msk.f32.gmra.mxu3 %vm1676_vm15, %v2038_v24 }
 0x2ac   : > { %v3207_v43 = vpop.eup %3206  ;;  %v2043_v32 = vadd.f32 %v3203_v39, %v2042_v26  ;;  %vm2064_vm6 = vcmp.eq.f32.partialorder %v2063_v41, 8.507059e+37 }
 0x2ad   : > { %3210 = vrcp.f32 %v4238_v6  ;;  %v1903_v35 = vrot.slane %v1902_v49, 2  ;;  %v1800_v2 = vsub.f32 %v4211_v45, %v1760_v21  ;;  %v1764_v51 = vrot.slane %v1763_v12, 2 }
 0x2ae   : > { %v2047_v63 = vsel %vm2046_vm1, %v3203_v39, %v2043_v32  ;;  %v2055_v25 = vmul.f32 %v3207_v43, %v4222_v28  ;;  %v2065_v39 = vand.u32 2147483648, %v4222_v28  ;;  %vm2060_vm3 = vweird.f32 %v3207_v43 }
 0x2af   : > { %v1904_v0 = vadd.f32 %v1903_v35, %v1902_v49  ;;  %v1827_v23 = vmul.f32 1.442695, %v1800_v2  ;;  %v1765_v46 = vmax.f32 %v1763_v12, %v1764_v51  ;;  %v4247_v55 = vpop.f32.mrf.mxu2  ;;  %v2052_v17 = vsel %vm2049_vm2, %v2051_v57, %v2047_v63  ;;  %vm2061_vm5 = vmor %vm2059_vm4, %vm2060_vm3 }
 0x2b0   : > { %v4249_v54 = vpop.eup %3208  ;;  %v1768_v45 = vsel %vm1676_vm15, %v4247_v55, -inf  ;;  %v2053_v34 = vmul.f32 %v4172_v33, %v2052_v17  ;;  %v2056_v48 = vsub.f32 1.0, %v2055_v25  ;;  %v2066_v21 = vor.u32 1.1754944e-38, %v2065_v39 }
 0x2b1   : > { %v1905_v14 = vrot.slane %v1904_v0, 1  ;;  %v1907_v7 = vsel %vm1676_vm15, %v4249_v54, 0.0  ;;  %3212 = vpow2.f32 %v1827_v23  ;;  %v1766_v13 = vrot.slane %v1765_v46, 1 }
 0x2b2   : > { %v1908_v62 = vrot.slane %v1907_v7, 4  ;;  %v1769_v53 = vrot.slane %v1768_v45, 4  ;;  %v2057_v24 = vmul.f32 %v3207_v43, %v2056_v48  ;;  %v2078_v25 = vand.u32 2147483647, %v4238_v6 }
 0x2b3   : > { %v3211_v44 = vpop.eup %3210  ;;  %v4257_v61 = vadd.f32 %v1905_v14, %v1904_v0  ;;  %v1767_v50 = vmax.f32 %v1765_v46, %v1766_v13  ;;  %2994 = vmatmul.msk.f32.gmra.mxu3 %vm1676_vm15, %v2053_v34  ;;  %v2080_v0 = vand.u32 2147483648, %v4238_v6  ;;  %vm2074_vm8 = vweird.f32 %v4238_v6 }
 0x2b4   : > { %v1909_v33 = vadd.f32 %v1908_v62, %v1907_v7  ;;  %v1770_v40 = vmax.f32 %v1768_v45, %v1769_v53  ;;  %v2058_v26 = vadd.f32 %v3207_v43, %v2057_v24  ;;  %v2070_v59 = vmul.f32 %v3211_v44, %v4238_v6 }
 0x2b5   : > { %3214 = vrcp.f32 %v4257_v61  ;;  %v1801_v49 = vsub.f32 %v4229_v4, %v1767_v50  ;;  %vm2075_vm7 = vweird.f32 %v3211_v44  ;;  %vm2079_vm10 = vcmp.eq.f32.partialorder %v2078_v25, 8.507059e+37 }
 0x2b6   : > { %v1910_v12 = vrot.slane %v1909_v33, 2  ;;  %v1771_v32 = vrot.slane %v1770_v40, 2  ;;  %v2062_v57 = vsel %vm2061_vm5, %v3207_v43, %v2058_v26  ;;  %v2071_v35 = vsub.f32 1.0, %v2070_v59  ;;  %vm2076_vm9 = vmor %vm2074_vm8, %vm2075_vm7 }
 0x2b7   : > { %v4264_v2 = vpop.eup %3212  ;;  %v1829_v51 = vmul.f32 1.442695, %v1801_v49  ;;  %v4266_v28 = vpop.f32.mrf.mxu2  ;;  %v2067_v63 = vsel %vm2064_vm6, %v2066_v21, %v2062_v57  ;;  %vm2089_vm12 = vweird.f32 %v4257_v61 }
 0x2b8   : > { %v1911_v23 = vadd.f32 %v1910_v12, %v1909_v33  ;;  %v1914_v4 = vsel %vm1676_vm15, %v4264_v2, 0.0  ;;  %v1772_v41 = vmax.f32 %v1770_v40, %v1771_v32  ;;  %v1775_v46 = vsel %vm1676_vm15, %v4266_v28, -inf }
 0x2b9   : > { %v1915_v43 = vrot.slane %v1914_v4, 4  ;;  %3216 = vpow2.f32 %v1829_v51  ;;  %v1776_v17 = vrot.slane %v1775_v46, 4  ;;  %v2068_v45 = vmul.f32 %v4194_v30, %v2067_v63 }
 0x2ba   : > { %v1912_v34 = vrot.slane %v1911_v23, 1  ;;  %v1773_v48 = vrot.slane %v1772_v41, 1  ;;  %v2072_v39 = vmul.f32 %v3211_v44, %v2071_v35  ;;  %v2081_v30 = vor.u32 1.1754944e-38, %v2080_v0 }
 0x2bb   : > { %v3215_v14 = vpop.eup %3214  ;;  %v1916_v7 = vadd.f32 %v1915_v43, %v1914_v4  ;;  %v1777_v13 = vmax.f32 %v1775_v46, %v1776_v17  ;;  %2995 = vmatmul.msk.f32.gmra.mxu3 %vm1676_vm15, %v2068_v45  ;;  %v2095_v35 = vand.u32 2147483648, %v4257_v61  ;;  %v2093_v46 = vand.u32 2147483647, %v4257_v61 }
 0x2bc   : > { %v4277_v62 = vadd.f32 %v1912_v34, %v1911_v23  ;;  %v1774_v53 = vmax.f32 %v1772_v41, %v1773_v48  ;;  %v2073_v24 = vadd.f32 %v3211_v44, %v2072_v39  ;;  %v2085_v50 = vmul.f32 %v3215_v14, %v4257_v61 }
 0x2bd   : > { %v1917_v33 = vrot.slane %v1916_v7, 2  ;;  %v1778_v40 = vrot.slane %v1777_v13, 2  ;;  %vm2090_vm11 = vweird.f32 %v3215_v14  ;;  %vm2094_vm1 = vcmp.eq.f32.partialorder %v2093_v46, 8.507059e+37 }
 0x2be   : > { %3218 = vrcp.f32 %v4277_v62  ;;  %v1802_v26 = vsub.f32 %v4247_v55, %v1774_v53  ;;  %v2077_v59 = vsel %vm2076_vm9, %v3211_v44, %v2073_v24  ;;  %v2086_v49 = vsub.f32 1.0, %v2085_v50  ;;  %vm2091_vm13 = vmor %vm2089_vm12, %vm2090_vm11 }
 0x2bf   : > { %v4282_v21 = vpop.eup %3216  ;;  %v1918_v6 = vadd.f32 %v1917_v33, %v1916_v7  ;;  %v1779_v12 = vmax.f32 %v1777_v13, %v1778_v40  ;;  %v4284_v32 = vpop.f32.mrf.mxu2  ;;  %v2082_v57 = vsel %vm2079_vm10, %v2081_v30, %v2077_v59  ;;  %vm2104_vm3 = vweird.f32 %v4277_v62 }
 0x2c0   : > { %v1921_v51 = vsel %vm1676_vm15, %v4282_v21, 0.0  ;;  %v1831_v63 = vmul.f32 1.442695, %v1802_v26  ;;  %v1782_v25 = vsel %vm1676_vm15, %v4284_v32, -inf  ;;  %v2083_v55 = vmul.f32 %v4209_v52, %v2082_v57 }
 0x2c1   : > { %v1919_v44 = vrot.slane %v1918_v6, 1  ;;  %v1922_v0 = vrot.slane %v1921_v51, 4  ;;  %v1780_v23 = vrot.slane %v1779_v12, 1  ;;  %v1783_v4 = vrot.slane %v1782_v25, 4 }
 0x2c2   : > { %3220 = vpow2.f32 %v1831_v63  ;;  %v2087_v41 = vmul.f32 %v3215_v14, %v2086_v49  ;;  %v2096_v52 = vor.u32 1.1754944e-38, %v2095_v35 }
 0x2c3   : > { %v4293_v43 = vadd.f32 %v1919_v44, %v1918_v6  ;;  %v1923_v17 = vadd.f32 %v1922_v0, %v1921_v51  ;;  %v1781_v45 = vmax.f32 %v1779_v12, %v1780_v23  ;;  %v1784_v34 = vmax.f32 %v1782_v25, %v1783_v4  ;;  %2996 = vmatmul.msk.f32.gmra.mxu3 %vm1676_vm15, %v2083_v55 }
 0x2c4   : > { %v3219_v48 = vpop.eup %3218  ;;  %v2088_v39 = vadd.f32 %v3215_v14, %v2087_v41  ;;  %v2108_v6 = vand.u32 2147483647, %v4277_v62 }
 0x2c5   : > { %3222 = vrcp.f32 %v4293_v43  ;;  %v1924_v7 = vrot.slane %v1923_v17, 2  ;;  %v1803_v13 = vsub.f32 %v4266_v28, %v1781_v45  ;;  %v1785_v53 = vrot.slane %v1784_v34, 2 }
 0x2c6   : > { %v2092_v24 = vsel %vm2091_vm13, %v3215_v14, %v2088_v39  ;;  %v2100_v50 = vmul.f32 %v3219_v48, %v4277_v62  ;;  %v2110_v28 = vand.u32 2147483648, %v4277_v62  ;;  %vm2105_vm2 = vweird.f32 %v3219_v48 }
 0x2c7   : > { %v1925_v33 = vadd.f32 %v1924_v7, %v1923_v17  ;;  %v1833_v40 = vmul.f32 1.442695, %v1803_v13  ;;  %v1786_v30 = vmax.f32 %v1784_v34, %v1785_v53  ;;  %v2097_v26 = vsel %vm2094_vm1, %v2096_v52, %v2092_v24  ;;  %vm2106_vm4 = vmor %vm2104_vm3, %vm2105_vm2 }
 0x2c8   : > { %v4301_v59 = vpop.eup %3220  ;;  %v2098_v61 = vmul.f32 %v4227_v42, %v2097_v26  ;;  %v2101_v49 = vsub.f32 1.0, %v2100_v50  ;;  %vm2109_vm5 = vcmp.eq.f32.partialorder %v2108_v6, 8.507059e+37  ;;  %v2111_v4 = vor.u32 1.1754944e-38, %v2110_v28 }
 0x2c9   : > { %v1926_v12 = vrot.slane %v1925_v33, 1  ;;  %v1928_v14 = vsel %vm1676_vm15, %v4301_v59, 0.0  ;;  %3224 = vpow2.f32 %v1833_v40  ;;  %v1787_v57 = vrot.slane %v1786_v30, 1 }
 0x2ca   : > { %v1929_v35 = vrot.slane %v1928_v14, 4  ;;  %v2102_v51 = vmul.f32 %v3219_v48, %v2101_v49  ;;  %v2123_v45 = vand.u32 2147483647, %v4293_v43  ;;  %v2125_v62 = vand.u32 2147483648, %v4293_v43 }
 0x2cb   : > { %v3223_v63 = vpop.eup %3222  ;;  %v4308_v25 = vadd.f32 %v1926_v12, %v1925_v33  ;;  %v1788_v55 = vmax.f32 %v1786_v30, %v1787_v57  ;;  %2997 = vmatmul.msk.f32.gmra.mxu3 %vm1676_vm15, %v2098_v61  ;;  %vm2119_vm7 = vweird.f32 %v4293_v43 }
 0x2cc   : > { %v1930_v42 = vadd.f32 %v1929_v35, %v1928_v14  ;;  %v2103_v44 = vadd.f32 %v3219_v48, %v2102_v51  ;;  %v2115_v0 = vmul.f32 %v3223_v63, %v4293_v43  ;;  %vm2120_vm6 = vweird.f32 %v3223_v63 }
 0x2cd   : > { %3226 = vrcp.f32 %v4308_v25  ;;  %v1804_v23 = vsub.f32 %v4284_v32, %v1788_v55  ;;  %vm2121_vm8 = vmor %vm2119_vm7, %vm2120_vm6  ;;  %v2126_v30 = vor.u32 1.1754944e-38, %v2125_v62  ;;  %vm2124_vm9 = vcmp.eq.f32.partialorder %v2123_v45, 8.507059e+37 }
 0x2ce   : > { %v1931_v41 = vrot.slane %v1930_v42, 2  ;;  %v2107_v46 = vsel %vm2106_vm4, %v3219_v48, %v2103_v44  ;;  %v2116_v17 = vsub.f32 1.0, %v2115_v0  ;;  %v2140_v57 = vand.u32 2147483648, %v4308_v25 }
 0x2cf   : > { %v4316_v34 = vpop.eup %3224  ;;  %v1835_v39 = vmul.f32 1.442695, %v1804_v23  ;;  %v2112_v52 = vsel %vm2109_vm5, %v2111_v4, %v2107_v46  ;;  %vm2134_vm11 = vweird.f32 %v4308_v25 }
 0x2d0   : > { %v1932_v7 = vadd.f32 %v1931_v41, %v1930_v42  ;;  %v1935_v13 = vsel %vm1676_vm15, %v4316_v34, 0.0  ;;  %v2113_v32 = vmul.f32 %v4249_v54, %v2112_v52  ;;  %v2117_v53 = vmul.f32 %v3223_v63, %v2116_v17 }
 0x2d1   : > { %v1936_v24 = vrot.slane %v1935_v13, 4  ;;  %3228 = vpow2.f32 %v1835_v39 }
 0x2d2   : > { %v1933_v48 = vrot.slane %v1932_v7, 1  ;;  %v2118_v50 = vadd.f32 %v3223_v63, %v2117_v53 }
 0x2d3   : > { %v3227_v33 = vpop.eup %3226  ;;  %v1937_v40 = vadd.f32 %v1936_v24, %v1935_v13  ;;  %2998 = vmatmul.msk.f32.gmra.mxu3 %vm1676_vm15, %v2113_v32 }
 0x2d4   : > { %v1934_v26 = vadd.f32 %v1933_v48, %v1932_v7  ;;  %v2122_v61 = vsel %vm2121_vm8, %v3223_v63, %v2118_v50  ;;  %v2130_v49 = vmul.f32 %v3227_v33, %v4308_v25  ;;  %vm2135_vm10 = vweird.f32 %v3227_v33 }
 0x2d5   : > { %v1938_v6 = vrot.slane %v1937_v40, 2  ;;  %v2127_v54 = vsel %vm2124_vm9, %v2126_v30, %v2122_v61  ;;  %v2138_v63 = vand.u32 2147483647, %v4308_v25  ;;  %vm2136_vm12 = vmor %vm2134_vm11, %vm2135_vm10 }
 0x2d6   : > { %3230 = vrcp.f32 %v1934_v26  ;;  %v2131_v28 = vsub.f32 1.0, %v2130_v49  ;;  %v2128_v43 = vmul.f32 %v4264_v2, %v2127_v54  ;;  %v2141_v2 = vor.u32 1.1754944e-38, %v2140_v57 }
 0x2d7   : > { %v4325_v12 = vpop.eup %3228  ;;  %v1939_v14 = vadd.f32 %v1938_v6, %v1937_v40  ;;  %vm2139_vm13 = vcmp.eq.f32.partialorder %v2138_v63, 8.507059e+37  ;;  %v2155_v7 = vand.u32 2147483648, %v1934_v26  ;;  %v2153_v32 = vand.u32 2147483647, %v1934_v26 }
 0x2d8   : > { %v1942_v35 = vsel %vm1676_vm15, %v4325_v12, 0.0  ;;  %v2132_v51 = vmul.f32 %v3227_v33, %v2131_v28  ;;  %vm2149_vm2 = vweird.f32 %v1934_v26 }
 0x2d9   : > { %v1940_v55 = vrot.slane %v1939_v14, 1  ;;  %v1943_v42 = vrot.slane %v1942_v35, 4  ;;  %v2156_v50 = vor.u32 1.1754944e-38, %v2155_v7  ;;  %vm2154_vm4 = vcmp.eq.f32.partialorder %v2153_v32, 8.507059e+37 }
 0x2da   : > { %v2133_v44 = vadd.f32 %v3227_v33, %v2132_v51 }
 0x2db   : > { %v1941_v0 = vadd.f32 %v1940_v55, %v1939_v14  ;;  %v1944_v23 = vadd.f32 %v1943_v42, %v1942_v35  ;;  %2999 = vmatmul.msk.f32.gmra.mxu3 %vm1676_vm15, %v2128_v43 }
 0x2dc   : > { %v3231_v4 = vpop.eup %3230  ;;  %v2137_v41 = vsel %vm2136_vm12, %v3227_v33, %v2133_v44 }
 0x2dd   : > { %3232 = vrcp.f32 %v1941_v0  ;;  %v1945_v46 = vrot.slane %v1944_v23, 2  ;;  %v2142_v17 = vsel %vm2139_vm13, %v2141_v2, %v2137_v41  ;;  %v2145_v45 = vmul.f32 %v3231_v4, %v1934_v26 }
 0x2de   : > { %v2143_v52 = vmul.f32 %v4282_v21, %v2142_v17  ;;  %vm2150_vm1 = vweird.f32 %v3231_v4  ;;  %v2170_v49 = vand.u32 2147483648, %v1941_v0  ;;  %v2168_v54 = vand.u32 2147483647, %v1941_v0 }
 0x2df   : > { %v1946_v39 = vadd.f32 %v1945_v46, %v1944_v23  ;;  %v2146_v62 = vsub.f32 1.0, %v2145_v45  ;;  %vm2151_vm3 = vmor %vm2149_vm2, %vm2150_vm1  ;;  %vm2164_vm6 = vweird.f32 %v1941_v0  ;;  %vm2485_vm13 = vcmask 1042434  }
 0x2e0   : > { %v2171_v26 = vor.u32 1.1754944e-38, %v2170_v49  ;;  %vm2169_vm8 = vcmp.eq.f32.partialorder %v2168_v54, 8.507059e+37  ;;  %vm2487_vm1 = vcmask 1043459   ;;  %vm2489_vm2 = vcmask 1044484  }
 0x2e1   : > { %v1947_v13 = vrot.slane %v1946_v39, 1  ;;  %v2147_v25 = vmul.f32 %v3231_v4, %v2146_v62 }
 0x2e3   : > { %v3233_v53 = vpop.eup %3232  ;;  %v1948_v24 = vadd.f32 %v1947_v13, %v1946_v39  ;;  %3000 = vmatmul.msk.f32.gmra.mxu3 %vm1676_vm15, %v2143_v52  ;;  %v2148_v48 = vadd.f32 %v3231_v4, %v2147_v25 }
 0x2e4   : > { %v2160_v33 = vmul.f32 %v3233_v53, %v1941_v0  ;;  %vm2165_vm5 = vweird.f32 %v3233_v53 }
 0x2e5   : > { %3234 = vrcp.f32 %v1948_v24  ;;  %v2152_v40 = vsel %vm2151_vm3, %v3231_v4, %v2148_v48  ;;  %vm2166_vm7 = vmor %vm2164_vm6, %vm2165_vm5  ;;  %v2185_v55 = vand.u32 2147483648, %v1948_v24  ;;  %v2183_v42 = vand.u32 2147483647, %v1948_v24 }
 0x2e6   : > { %v2157_v30 = vsel %vm2154_vm4, %v2156_v50, %v2152_v40  ;;  %v2161_v21 = vsub.f32 1.0, %v2160_v33  ;;  %vm2179_vm10 = vweird.f32 %v1948_v24  ;;  %vm2491_vm3 = vcmask 1045509  }
 0x2e7   : > { %v2158_v61 = vmul.f32 %v4301_v59, %v2157_v30  ;;  %v2186_v0 = vor.u32 1.1754944e-38, %v2185_v55  ;;  %vm2184_vm12 = vcmp.eq.f32.partialorder %v2183_v42, 8.507059e+37  ;;  %vm2493_vm4 = vcmask 1046534  }
 0x2e8   : > { %v2162_v6 = vmul.f32 %v3233_v53, %v2161_v21  ;;  %vm2495_vm5 = vcmask 1047559  }
 0x2ea   : > { %v2163_v28 = vadd.f32 %v3233_v53, %v2162_v6 }
 0x2eb   : > { %v3235_v14 = vpop.eup %3234  ;;  %3001 = vmatmul.msk.f32.gmra.mxu3 %vm1676_vm15, %v2158_v61 }
 0x2ec   : > { %v2167_v43 = vsel %vm2166_vm7, %v3233_v53, %v2163_v28  ;;  %v2175_v57 = vmul.f32 %v3235_v14, %v1948_v24  ;;  %vm2180_vm9 = vweird.f32 %v3235_v14 }
 0x2ed   : > { %v2172_v35 = vsel %vm2169_vm8, %v2171_v26, %v2167_v43  ;;  %vm2181_vm11 = vmor %vm2179_vm10, %vm2180_vm9 }
 0x2ee   : > { %v2176_v51 = vsub.f32 1.0, %v2175_v57  ;;  %v2173_v63 = vmul.f32 %v4316_v34, %v2172_v35 }
 0x2f0   : > { %v2177_v59 = vmul.f32 %v3235_v14, %v2176_v51 }
 0x2f2   : > { %v2178_v44 = vadd.f32 %v3235_v14, %v2177_v59 }
 0x2f3   : > { %3002 = vmatmul.msk.f32.gmra.mxu3 %vm1676_vm15, %v2173_v63 }
 0x2f4   : > { %v2182_v23 = vsel %vm2181_vm11, %v3235_v14, %v2178_v44 }
 0x2f5   : > { %v2187_v2 = vsel %vm2184_vm12, %v2186_v0, %v2182_v23 }
 0x2f6   : > { %v2188_v4 = vmul.f32 %v4325_v12, %v2187_v2 }
 0x2fb   : > { %3003 = vmatmul.msk.f32.gmra.mxu3 %vm1676_vm15, %v2188_v4  ;;  %vm2483_vm15 = vcmask 1041409  }
 0x304   : > { %v2255_v41 = vpop.f32.mrf.mxu3 }
 0x305   : > { %v2303_v34 = vmul.f32 %v2255_v41, %v3914_v56 }
 0x307   : > { %v2319_v46 = vrot.slane %v2303_v34, 4 }
 0x309   : > { %v2320_v17 = vadd.f32 %v2319_v46, %v2303_v34 }
 0x30b   : > { %v2321_v45 = vrot.slane %v2320_v17, 2 }
 0x30c   : > { %v2258_v39 = vpop.f32.mrf.mxu3 }
 0x30d   : > { %v2322_v52 = vadd.f32 %v2321_v45, %v2320_v17  ;;  %v2304_v62 = vmul.f32 %v2258_v39, %v3881_v1 }
 0x30f   : > { %v2325_v7 = vrot.slane %v2304_v62, 4  ;;  %v2323_v13 = vrot.slane %v2322_v52, 1 }
 0x311   : > { %v2326_v25 = vadd.f32 %v2325_v7, %v2304_v62  ;;  %v2324_v24 = vadd.f32 %v2323_v13, %v2322_v52 }
 0x313   : > { %v2327_v32 = vrot.slane %v2326_v25, 2  ;;  %v2415_v40 = vpack.c.bf16 %v2324_v24, %v2324_v24 }
 0x314   : > { %v2261_v53 = vpop.f32.mrf.mxu3 }
 0x315   : > { %v2328_v48 = vadd.f32 %v2327_v32, %v2326_v25  ;;  %v2305_v12 = vmul.f32 %v2261_v53, %v3909_v9  ;;  %v2467_v6 = vunpack.c.l.b16 %v2415_v40 }
 0x317   : > { %v2329_v50 = vrot.slane %v2328_v48, 1  ;;  %v2331_v33 = vrot.slane %v2305_v12, 4 }
 0x319   : > { %v2330_v56 = vadd.f32 %v2329_v50, %v2328_v48  ;;  %v2332_v30 = vadd.f32 %v2331_v33, %v2305_v12 }
 0x31b   : > { %v2416_v21 = vpack.c.bf16 %v2330_v56, %v2330_v56  ;;  %v2333_v61 = vrot.slane %v2332_v30, 2 }
 0x31c   : > { %v2264_v49 = vpop.f32.mrf.mxu3 }
 0x31d   : > { %v2468_v1 = vunpack.c.l.b16 %v2416_v21  ;;  %v2334_v54 = vadd.f32 %v2333_v61, %v2332_v30  ;;  %v2306_v28 = vmul.f32 %v2264_v49, %v3942_v16 }
 0x31f   : > { %v2484_v14 = vsel %vm2483_vm15, %v2468_v1, %v2467_v6  ;;  %v2335_v26 = vrot.slane %v2334_v54, 1  ;;  %v2337_v43 = vrot.slane %v2306_v28, 4 }
 0x321   : > { %v2336_v57 = vadd.f32 %v2335_v26, %v2334_v54  ;;  %v2338_v9 = vadd.f32 %v2337_v43, %v2306_v28 }
 0x323   : > { %v2417_v35 = vpack.c.bf16 %v2336_v57, %v2336_v57  ;;  %v2339_v51 = vrot.slane %v2338_v9, 2 }
 0x325   : > { %v2469_v63 = vunpack.c.l.b16 %v2417_v35  ;;  %v2340_v55 = vadd.f32 %v2339_v51, %v2338_v9 }
 0x326   : > { %v2267_v59 = vpop.f32.mrf.mxu3 }
 0x327   : > { %v2486_v42 = vsel %vm2485_vm13, %v2469_v63, %v2484_v14  ;;  %v2341_v44 = vrot.slane %v2340_v55, 1  ;;  %v2307_v0 = vmul.f32 %v2267_v59, %v3932_v15 }
 0x329   : > { %v2342_v23 = vadd.f32 %v2341_v44, %v2340_v55  ;;  %v2343_v2 = vrot.slane %v2307_v0, 4 }
 0x32b   : > { %v2418_v16 = vpack.c.bf16 %v2342_v23, %v2342_v23  ;;  %v2344_v4 = vadd.f32 %v2343_v2, %v2307_v0  ;;  %v3090_v2 = vld [vmem:[%s4528_s10 + $0x38] sm:$0xff] }
 0x32c   : > { %2554 = vmatpush.bf16.msrb.mxu1 %v3090_v2 }
 0x32d   : > { %v2470_v41 = vunpack.c.l.b16 %v2418_v16  ;;  %v2345_v34 = vrot.slane %v2344_v4, 2  ;;  %v3089_v16 = vld [vmem:[%s4528_s10 + $0x30] sm:$0xff] }
 0x32e   : > { %v2270_v46 = vpop.f32.mrf.mxu3 }
 0x32f   : > { %v2488_v17 = vsel %vm2487_vm1, %v2470_v41, %v2486_v42  ;;  %v2346_v45 = vadd.f32 %v2345_v34, %v2344_v4  ;;  %v2308_v39 = vmul.f32 %v2270_v46, %v3968_v29  ;;  %v3088_v34 = vld [vmem:[%s4528_s10 + $0x28] sm:$0xff] }
 0x330   : > { %2555 = vmatpush.bf16.msrb.mxu1 %v3089_v16 }
 0x331   : > { %v2347_v52 = vrot.slane %v2346_v45, 1  ;;  %v2349_v62 = vrot.slane %v2308_v39, 4 }
 0x333   : > { %v2348_v7 = vadd.f32 %v2347_v52, %v2346_v45  ;;  %v2350_v13 = vadd.f32 %v2349_v62, %v2308_v39  ;;  %v3087_v62 = vld [vmem:[%s4528_s10 + $0x20] sm:$0xff] }
 0x334   : > { %2556 = vmatpush.bf16.msrb.mxu1 %v3088_v34 }
 0x335   : > { %v2419_v25 = vpack.c.bf16 %v2348_v7, %v2348_v7  ;;  %v2351_v32 = vrot.slane %v2350_v13, 2 }
 0x336   : > { %v2273_v15 = vpop.f32.mrf.mxu3 }
 0x337   : > { %v2471_v53 = vunpack.c.l.b16 %v2419_v25  ;;  %v2352_v24 = vadd.f32 %v2351_v32, %v2350_v13  ;;  %v2309_v48 = vmul.f32 %v2273_v15, %v3953_v19 }
 0x338   : > { %2557 = vmatpush.bf16.msrb.mxu1 %v3087_v62 }
 0x339   : > { %v2353_v12 = vrot.slane %v2352_v24, 1  ;;  %v2355_v50 = vrot.slane %v2309_v48, 4  ;;  %v2490_v33 = vsel %vm2489_vm2, %v2471_v53, %v2488_v17 }
 0x33b   : > { %v2354_v40 = vadd.f32 %v2353_v12, %v2352_v24  ;;  %v2356_v56 = vadd.f32 %v2355_v50, %v2309_v48  ;;  %v3085_v48 = vld [vmem:[%s4528_s10 + $0x10] sm:$0xff] }
 0x33d   : > { %v2420_v30 = vpack.c.bf16 %v2354_v40, %v2354_v40  ;;  %v2357_v29 = vrot.slane %v2356_v56, 2 }
 0x33e   : > { %v2276_v21 = vpop.f32.mrf.mxu3 }
 0x33f   : > { %v2472_v61 = vunpack.c.l.b16 %v2420_v30  ;;  %v2358_v49 = vadd.f32 %v2357_v29, %v2356_v56  ;;  %v2310_v6 = vmul.f32 %v2276_v21, %v3956_v20 }
 0x341   : > { %v2359_v1 = vrot.slane %v2358_v49, 1  ;;  %v2361_v54 = vrot.slane %v2310_v6, 4  ;;  %v2492_v28 = vsel %vm2491_vm3, %v2472_v61, %v2490_v33 }
 0x343   : > { %v2360_v14 = vadd.f32 %v2359_v1, %v2358_v49  ;;  %v2362_v19 = vadd.f32 %v2361_v54, %v2310_v6 }
 0x345   : > { %v2421_v26 = vpack.c.bf16 %v2360_v14, %v2360_v14  ;;  %v2363_v43 = vrot.slane %v2362_v19, 2 }
 0x346   : > { %v2279_v57 = vpop.f32.mrf.mxu3 }
 0x347   : > { %v2473_v9 = vunpack.c.l.b16 %v2421_v26  ;;  %v2364_v35 = vadd.f32 %v2363_v43, %v2362_v19  ;;  %v2311_v17 = vmul.f32 %v2279_v57, %v4000_v47  ;;  %v3086_v47 = vld [vmem:[%s4528_s10 + $0x18] sm:$0xff]  ;;  %v3083_v19 = vld [vmem:[%s4528_s10] sm:$0xff] }
 0x348   : > { %2558 = vmatpush.bf16.msrb.mxu1 %v3086_v47 }
 0x349   : > { %v2365_v51 = vrot.slane %v2364_v35, 1  ;;  %v2494_v63 = vsel %vm2493_vm4, %v2473_v9, %v2492_v28 }
 0x34b   : > { %v2366_v55 = vadd.f32 %v2365_v51, %v2364_v35 }
 0x34c   : > { %2559 = vmatpush.bf16.msrb.mxu1 %v3085_v48 }
 0x34d   : > { %v2422_v59 = vpack.c.bf16 %v2366_v55, %v2366_v55 }
 0x34e   : > { %v2282_v42 = vpop.f32.mrf.mxu3 }
 0x34f   : > { %v2474_v20 = vunpack.c.l.b16 %v2422_v59  ;;  %v2312_v41 = vmul.f32 %v2282_v42, %v3981_v37  ;;  %v2367_v37 = vrot.slane %v2311_v17, 4 }
 0x351   : > { %v4357_v44 = vsel %vm2495_vm5, %v2474_v20, %v2494_v63  ;;  %v2373_v52 = vrot.slane %v2312_v41, 4 }
 0x353   : > { %v2374_v15 = vadd.f32 %v2373_v52, %v2312_v41 }
 0x355   : > { %v2375_v50 = vrot.slane %v2374_v15, 2 }
 0x356   : > { %v2285_v0 = vpop.f32.mrf.mxu3 }
 0x357   : > { %v2313_v46 = vmul.f32 %v2285_v0, %v3991_v8  ;;  %v2376_v61 = vadd.f32 %v2375_v50, %v2374_v15 }
 0x359   : > { %v2379_v7 = vrot.slane %v2313_v46, 4  ;;  %v2377_v43 = vrot.slane %v2376_v61, 1 }
 0x35b   : > { %v2378_v42 = vadd.f32 %v2377_v43, %v2376_v61 }
 0x35e   : > { %v2288_v23 = vpop.f32.mrf.mxu3 }
 0x35f   : > { %v2314_v45 = vmul.f32 %v2288_v23, %v4028_v11  ;;  %v2380_v11 = vadd.f32 %v2379_v7, %v2313_v46 }
 0x361   : > { %v2385_v13 = vrot.slane %v2314_v45, 4  ;;  %v2381_v40 = vrot.slane %v2380_v11, 2 }
 0x363   : > { %v2386_v53 = vadd.f32 %v2385_v13, %v2314_v45  ;;  %v2382_v1 = vadd.f32 %v2381_v40, %v2380_v11 }
 0x365   : > { %v2387_v30 = vrot.slane %v2386_v53, 2  ;;  %v2383_v35 = vrot.slane %v2382_v1, 1 }
 0x366   : > { %v2291_v4 = vpop.f32.mrf.mxu3 }
 0x367   : > { %v2315_v39 = vmul.f32 %v2291_v4, %v4012_v5  ;;  %v2368_v5 = vadd.f32 %v2367_v37, %v2311_v17  ;;  %v2388_v28 = vadd.f32 %v2387_v30, %v2386_v53  ;;  %v2384_v2 = vadd.f32 %v2383_v35, %v2382_v1  ;;  %v3161_v1 = vld [vmem:[%s4529_s11] ss:$0 sm:$0xff] }
 0x368   : > { %v2424_v17 = vpack.c.bf16 %v2378_v42, %v2378_v42 }
 0x369   : > { %v2391_v25 = vrot.slane %v2315_v39, 4  ;;  %v2369_v56 = vrot.slane %v2368_v5, 2  ;;  %v2389_v63 = vrot.slane %v2388_v28, 1  ;;  %v2425_v52 = vpack.c.bf16 %v2384_v2, %v2384_v2 }
 0x36b   : > { %v2392_v12 = vadd.f32 %v2391_v25, %v2315_v39  ;;  %v2370_v54 = vadd.f32 %v2369_v56, %v2368_v5  ;;  %v2390_v4 = vadd.f32 %v2389_v63, %v2388_v28  ;;  %v2477_v47 = vunpack.c.l.b16 %v2425_v52 }
 0x36d   : > { %v2393_v29 = vrot.slane %v2392_v12, 2  ;;  %v2371_v51 = vrot.slane %v2370_v54, 1  ;;  %v2426_v37 = vpack.c.bf16 %v2390_v4, %v2390_v4 }
 0x36e   : > { %v2294_v32 = vpop.f32.mrf.mxu3 }
 0x36f   : > { %v2316_v8 = vmul.f32 %v2294_v32, %v4015_v3  ;;  %v3084_v3 = vld [vmem:[%s4528_s10 + $0x8] sm:$0xff]  ;;  %v2394_v26 = vadd.f32 %v2393_v29, %v2392_v12  ;;  %v2372_v16 = vadd.f32 %v2371_v51, %v2370_v54  ;;  %v2476_v32 = vunpack.c.l.b16 %v2424_v17  ;;  %v3091_v17 = vld [vmem:[%s4534_s16] sm:$0xff] }
 0x370   : > { %2560 = vmatpush.bf16.msrb.mxu1 %v3084_v3  ;;  %v2478_v5 = vunpack.c.l.b16 %v2426_v37 }
 0x371   : > { %v2397_v24 = vrot.slane %v2316_v8, 4  ;;  %v2395_v59 = vrot.slane %v2394_v26, 1  ;;  %v2423_v7 = vpack.c.bf16 %v2372_v16, %v2372_v16 }
 0x373   : > { %v2398_v33 = vadd.f32 %v2397_v24, %v2316_v8  ;;  %v2396_v46 = vadd.f32 %v2395_v59, %v2394_v26  ;;  %v2475_v11 = vunpack.c.l.b16 %v2423_v7 }
 0x374   : > { %2561 = vmatpush.bf16.msrb.mxu1 %v3083_v19 }
 0x375   : > { %v2399_v49 = vrot.slane %v2398_v33, 2  ;;  %v2427_v25 = vpack.c.bf16 %v2396_v46, %v2396_v46  ;;  %v2497_v48 = vsel %vm2483_vm15, %v2476_v32, %v2475_v11 }
 0x376   : > { %v2297_v21 = vpop.f32.mrf.mxu3 }
 0x377   : > { %v2317_v6 = vmul.f32 %v2297_v21, %v4061_v36  ;;  %v2400_v57 = vadd.f32 %v2399_v49, %v2398_v33  ;;  %v2479_v24 = vunpack.c.l.b16 %v2427_v25  ;;  %v2498_v33 = vsel %vm2485_vm13, %v2477_v47, %v2497_v48  ;;  %v3162_v47 = vld [vmem:[%s4532_s14] ss:$0 sm:$0xff] }
 0x378   : > { %v2499_v56 = vsel %vm2487_vm1, %v2478_v5, %v2498_v33 }
 0x379   : > { %v2403_v14 = vrot.slane %v2317_v6, 4  ;;  %v2401_v20 = vrot.slane %v2400_v57, 1  ;;  %v2500_v3 = vsel %vm2489_vm2, %v2479_v24, %v2499_v56 }
 0x37b   : > { %v2404_v9 = vadd.f32 %v2403_v14, %v2317_v6  ;;  %v2402_v45 = vadd.f32 %v2401_v20, %v2400_v57  ;;  %v3244_v14 = vld [vmem:[%s3503_s25] sm:$0xff] }
 0x37d   : > { %v2405_v55 = vrot.slane %v2404_v9, 2  ;;  %v2428_v15 = vpack.c.bf16 %v2402_v45, %v2402_v45 }
 0x37e   : > { %v2300_v36 = vpop.f32.mrf.mxu3 }
 0x37f   : > { %v2406_v0 = vadd.f32 %v2405_v55, %v2404_v9  ;;  %v2318_v23 = vmul.f32 %v2300_v36, %v4041_v60  ;;  %v2480_v12 = vunpack.c.l.b16 %v2428_v15  ;;  %v3245_v9 = vld [vmem:[%s3503_s25 + $0x8] sm:$0xff] }
 0x381   : > { %v2407_v41 = vrot.slane %v2406_v0, 1  ;;  %v2409_v34 = vrot.slane %v2318_v23, 4  ;;  %v2501_v21 = vsel %vm2491_vm3, %v2480_v12, %v2500_v3 }
 0x383   : > { %v2410_v39 = vadd.f32 %v2409_v34, %v2318_v23  ;;  %v2408_v62 = vadd.f32 %v2407_v41, %v2406_v0 }
 0x385   : > { %v2411_v13 = vrot.slane %v2410_v39, 2  ;;  %v2429_v60 = vpack.c.bf16 %v2408_v62, %v2408_v62 }
 0x387   : > { %v2412_v8 = vadd.f32 %v2411_v13, %v2410_v39  ;;  %v2481_v40 = vunpack.c.l.b16 %v2429_v60 }
 0x389   : > { %v2413_v53 = vrot.slane %v2412_v8, 1  ;;  %v2502_v61 = vsel %vm2493_vm4, %v2481_v40, %v2501_v21  ;;  %v3098_v21 = vld [vmem:[%s4536_s18 + $0x18] sm:$0xff] }
 0x38b   : > { %v2414_v50 = vadd.f32 %v2413_v53, %v2412_v8  ;;  %v3163_v53 = vld [vmem:[%s4533_s15] ss:$0 sm:$0xff] }
 0x38d   : > { %v2430_v30 = vpack.c.bf16 %v2414_v50, %v2414_v50 }
 0x38f   : > { %v2482_v29 = vunpack.c.l.b16 %v2430_v30 }
 0x391   : > { %v2503_v49 = vsel %vm2495_vm5, %v2482_v29, %v2502_v61  ;;  %v3164_v61 = vld [vmem:[%s4535_s17] ss:$0 sm:$0xff] }
 0x392   : > { %v2504_v6 = vpack.c.b16 %v2503_v49, %v4357_v44  ;;  %v3097_v49 = vld [vmem:[%s4536_s18 + $0x10] sm:$0xff] }
 0x394   : > { %2562 = vmatmul.bf16.vlgmr.msrb.gmra.mxu1 %v2504_v6 }
 0x411   : > { %v2563_v54 = vpop.f32.mrf.mxu1 }
 0x412   : > { %v2564_v28 = vadd.f32 %v3161_v1, %v2563_v54  ;;  %v3096_v54 = vld [vmem:[%s4536_s18 + $0x8] sm:$0xff] }
 0x414   : > { %v4403_v19 = vadd.f32 %v3244_v14, %v2564_v28 }
 0x416   : > { %v2570_v26 = vsel %vm871_vm0, %v4403_v19, 0.0 }
 0x417   : > { %2571 = vadd.xlane.f32.xlu2 %v2570_v26  ;;  %v3095_v26 = vld [vmem:[%s4536_s18] sm:$0xff] }
 0x419   : > { %v2565_v43 = vpop.f32.mrf.mxu1 }
 0x41a   : > { %v2566_v57 = vadd.f32 %v3161_v1, %v2565_v43 }
 0x41c   : > { %v4408_v35 = vadd.f32 %v3245_v9, %v2566_v57 }
 0x41e   : > { %v2573_v44 = vsel %vm871_vm0, %v4408_v35, 0.0 }
 0x41f   : > { %2574 = vadd.xlane.f32.xlu2 %v2573_v44 }
 0x48a   : > { %v2572_v51 = vpop.xlane.xlu2 %2571 }
 0x48b   : > { %v2576_v63 = vmul.f32 %v2572_v51, %v3515_v18 }
 0x48d   : > { %v2578_v55 = vsub.f32 %v4403_v19, %v2576_v63 }
 0x48f   : > { %v2580_v59 = vmul.f32 %v2578_v55, %v2578_v55 }
 0x491   : > { %v2582_v36 = vsel %vm871_vm0, %v2580_v59, 0.0 }
 0x492   : > { %2583 = vadd.xlane.f32.xlu2 %v2582_v36  ;;  %v2575_v42 = vpop.xlane.xlu2 %2574 }
 0x493   : > { %v2577_v20 = vmul.f32 %v2575_v42, %v3515_v18 }
 0x495   : > { %v2579_v0 = vsub.f32 %v4408_v35, %v2577_v20 }
 0x497   : > { %v2581_v23 = vmul.f32 %v2579_v0, %v2579_v0 }
 0x499   : > { %v2585_v2 = vsel %vm871_vm0, %v2581_v23, 0.0 }
 0x49a   : > { %2586 = vadd.xlane.f32.xlu2 %v2585_v2 }
 0x4b2   : > { %994 = vrot.lane.b32.xlu2 %v3921_v10, %s3319_s8  ;;  %v3094_v10 = vld [vmem:[%s4534_s16 + $0x18] sm:$0xff] }
 0x4b3   : > { %2670 = vmatpush.bf16.msra.mxu1 %v3094_v10 }
 0x4ba   : > { %1000 = vrot.lane.b32.xlu2 %v3947_v27, %s3319_s8 }
 0x4c2   : > { %1004 = vrot.lane.b32.xlu2 %v3974_v31, %s3319_s8  ;;  %v3093_v31 = vld [vmem:[%s4534_s16 + $0x10] sm:$0xff] }
 0x4c3   : > { %2671 = vmatpush.bf16.msra.mxu1 %v3093_v31 }
 0x4ca   : > { %1010 = vrot.lane.b32.xlu2 %v4004_v22, %s3319_s8 }
 0x4d2   : > { %1016 = vrot.lane.b32.xlu2 %v4034_v58, %s3319_s8  ;;  %v3092_v58 = vld [vmem:[%s4534_s16 + $0x8] sm:$0xff] }
 0x4d3   : > { %2672 = vmatpush.bf16.msra.mxu1 %v3092_v58 }
 0x4d7   : > { %2673 = vmatpush.bf16.msra.mxu1 %v3091_v17 }
 0x4da   : > { %1022 = vrot.lane.b32.xlu2 %v4067_v38, %s3319_s8  ;;  %s2778_s8 = scalar_lea.hbm %s4540_s22, %s3532_s27 }
 0x4db   : > { %2742 = vmatpush.bf16.msrb.mxu1 %v3098_v21  ;;  %s2781_s12 = sshll.u32 %s2778_s8, 4  ;;  %s2782_s12 = int_to_ptr.hbm [resolvable:$true] %s2781_s12 }
 0x4dc   : > { %s3260_s6 = sshra.s32 %s2782_s12, 4  ;;  %s3261_s6 = int_to_ptr.hbm [resolvable:$true] %s3260_s6 }
 0x4dd   : > { %s3262_s25 = scalar_lea.hbm %s3261_s6, 16  ;;  %p3267_p1 = scmp.lt.s32.totalorder %s3261_s6, %s4540_s22 }
 0x4de   : > { %p3263_p12 = scmp.ne.s32.totalorder %s3261_s6, %s3262_s25  ;;  %p3268_p2 = scmp.lt.s32.totalorder %s3266_s29, %s3262_s25 }
 0x4df   : > { %2743 = vmatpush.bf16.msrb.mxu1 %v3097_v49 }
 0x4e0   : > { %p3264_p13 = pnand %p3263_p12, %p3485_p5  ;;  %p3269_p3 = por %p3268_p2, %p3267_p1 }
 0x4e2   : > { %p3265_p0 = pneg %p3264_p13 }
 0x4e3   : > { %2744 = vmatpush.bf16.msrb.mxu1 %v3096_v54 }
 0x4e4   : > { %p3270_p4 = pnand %p3269_p3, %p3265_p0 }
 0x4e7   : > { %2745 = vmatpush.bf16.msrb.mxu1 %v3095_v26 }
 0x505   : > { %v2584_v16 = vpop.xlane.xlu2 %2583 }
 0x506   : > { %v2588_v4 = vmul.f32 %v2584_v16, %v3515_v18 }
 0x508   : > { %v2590_v27 = vadd.f32 1e-05, %v2588_v4 }
 0x50a   : > { %3236 = vrsqrt.f32 %v2590_v27  ;;  %vm2598_vm7 = vweird.f32 %v2590_v27 }
 0x50d   : > { %v2587_v22 = vpop.xlane.xlu2 %2586 }
 0x50e   : > { %v2589_v38 = vmul.f32 %v2587_v22, %v3515_v18  ;;  %v3165_v22 = vld [vmem:[%s4537_s19] ss:$0 sm:$0xff] }
 0x510   : > { %v3237_v41 = vpop.eup %3236  ;;  %v2591_v34 = vadd.f32 1e-05, %v2589_v38 }
 0x511   : > { %v2593_v46 = vmul.f32 %v3237_v41, %v2590_v27  ;;  %vm2599_vm6 = vweird.f32 %v3237_v41 }
 0x512   : > { %3238 = vrsqrt.f32 %v2591_v34  ;;  %vm2600_vm8 = vmor %vm2598_vm7, %vm2599_vm6  ;;  %vm2608_vm10 = vweird.f32 %v2591_v34 }
 0x513   : > { %v2594_v45 = vmul.f32 %v3237_v41, %v2593_v46 }
 0x515   : > { %v2595_v39 = vmul.f32 0.5, %v2594_v45  ;;  %v995_v52 = vpop.permute.xlu2 %994 }
 0x516   : > { %1042 = vst.msk [vmem:[%s4055_s30] sm:$0xf] %vm961_vm14, %v995_v52 }
 0x517   : > { %v2596_v62 = vsub.f32 1.5, %v2595_v39 }
 0x518   : > { %v3239_v7 = vpop.eup %3238 }
 0x519   : > { %v2597_v37 = vmul.f32 %v3237_v41, %v2596_v62  ;;  %v2603_v18 = vmul.f32 %v3239_v7, %v2591_v34  ;;  %vm2609_vm9 = vweird.f32 %v3239_v7 }
 0x51a   : > { %vm2610_vm11 = vmor %vm2608_vm10, %vm2609_vm9 }
 0x51b   : > { %v2604_v13 = vmul.f32 %v3239_v7, %v2603_v18  ;;  %v2601_v25 = vsel %vm2600_vm8, %v3237_v41, %v2597_v37 }
 0x51c   : > { %v2612_v60 = vmul.f32 %v2601_v25, %v2578_v55 }
 0x51d   : > { %v2605_v32 = vmul.f32 0.5, %v2604_v13  ;;  %v1001_v15 = vpop.permute.xlu2 %1000 }
 0x51e   : > { %1045 = vst.msk [vmem:[%s4055_s30 + $0xc] sm:$0xf] %vm961_vm14, %v1001_v15  ;;  %v2618_v24 = vmul.f32 %v3162_v47, %v2612_v60 }
 0x51f   : > { %v2606_v8 = vsub.f32 1.5, %v2605_v32 }
 0x520   : > { %v2624_v33 = vadd.f32 %v3163_v53, %v2618_v24 }
 0x521   : > { %v2607_v11 = vmul.f32 %v3239_v7, %v2606_v8 }
 0x523   : > { %v2611_v5 = vsel %vm2610_vm11, %v3239_v7, %v2607_v11 }
 0x524   : > { %v2613_v48 = vmul.f32 %v2611_v5, %v2579_v0 }
 0x525   : > { %v1005_v12 = vpop.permute.xlu2 %1004 }
 0x526   : > { %v2619_v50 = vmul.f32 %v3162_v47, %v2613_v48  ;;  %1047 = vst.msk [vmem:[%s4055_s30 + $0x14] sm:$0xf] %vm961_vm14, %v1005_v12 }
 0x528   : > { %v2625_v40 = vadd.f32 %v3163_v53, %v2619_v50 }
 0x52a   : > { %v2626_v56 = vpack.c.bf16 %v2625_v40, %v2624_v33 }
 0x52c   : > { %3052 = vmatmul.msk.bf16.vlgmr.msra.gmra.mxu1 %vm871_vm0, %v2626_v56 }
 0x52d   : > { %v1011_v30 = vpop.permute.xlu2 %1010 }
 0x52e   : > { %1050 = vst.msk [vmem:[%s4055_s30 + $0x20] sm:$0xf] %vm961_vm14, %v1011_v30 }
 0x535   : > { %v1017_v3 = vpop.permute.xlu2 %1016 }
 0x536   : > { %1053 = vst.msk [vmem:[%s4055_s30 + $0x2c] sm:$0xf] %vm961_vm14, %v1017_v3 }
 0x53d   : > { %v1023_v29 = vpop.permute.xlu2 %1022 }
 0x53e   : > { %1056 = vst.msk [vmem:[%s4055_s30 + $0x38] sm:$0xf] %vm961_vm14, %v1023_v29  ;;  %s2757_s30 = scalar_lea.sflag [#allocation3], %s762_s13 }
 0x5a9   : > { %v2675_v6 = vpop.f32.mrf.mxu1 }
 0x5aa   : > { %v2676_v1 = vadd.f32 %v3164_v61, %v2675_v6 }
 0x5ac   : > { %v2682_v28 = vmul.f32 0.044715, %v2676_v1  ;;  %v2680_v2 = vmul.f32 0.5, %v2676_v1 }
 0x5ae   : > { %v2684_v14 = vmul.f32 %v2682_v28, %v2676_v1 }
 0x5b0   : > { %v2686_v43 = vmul.f32 %v2684_v14, %v2676_v1 }
 0x5b1   : > { %v2677_v57 = vpop.f32.mrf.mxu1 }
 0x5b2   : > { %v2688_v9 = vadd.f32 %v2686_v43, %v2676_v1  ;;  %v2678_v44 = vadd.f32 %v3164_v61, %v2677_v57 }
 0x5b4   : > { %v2683_v51 = vmul.f32 0.044715, %v2678_v44  ;;  %v2690_v63 = vmul.f32 0.7978846, %v2688_v9  ;;  %v2681_v16 = vmul.f32 0.5, %v2678_v44 }
 0x5b6   : > { %v2685_v55 = vmul.f32 %v2683_v51, %v2678_v44  ;;  %3240 = vtanh.f32 %v2690_v63 }
 0x5b8   : > { %v2687_v59 = vmul.f32 %v2685_v55, %v2678_v44 }
 0x5ba   : > { %v2689_v36 = vadd.f32 %v2687_v59, %v2678_v44 }
 0x5bc   : > { %v2691_v42 = vmul.f32 0.7978846, %v2689_v36  ;;  %v3241_v20 = vpop.eup %3240 }
 0x5bd   : > { %v2694_v0 = vadd.f32 1.0, %v3241_v20 }
 0x5be   : > { %3242 = vtanh.f32 %v2691_v42 }
 0x5bf   : > { %v2696_v10 = vmul.f32 %v2694_v0, %v2680_v2 }
 0x5c4   : > { %v3243_v23 = vpop.eup %3242 }
 0x5c5   : > { %v2695_v4 = vadd.f32 1.0, %v3243_v23 }
 0x5c7   : > { %v2697_v27 = vmul.f32 %v2695_v4, %v2681_v16 }
 0x5c9   : > { %v2698_v31 = vpack.c.bf16 %v2697_v27, %v2696_v10 }
 0x5cb   : > { %3069 = vmatmul.msk.bf16.vlgmr.msrb.gmra.mxu1 %vm871_vm0, %v2698_v31 }
 0x648   : > { %v2747_v58 = vpop.f32.mrf.mxu1 }
 0x649   : > { %v2748_v38 = vadd.f32 %v3165_v22, %v2747_v58 }
 0x64b   : > { %v2752_v41 = vadd.f32 %v2748_v38, %v4403_v19 }
 0x64d   : > { %2754 = vst.msk [vmem:[%s764_s4] sm:$0xff] %vm871_vm0, %v2752_v41 }
 0x650   : > { %v2749_v34 = vpop.f32.mrf.mxu1 }
 0x651   : > { %v2750_v46 = vadd.f32 %v3165_v22, %v2749_v34 }
 0x653   : > { %v2753_v17 = vadd.f32 %v2750_v46, %v4408_v35 }
 0x655   : > { %2755 = vst.msk [vmem:[%s764_s4 + $0x8] sm:$0xff] %vm871_vm0, %v2753_v17 }
 0x656   : > { %3273 = shalt.err (!%p3270_p4)
}
 0x657   : > { %s3320_s13 = smov 128   ;;  %s3321_s4 = smov 8  }
 0x658   : > { %3100 = dma.vmem_to_hbm [thread:$0]  (%p3485_p5), %s2780_s0, 256, %s2782_s12, %s2757_s30, %s3320_s13, %s3320_s13, %s3321_s4  }
 0x659 PF: > { %p3106_p7 = scmp.ge.s32.totalorder %s3308_s28, 2  ;;  %s2804_s7 = sand.u32 1, %s3296_s5  }
 0x65a   : > { %s2805_s27 = scalar_lea.sflag [#allocation3], %s2804_s7 }
 0x65b   : > { %p3103_p8 = pnand %p3106_p7, %p3489_p6 }
 0x65d   : > { %p3104_p9 = pneg %p3103_p8 }
 0x65f   : > { %3291 = dma.done.wait (%p3104_p9), %s2805_s27, 256  }
 0x660   : > { %3293 = vsyncadd (%p3104_p9), %s2805_s27, 4294967040  ;;  %s4588_s28 = sld [smem:[#allocation6_spill]]  ;;  %s4591_s5 = smov %s3300_s26 }
 0x661   : > { %s4589_s6 = sld [smem:[#allocation5_spill]] }
 0x662   : > { %s4590_s27 = sld [smem:[#allocation7_spill]] }
 0x666   : > { %p35_p10 = scmp.ge.s32.totalorder %s4588_s28, 4  }
 0x667   : > { %s4592_s26 = smov %s4589_s6 }
 0x668   :  { %37 = sbr.rel (!%p35_p10) target bundleno = 15 (0xf), region = 173 }
 0x66d   :  { %2827 = vsyncpa [#allocation3], 1 }
 0x66e   :  { %2829 = vsyncpa [#allocation3 + $0x1], 1 }

</bundles_post_ra>
